<compile_context>
chip_gen: v5e
topology: v5e:2x2
jax: 0.10.0
libtpu: 0.0.40
codegen_flags: <defaults>
</compile_context>

<pallas_src>
import jax
import jax.numpy as jnp
from jax.experimental import pallas as pl
from jax.experimental.pallas import tpu as pltpu

# ------------------- small synthetic config -------------------
BATCH = 2
TOKENS = 8
IN_FEAT = 32          # input_feature_size
HIDDEN = 64           # output_feature_size (transformer hidden size)
N_HEADS = 4
HEAD_DIM = HIDDEN // N_HEADS
INTERMEDIATE = 128
N_LAYERS = 2          # num_transformer_layer
CLS_FEAT = 32         # cls_feature_size
N_REL = 8             # num_relation_classes
LN_EPS_FC = 1e-5      # nn.LayerNorm default (fc_input / fc_output)
LN_EPS_BERT = 1e-12   # BERT LayerNorm eps

RC = N_REL * CLS_FEAT            # 256
VEC_W = 2 * RC                   # 512 — width of the packed vector slab

# ---- packed vector-slab row layout (static offsets, sliced in-kernel) ----
ROW_FCI_B, ROW_FCI_G, ROW_FCI_BT = 0, 1, 2
ROW_EMB_ADD, ROW_EMB_G, ROW_EMB_B = 3, 4, 5
ROW_FCO_B, ROW_FCO_G, ROW_FCO_BT = 6, 7, 8
ROW_CLS_B = 9
ROW_LAYER0 = 10
(LROW_QKV_B, LROW_AO_B, LROW_ALN_G, LROW_ALN_B,
 LROW_INT_B, LROW_FFO_B, LROW_OLN_G, LROW_OLN_B) = range(8)
ROWS_PER_LAYER = 8
N_VEC_ROWS = ROW_LAYER0 + N_LAYERS * ROWS_PER_LAYER     # 26
VEC_ROWS_PAD = 32                                       # pad rows to sublane multiple


# ------------------- fused forward kernel -------------------
def _layernorm(y, g, b, eps):
    mu = jnp.mean(y, axis=-1, keepdims=True)
    var = jnp.mean(jnp.square(y - mu), axis=-1, keepdims=True)
    return (y - mu) * jax.lax.rsqrt(var + eps) * g + b


def _ram_fused_kernel(
    x_ref, mask_ref, vec_ref,
    fci_w, fco_w, cls_w,            # 2-D weight slabs
    qkv_w, ao_w, int_w, ffo_w,      # per-layer stacked weights (leading dim = layer)
    out_ref,
):
    f32 = jnp.float32
    BB = x_ref.shape[0]             # batch elements handled by this program
    T = x_ref.shape[1]
    M = BB * T

    V = vec_ref[...]                # (32, 512) packed bias / LN / emb vectors

    def vrow(row, width):           # static slice -> (1, width)
        return V[row:row + 1, :width]

    # Batch folded into matmul rows: (BB, T, IN) -> (BB*T, IN)
    x = x_ref[...].reshape(M, IN_FEAT)

    # fc_input: Linear + LayerNorm(1e-5)
    h = jnp.dot(x, fci_w[...], preferred_element_type=f32) + vrow(ROW_FCI_B, HIDDEN)
    h = _layernorm(h, vrow(ROW_FCI_G, HIDDEN), vrow(ROW_FCI_BT, HIDDEN), LN_EPS_FC)

    # BERT embeddings with inputs_embeds: position_ids = ones -> pos_emb[1],
    # token_type_ids = zeros -> tok_emb[0] (matches the original module's
    # explicit `position_ids = torch.ones(...)`), then LayerNorm(1e-12).
    h = _layernorm(h + vrow(ROW_EMB_ADD, HIDDEN),
                   vrow(ROW_EMB_G, HIDDEN), vrow(ROW_EMB_B, HIDDEN), LN_EPS_BERT)

    # Additive padding bias, hoisted + broadcast once (reused by all heads/layers).
    neg = (1.0 - mask_ref[...]) * -10000.0                 # (BB, 1, T)
    bias = jnp.broadcast_to(neg, (BB, T, T))               # (BB, T, T)

    for l in range(N_LAYERS):
        base = ROW_LAYER0 + l * ROWS_PER_LAYER

        # fused Q|K|V projection (1/sqrt(HEAD_DIM) pre-folded into Q cols + bias)
        qkv = (jnp.dot(h, qkv_w[l], preferred_element_type=f32)
               + V[base + LROW_QKV_B:base + LROW_QKV_B + 1, :3 * HIDDEN])
        qkv3 = qkv.reshape(BB, T, 3 * HIDDEN)

        ctx_heads = []
        for hh in range(N_HEADS):
            q = qkv3[:, :, hh * HEAD_DIM:(hh + 1) * HEAD_DIM]
            k = qkv3[:, :, HIDDEN + hh * HEAD_DIM:HIDDEN + (hh + 1) * HEAD_DIM]
            v = qkv3[:, :, 2 * HIDDEN + hh * HEAD_DIM:2 * HIDDEN + (hh + 1) * HEAD_DIM]
            # contraction over shared last dim (no transpose), batched over BB
            s = jnp.einsum('bqd,bkd->bqk', q, k,
                           preferred_element_type=f32) + bias          # (BB, T, T)
            s = s - jnp.max(s, axis=-1, keepdims=True)
            p = jnp.exp(s)
            p = p / jnp.sum(p, axis=-1, keepdims=True)                 # exact softmax
            ctx_heads.append(jnp.einsum('bqk,bkd->bqd', p, v,
                                        preferred_element_type=f32))   # (BB, T, Dh)
        ctx = jnp.concatenate(ctx_heads, axis=-1).reshape(M, HIDDEN)

        attn = (jnp.dot(ctx, ao_w[l], preferred_element_type=f32)
                + V[base + LROW_AO_B:base + LROW_AO_B + 1, :HIDDEN])
        h = _layernorm(attn + h,
                       V[base + LROW_ALN_G:base + LROW_ALN_G + 1, :HIDDEN],
                       V[base + LROW_ALN_B:base + LROW_ALN_B + 1, :HIDDEN],
                       LN_EPS_BERT)

        ff = (jnp.dot(h, int_w[l], preferred_element_type=f32)
              + V[base + LROW_INT_B:base + LROW_INT_B + 1, :INTERMEDIATE])
        # TODO(synk): HF BERT default is exact (erf) GELU; tanh approximation is
        # used here for a TPU-friendly lowering.
        ff = jax.nn.gelu(ff, approximate=True)
        ff = (jnp.dot(ff, ffo_w[l], preferred_element_type=f32)
              + V[base + LROW_FFO_B:base + LROW_FFO_B + 1, :HIDDEN])
        h = _layernorm(ff + h,
                       V[base + LROW_OLN_G:base + LROW_OLN_G + 1, :HIDDEN],
                       V[base + LROW_OLN_B:base + LROW_OLN_B + 1, :HIDDEN],
                       LN_EPS_BERT)

    # fc_output: Linear + LayerNorm(1e-5)
    h = jnp.dot(h, fco_w[...], preferred_element_type=f32) + vrow(ROW_FCO_B, HIDDEN)
    h = _layernorm(h, vrow(ROW_FCO_G, HIDDEN), vrow(ROW_FCO_BT, HIDDEN), LN_EPS_FC)

    # fused cls_sub | cls_obj projection -> (M, 2*R*C); 1/sqrt(CLS_FEAT) is
    # pre-folded into the cls_sub half of the weights + bias.
    so = jnp.dot(h, cls_w[...], preferred_element_type=f32) + vrow(ROW_CLS_B, 2 * RC)
    so3 = so.reshape(BB, T, 2 * RC)

    # Per-relation sub @ obj^T (contraction over shared last dim, batched over
    # BB), accumulated into one lane-dense (BB, T, R*T) slab -> single store.
    rel_blocks = []
    for r in range(N_REL):
        s_r = so3[:, :, r * CLS_FEAT:(r + 1) * CLS_FEAT]
        o_r = so3[:, :, RC + r * CLS_FEAT:RC + (r + 1) * CLS_FEAT]
        rel_blocks.append(jnp.einsum('bsc,boc->bso', s_r, o_r,
                                     preferred_element_type=f32))       # (BB, T, T)
    out_ref[...] = jnp.concatenate(rel_blocks, axis=-1).astype(out_ref.dtype)


# ------------------- wrapper -------------------
def ram_forward(weights, embeds, attention_mask, *, num_programs=1):
    """num_programs=1 (default) for 1-TC chips (v5e/v6e); 2 for v7x megacore."""
    B, T, _ = embeds.shape
    assert B % num_programs == 0
    bb = B // num_programs
    mask = attention_mask.astype(jnp.float32).reshape(B, 1, T)
    vec, fci_w, fco_w, cls_w, qkv_w, ao_w, int_w, ffo_w = weights

    def rep(shape):   # whole-array block, same tile for every program
        z = (0,) * len(shape)
        return pl.BlockSpec(shape, lambda b, _z=z: _z)

    weight_specs = [rep(w.shape) for w in
                    (vec, fci_w, fco_w, cls_w, qkv_w, ao_w, int_w, ffo_w)]

    scores = pl.pallas_call(
        _ram_fused_kernel,
        out_shape=jax.ShapeDtypeStruct((B, T, N_REL * T), jnp.float32),
        grid=(num_programs,),
        in_specs=[pl.BlockSpec((bb, T, IN_FEAT), lambda b: (b, 0, 0)),
                  pl.BlockSpec((bb, 1, T), lambda b: (b, 0, 0))] + weight_specs,
        out_specs=pl.BlockSpec((bb, T, N_REL * T), lambda b: (b, 0, 0)),
        compiler_params=pltpu.CompilerParams(
            dimension_semantics=("parallel",)),
    )(embeds, mask, vec, fci_w, fco_w, cls_w, qkv_w, ao_w, int_w, ffo_w)

    # (B, T, R*T) -> (B, R, T, T): layout plumbing done outside the kernel.
    return scores.reshape(B, T, N_REL, T).transpose(0, 2, 1, 3)


# ------------------- parameters (deterministic, synthetic) -------------------
def init_params(key):
    keys = iter(jax.random.split(key, 64))

    def lin(kin, kout):
        return {"w": jax.random.normal(next(keys), (kin, kout), jnp.float32) * 0.02,
                "b": jnp.zeros((kout,), jnp.float32)}

    def ln(n):
        return {"g": jnp.ones((n,), jnp.float32), "b": jnp.zeros((n,), jnp.float32)}

    params = {
        "fc_input": {"lin": lin(IN_FEAT, HIDDEN), "ln": ln(HIDDEN)},
        "fc_output": {"lin": lin(HIDDEN, HIDDEN), "ln": ln(HIDDEN)},
        "pos_emb": jax.random.normal(next(keys), (16, HIDDEN), jnp.float32) * 0.02,
        "tok_emb": jax.random.normal(next(keys), (2, HIDDEN), jnp.float32) * 0.02,
        "emb_ln": ln(HIDDEN),
        "cls_sub": lin(HIDDEN, CLS_FEAT * N_REL),
        "cls_obj": lin(HIDDEN, CLS_FEAT * N_REL),
        "layers": [],
    }
    for _ in range(N_LAYERS):
        params["layers"].append({
            "q": lin(HIDDEN, HIDDEN), "k": lin(HIDDEN, HIDDEN), "v": lin(HIDDEN, HIDDEN),
            "attn_out": lin(HIDDEN, HIDDEN), "attn_ln": ln(HIDDEN),
            "inter": lin(HIDDEN, INTERMEDIATE),
            "out": lin(INTERMEDIATE, HIDDEN), "out_ln": ln(HIDDEN),
        })
    return params


def prepare_inputs(params):
    """One-time host-side packing into the fused, kernel-friendly layout."""
    scale_q = 1.0 / (HEAD_DIM ** 0.5)
    scale_rel = 1.0 / (CLS_FEAT ** 0.5)
    layers = params["layers"]

    # fused QKV weights with attention scale folded into the Q columns
    qkv_w = jnp.stack([
        jnp.concatenate([lp["q"]["w"] * scale_q, lp["k"]["w"], lp["v"]["w"]], axis=1)
        for lp in layers])                                   # (L, H, 3H)
    ao_w = jnp.stack([lp["attn_out"]["w"] for lp in layers])  # (L, H, H)
    int_w = jnp.stack([lp["inter"]["w"] for lp in layers])    # (L, H, I)
    ffo_w = jnp.stack([lp["out"]["w"] for lp in layers])      # (L, I, H)

    # fused cls heads with 1/sqrt(CLS_FEAT) folded into the sub half
    cls_w = jnp.concatenate([params["cls_sub"]["w"] * scale_rel,
                             params["cls_obj"]["w"]], axis=1)  # (H, 2*R*C)
    fci_w = params["fc_input"]["lin"]["w"]
    fco_w = params["fc_output"]["lin"]["w"]

    # position_ids = ones -> pos_emb[1]; token_type_ids = zeros -> tok_emb[0]
    emb_add = params["pos_emb"][1] + params["tok_emb"][0]

    def row(v):
        v = jnp.asarray(v, jnp.float32).reshape(-1)
        return jnp.pad(v, (0, VEC_W - v.shape[0]))

    rows = [
        row(params["fc_input"]["lin"]["b"]),   # ROW_FCI_B
        row(params["fc_input"]["ln"]["g"]),    # ROW_FCI_G
        row(params["fc_input"]["ln"]["b"]),    # ROW_FCI_BT
        row(emb_add),                          # ROW_EMB_ADD
        row(params["emb_ln"]["g"]),            # ROW_EMB_G
        row(params["emb_ln"]["b"]),            # ROW_EMB_B
        row(params["fc_output"]["lin"]["b"]),  # ROW_FCO_B
        row(params["fc_output"]["ln"]["g"]),   # ROW_FCO_G
        row(params["fc_output"]["ln"]["b"]),   # ROW_FCO_BT
        row(jnp.concatenate([params["cls_sub"]["b"] * scale_rel,
                             params["cls_obj"]["b"]])),        # ROW_CLS_B
    ]
    for lp in layers:
        rows.append(row(jnp.concatenate([lp["q"]["b"] * scale_q,
                                         lp["k"]["b"], lp["v"]["b"]])))  # LROW_QKV_B
        rows.append(row(lp["attn_out"]["b"]))   # LROW_AO_B
        rows.append(row(lp["attn_ln"]["g"]))    # LROW_ALN_G
        rows.append(row(lp["attn_ln"]["b"]))    # LROW_ALN_B
        rows.append(row(lp["inter"]["b"]))      # LROW_INT_B
        rows.append(row(lp["out"]["b"]))        # LROW_FFO_B
        rows.append(row(lp["out_ln"]["g"]))     # LROW_OLN_G
        rows.append(row(lp["out_ln"]["b"]))     # LROW_OLN_B
    assert len(rows) == N_VEC_ROWS
    vec = jnp.stack(rows)
    vec = jnp.pad(vec, ((0, VEC_ROWS_PAD - vec.shape[0]), (0, 0)))  # (32, 512)

    return (vec, fci_w, fco_w, cls_w, qkv_w, ao_w, int_w, ffo_w)


if __name__ == "__main__":
    key = jax.random.PRNGKey(0)
    kp, kx = jax.random.split(key)
    params = init_params(kp)
    weights = prepare_inputs(params)

    embeds = jax.random.normal(kx, (BATCH, TOKENS, IN_FEAT), jnp.float32)
    attention_mask = jnp.ones((BATCH, TOKENS), jnp.float32).at[1, 6:].set(0.0)

    fwd = jax.jit(ram_forward, static_argnames=("num_programs",))
    cls_pred = fwd(weights, embeds, attention_mask)   # default: 1 program (v5e/v6e)
    cls_pred = jax.block_until_ready(cls_pred)

    assert cls_pred.shape == (BATCH, N_REL, TOKENS, TOKENS), cls_pred.shape
    assert bool(jnp.all(jnp.isfinite(cls_pred)))
    print("KERNEL_OK")
</pallas_src>

<mosaic_0001>
module attributes {stable_mosaic.version = 11 : i64} {
  func.func @_ram_fused_kernel(%arg0: i32, %arg1: memref<2x8x32xf32, #tpu.memory_space<vmem>>, %arg2: memref<2x1x8xf32, #tpu.memory_space<vmem>>, %arg3: memref<32x512xf32, #tpu.memory_space<vmem>>, %arg4: memref<32x64xf32, #tpu.memory_space<vmem>>, %arg5: memref<64x64xf32, #tpu.memory_space<vmem>>, %arg6: memref<64x512xf32, #tpu.memory_space<vmem>>, %arg7: memref<2x64x192xf32, #tpu.memory_space<vmem>>, %arg8: memref<2x64x64xf32, #tpu.memory_space<vmem>>, %arg9: memref<2x64x128xf32, #tpu.memory_space<vmem>>, %arg10: memref<2x128x64xf32, #tpu.memory_space<vmem>>, %arg11: memref<2x8x64xf32, #tpu.memory_space<vmem>>) attributes {dimension_semantics = [#tpu.dimension_semantics<parallel>], iteration_bounds = array<i64: 1>, scalar_prefetch = 0 : i64, scratch_operands = 0 : i64, tpu.core_type = #tpu.core_type<tc>, window_params = [{transform_indices = @transform_0, window_bounds = array<i64: 2, 8, 32>}, {transform_indices = @transform_1, window_bounds = array<i64: 2, 1, 8>}, {pipeline_mode = #tpu.pipeline_mode<synchronous>, transform_indices = @transform_2, window_bounds = array<i64: 32, 512>}, {pipeline_mode = #tpu.pipeline_mode<synchronous>, transform_indices = @transform_3, window_bounds = array<i64: 32, 64>}, {pipeline_mode = #tpu.pipeline_mode<synchronous>, transform_indices = @transform_4, window_bounds = array<i64: 64, 64>}, {pipeline_mode = #tpu.pipeline_mode<synchronous>, transform_indices = @transform_5, window_bounds = array<i64: 64, 512>}, {pipeline_mode = #tpu.pipeline_mode<synchronous>, transform_indices = @transform_6, window_bounds = array<i64: 2, 64, 192>}, {pipeline_mode = #tpu.pipeline_mode<synchronous>, transform_indices = @transform_7, window_bounds = array<i64: 2, 64, 64>}, {pipeline_mode = #tpu.pipeline_mode<synchronous>, transform_indices = @transform_8, window_bounds = array<i64: 2, 64, 128>}, {pipeline_mode = #tpu.pipeline_mode<synchronous>, transform_indices = @transform_9, window_bounds = array<i64: 2, 128, 64>}, {transform_indices = @transform_10, window_bounds = array<i64: 2, 8, 64>}]} {
    %c0 = arith.constant 0 : index
    %c0_0 = arith.constant 0 : index
    %0 = vector.load %arg3[%c0, %c0_0] : memref<32x512xf32, #tpu.memory_space<vmem>>, vector<32x512xf32>
    %c0_1 = arith.constant 0 : index
    %c0_2 = arith.constant 0 : index
    %c0_3 = arith.constant 0 : index
    %1 = vector.load %arg1[%c0_1, %c0_2, %c0_3] : memref<2x8x32xf32, #tpu.memory_space<vmem>>, vector<2x8x32xf32>
    %2 = vector.shape_cast %1 : vector<2x8x32xf32> to vector<16x32xf32>
    %c0_4 = arith.constant 0 : index
    %c0_5 = arith.constant 0 : index
    %3 = vector.load %arg4[%c0_4, %c0_5] : memref<32x64xf32, #tpu.memory_space<vmem>>, vector<32x64xf32>
    %cst = arith.constant dense<0.000000e+00> : vector<16x64xf32>
    %4 = tpu.matmul %2, %3, %cst {dimension_numbers = #tpu.dot_dimension_numbers<[1], [0], [0], [1], [0, 0, 1, 1], [], []>} : vector<16x32xf32>, vector<32x64xf32>, vector<16x64xf32> -> vector<16x64xf32>
    %5 = vector.extract_strided_slice %0 {offsets = [0, 0], sizes = [1, 64], strides = [1, 1]} : vector<32x512xf32> to vector<1x64xf32>
    %6 = vector.broadcast %5 : vector<1x64xf32> to vector<16x64xf32>
    %7 = arith.addf %4, %6 : vector<16x64xf32>
    %8 = vector.extract_strided_slice %0 {offsets = [1, 0], sizes = [1, 64], strides = [1, 1]} : vector<32x512xf32> to vector<1x64xf32>
    %9 = vector.extract_strided_slice %0 {offsets = [2, 0], sizes = [1, 64], strides = [1, 1]} : vector<32x512xf32> to vector<1x64xf32>
    %cst_6 = arith.constant dense<0.000000e+00> : vector<16xf32>
    %10 = vector.multi_reduction <add>, %7, %cst_6 [1] : vector<16x64xf32> to vector<16xf32>
    %11 = vector.shape_cast %10 : vector<16xf32> to vector<16x1xf32>
    %cst_7 = arith.constant 6.400000e+01 : f32
    %12 = vector.broadcast %cst_7 : f32 to vector<16x1xf32>
    %13 = arith.divf %11, %12 : vector<16x1xf32>
    %14 = vector.broadcast %13 : vector<16x1xf32> to vector<16x64xf32>
    %15 = arith.subf %7, %14 : vector<16x64xf32>
    %16 = arith.mulf %15, %15 : vector<16x64xf32>
    %cst_8 = arith.constant dense<0.000000e+00> : vector<16xf32>
    %17 = vector.multi_reduction <add>, %16, %cst_8 [1] : vector<16x64xf32> to vector<16xf32>
    %18 = vector.shape_cast %17 : vector<16xf32> to vector<16x1xf32>
    %cst_9 = arith.constant 6.400000e+01 : f32
    %19 = vector.broadcast %cst_9 : f32 to vector<16x1xf32>
    %20 = arith.divf %18, %19 : vector<16x1xf32>
    %21 = vector.broadcast %13 : vector<16x1xf32> to vector<16x64xf32>
    %22 = arith.subf %7, %21 : vector<16x64xf32>
    %cst_10 = arith.constant 9.99999974E-6 : f32
    %23 = vector.broadcast %cst_10 : f32 to vector<16x1xf32>
    %24 = arith.addf %20, %23 : vector<16x1xf32>
    %25 = math.rsqrt %24 : vector<16x1xf32>
    %26 = vector.broadcast %25 : vector<16x1xf32> to vector<16x64xf32>
    %27 = arith.mulf %22, %26 : vector<16x64xf32>
    %28 = vector.broadcast %8 : vector<1x64xf32> to vector<16x64xf32>
    %29 = arith.mulf %27, %28 : vector<16x64xf32>
    %30 = vector.broadcast %9 : vector<1x64xf32> to vector<16x64xf32>
    %31 = arith.addf %29, %30 : vector<16x64xf32>
    %32 = vector.extract_strided_slice %0 {offsets = [3, 0], sizes = [1, 64], strides = [1, 1]} : vector<32x512xf32> to vector<1x64xf32>
    %33 = vector.broadcast %32 : vector<1x64xf32> to vector<16x64xf32>
    %34 = arith.addf %31, %33 : vector<16x64xf32>
    %35 = vector.extract_strided_slice %0 {offsets = [4, 0], sizes = [1, 64], strides = [1, 1]} : vector<32x512xf32> to vector<1x64xf32>
    %36 = vector.extract_strided_slice %0 {offsets = [5, 0], sizes = [1, 64], strides = [1, 1]} : vector<32x512xf32> to vector<1x64xf32>
    %cst_11 = arith.constant dense<0.000000e+00> : vector<16xf32>
    %37 = vector.multi_reduction <add>, %34, %cst_11 [1] : vector<16x64xf32> to vector<16xf32>
    %38 = vector.shape_cast %37 : vector<16xf32> to vector<16x1xf32>
    %cst_12 = arith.constant 6.400000e+01 : f32
    %39 = vector.broadcast %cst_12 : f32 to vector<16x1xf32>
    %40 = arith.divf %38, %39 : vector<16x1xf32>
    %41 = vector.broadcast %40 : vector<16x1xf32> to vector<16x64xf32>
    %42 = arith.subf %34, %41 : vector<16x64xf32>
    %43 = arith.mulf %42, %42 : vector<16x64xf32>
    %cst_13 = arith.constant dense<0.000000e+00> : vector<16xf32>
    %44 = vector.multi_reduction <add>, %43, %cst_13 [1] : vector<16x64xf32> to vector<16xf32>
    %45 = vector.shape_cast %44 : vector<16xf32> to vector<16x1xf32>
    %cst_14 = arith.constant 6.400000e+01 : f32
    %46 = vector.broadcast %cst_14 : f32 to vector<16x1xf32>
    %47 = arith.divf %45, %46 : vector<16x1xf32>
    %48 = vector.broadcast %40 : vector<16x1xf32> to vector<16x64xf32>
    %49 = arith.subf %34, %48 : vector<16x64xf32>
    %cst_15 = arith.constant 9.99999996E-13 : f32
    %50 = vector.broadcast %cst_15 : f32 to vector<16x1xf32>
    %51 = arith.addf %47, %50 : vector<16x1xf32>
    %52 = math.rsqrt %51 : vector<16x1xf32>
    %53 = vector.broadcast %52 : vector<16x1xf32> to vector<16x64xf32>
    %54 = arith.mulf %49, %53 : vector<16x64xf32>
    %55 = vector.broadcast %35 : vector<1x64xf32> to vector<16x64xf32>
    %56 = arith.mulf %54, %55 : vector<16x64xf32>
    %57 = vector.broadcast %36 : vector<1x64xf32> to vector<16x64xf32>
    %58 = arith.addf %56, %57 : vector<16x64xf32>
    %c0_16 = arith.constant 0 : index
    %c0_17 = arith.constant 0 : index
    %c0_18 = arith.constant 0 : index
    %59 = vector.load %arg2[%c0_16, %c0_17, %c0_18] : memref<2x1x8xf32, #tpu.memory_space<vmem>>, vector<2x1x8xf32>
    %cst_19 = arith.constant 1.000000e+00 : f32
    %60 = vector.broadcast %cst_19 : f32 to vector<2x1x8xf32>
    %61 = arith.subf %60, %59 : vector<2x1x8xf32>
    %cst_20 = arith.constant -1.000000e+04 : f32
    %62 = vector.broadcast %cst_20 : f32 to vector<2x1x8xf32>
    %63 = arith.mulf %61, %62 : vector<2x1x8xf32>
    %64 = vector.shape_cast %63 : vector<2x1x8xf32> to vector<2x1x8xf32>
    %65 = vector.broadcast %64 : vector<2x1x8xf32> to vector<2x8x8xf32>
    %c0_21 = arith.constant 0 : index
    %c0_22 = arith.constant 0 : index
    %c0_23 = arith.constant 0 : index
    %66 = vector.load %arg7[%c0_21, %c0_22, %c0_23] : memref<2x64x192xf32, #tpu.memory_space<vmem>>, vector<1x64x192xf32>
    %67 = vector.shape_cast %66 : vector<1x64x192xf32> to vector<64x192xf32>
    %cst_24 = arith.constant dense<0.000000e+00> : vector<16x192xf32>
    %68 = tpu.matmul %58, %67, %cst_24 {dimension_numbers = #tpu.dot_dimension_numbers<[1], [0], [0], [1], [0, 0, 1, 1], [], []>} : vector<16x64xf32>, vector<64x192xf32>, vector<16x192xf32> -> vector<16x192xf32>
    %69 = vector.extract_strided_slice %0 {offsets = [10, 0], sizes = [1, 192], strides = [1, 1]} : vector<32x512xf32> to vector<1x192xf32>
    %70 = vector.broadcast %69 : vector<1x192xf32> to vector<16x192xf32>
    %71 = arith.addf %68, %70 : vector<16x192xf32>
    %72 = vector.shape_cast %71 : vector<16x192xf32> to vector<2x8x192xf32>
    %73 = vector.extract_strided_slice %72 {offsets = [0, 0, 0], sizes = [2, 8, 16], strides = [1, 1, 1]} : vector<2x8x192xf32> to vector<2x8x16xf32>
    %74 = vector.extract_strided_slice %72 {offsets = [0, 0, 64], sizes = [2, 8, 16], strides = [1, 1, 1]} : vector<2x8x192xf32> to vector<2x8x16xf32>
    %75 = vector.extract_strided_slice %72 {offsets = [0, 0, 128], sizes = [2, 8, 16], strides = [1, 1, 1]} : vector<2x8x192xf32> to vector<2x8x16xf32>
    "tpu.trace_start"() <{level = 10 : i32, message = "bqd,bkd->bqk"}> : () -> ()
    %cst_25 = arith.constant dense<0.000000e+00> : vector<2x8x8xf32>
    %76 = tpu.matmul %73, %74, %cst_25 {dimension_numbers = #tpu.dot_dimension_numbers<[2], [2], [1], [1], [0, 0, 0, 1, 1, 1], [0], [0]>} : vector<2x8x16xf32>, vector<2x8x16xf32>, vector<2x8x8xf32> -> vector<2x8x8xf32>
    "tpu.trace_stop"() : () -> ()
    %77 = arith.addf %76, %65 : vector<2x8x8xf32>
    %cst_26 = arith.constant dense<0xFF800000> : vector<2x8xf32>
    %78 = vector.multi_reduction <maximumf>, %77, %cst_26 [2] : vector<2x8x8xf32> to vector<2x8xf32>
    %79 = vector.shape_cast %78 : vector<2x8xf32> to vector<2x8x1xf32>
    %80 = vector.broadcast %79 : vector<2x8x1xf32> to vector<2x8x8xf32>
    %81 = arith.subf %77, %80 : vector<2x8x8xf32>
    %82 = math.exp %81 : vector<2x8x8xf32>
    %cst_27 = arith.constant dense<0.000000e+00> : vector<2x8xf32>
    %83 = vector.multi_reduction <add>, %82, %cst_27 [2] : vector<2x8x8xf32> to vector<2x8xf32>
    %84 = vector.shape_cast %83 : vector<2x8xf32> to vector<2x8x1xf32>
    %85 = vector.broadcast %84 : vector<2x8x1xf32> to vector<2x8x8xf32>
    %86 = arith.divf %82, %85 : vector<2x8x8xf32>
    "tpu.trace_start"() <{level = 10 : i32, message = "bqk,bkd->bqd"}> : () -> ()
    %cst_28 = arith.constant dense<0.000000e+00> : vector<2x8x16xf32>
    %87 = tpu.matmul %86, %75, %cst_28 {dimension_numbers = #tpu.dot_dimension_numbers<[2], [1], [1], [2], [0, 0, 0, 1, 1, 2], [0], [0]>} : vector<2x8x8xf32>, vector<2x8x16xf32>, vector<2x8x16xf32> -> vector<2x8x16xf32>
    "tpu.trace_stop"() : () -> ()
    %88 = vector.extract_strided_slice %72 {offsets = [0, 0, 16], sizes = [2, 8, 16], strides = [1, 1, 1]} : vector<2x8x192xf32> to vector<2x8x16xf32>
    %89 = vector.extract_strided_slice %72 {offsets = [0, 0, 80], sizes = [2, 8, 16], strides = [1, 1, 1]} : vector<2x8x192xf32> to vector<2x8x16xf32>
    %90 = vector.extract_strided_slice %72 {offsets = [0, 0, 144], sizes = [2, 8, 16], strides = [1, 1, 1]} : vector<2x8x192xf32> to vector<2x8x16xf32>
    "tpu.trace_start"() <{level = 10 : i32, message = "bqd,bkd->bqk"}> : () -> ()
    %cst_29 = arith.constant dense<0.000000e+00> : vector<2x8x8xf32>
    %91 = tpu.matmul %88, %89, %cst_29 {dimension_numbers = #tpu.dot_dimension_numbers<[2], [2], [1], [1], [0, 0, 0, 1, 1, 1], [0], [0]>} : vector<2x8x16xf32>, vector<2x8x16xf32>, vector<2x8x8xf32> -> vector<2x8x8xf32>
    "tpu.trace_stop"() : () -> ()
    %92 = arith.addf %91, %65 : vector<2x8x8xf32>
    %cst_30 = arith.constant dense<0xFF800000> : vector<2x8xf32>
    %93 = vector.multi_reduction <maximumf>, %92, %cst_30 [2] : vector<2x8x8xf32> to vector<2x8xf32>
    %94 = vector.shape_cast %93 : vector<2x8xf32> to vector<2x8x1xf32>
    %95 = vector.broadcast %94 : vector<2x8x1xf32> to vector<2x8x8xf32>
    %96 = arith.subf %92, %95 : vector<2x8x8xf32>
    %97 = math.exp %96 : vector<2x8x8xf32>
    %cst_31 = arith.constant dense<0.000000e+00> : vector<2x8xf32>
    %98 = vector.multi_reduction <add>, %97, %cst_31 [2] : vector<2x8x8xf32> to vector<2x8xf32>
    %99 = vector.shape_cast %98 : vector<2x8xf32> to vector<2x8x1xf32>
    %100 = vector.broadcast %99 : vector<2x8x1xf32> to vector<2x8x8xf32>
    %101 = arith.divf %97, %100 : vector<2x8x8xf32>
    "tpu.trace_start"() <{level = 10 : i32, message = "bqk,bkd->bqd"}> : () -> ()
    %cst_32 = arith.constant dense<0.000000e+00> : vector<2x8x16xf32>
    %102 = tpu.matmul %101, %90, %cst_32 {dimension_numbers = #tpu.dot_dimension_numbers<[2], [1], [1], [2], [0, 0, 0, 1, 1, 2], [0], [0]>} : vector<2x8x8xf32>, vector<2x8x16xf32>, vector<2x8x16xf32> -> vector<2x8x16xf32>
    "tpu.trace_stop"() : () -> ()
    %103 = vector.extract_strided_slice %72 {offsets = [0, 0, 32], sizes = [2, 8, 16], strides = [1, 1, 1]} : vector<2x8x192xf32> to vector<2x8x16xf32>
    %104 = vector.extract_strided_slice %72 {offsets = [0, 0, 96], sizes = [2, 8, 16], strides = [1, 1, 1]} : vector<2x8x192xf32> to vector<2x8x16xf32>
    %105 = vector.extract_strided_slice %72 {offsets = [0, 0, 160], sizes = [2, 8, 16], strides = [1, 1, 1]} : vector<2x8x192xf32> to vector<2x8x16xf32>
    "tpu.trace_start"() <{level = 10 : i32, message = "bqd,bkd->bqk"}> : () -> ()
    %cst_33 = arith.constant dense<0.000000e+00> : vector<2x8x8xf32>
    %106 = tpu.matmul %103, %104, %cst_33 {dimension_numbers = #tpu.dot_dimension_numbers<[2], [2], [1], [1], [0, 0, 0, 1, 1, 1], [0], [0]>} : vector<2x8x16xf32>, vector<2x8x16xf32>, vector<2x8x8xf32> -> vector<2x8x8xf32>
    "tpu.trace_stop"() : () -> ()
    %107 = arith.addf %106, %65 : vector<2x8x8xf32>
    %cst_34 = arith.constant dense<0xFF800000> : vector<2x8xf32>
    %108 = vector.multi_reduction <maximumf>, %107, %cst_34 [2] : vector<2x8x8xf32> to vector<2x8xf32>
    %109 = vector.shape_cast %108 : vector<2x8xf32> to vector<2x8x1xf32>
    %110 = vector.broadcast %109 : vector<2x8x1xf32> to vector<2x8x8xf32>
    %111 = arith.subf %107, %110 : vector<2x8x8xf32>
    %112 = math.exp %111 : vector<2x8x8xf32>
    %cst_35 = arith.constant dense<0.000000e+00> : vector<2x8xf32>
    %113 = vector.multi_reduction <add>, %112, %cst_35 [2] : vector<2x8x8xf32> to vector<2x8xf32>
    %114 = vector.shape_cast %113 : vector<2x8xf32> to vector<2x8x1xf32>
    %115 = vector.broadcast %114 : vector<2x8x1xf32> to vector<2x8x8xf32>
    %116 = arith.divf %112, %115 : vector<2x8x8xf32>
    "tpu.trace_start"() <{level = 10 : i32, message = "bqk,bkd->bqd"}> : () -> ()
    %cst_36 = arith.constant dense<0.000000e+00> : vector<2x8x16xf32>
    %117 = tpu.matmul %116, %105, %cst_36 {dimension_numbers = #tpu.dot_dimension_numbers<[2], [1], [1], [2], [0, 0, 0, 1, 1, 2], [0], [0]>} : vector<2x8x8xf32>, vector<2x8x16xf32>, vector<2x8x16xf32> -> vector<2x8x16xf32>
    "tpu.trace_stop"() : () -> ()
    %118 = vector.extract_strided_slice %72 {offsets = [0, 0, 48], sizes = [2, 8, 16], strides = [1, 1, 1]} : vector<2x8x192xf32> to vector<2x8x16xf32>
    %119 = vector.extract_strided_slice %72 {offsets = [0, 0, 112], sizes = [2, 8, 16], strides = [1, 1, 1]} : vector<2x8x192xf32> to vector<2x8x16xf32>
    %120 = vector.extract_strided_slice %72 {offsets = [0, 0, 176], sizes = [2, 8, 16], strides = [1, 1, 1]} : vector<2x8x192xf32> to vector<2x8x16xf32>
    "tpu.trace_start"() <{level = 10 : i32, message = "bqd,bkd->bqk"}> : () -> ()
    %cst_37 = arith.constant dense<0.000000e+00> : vector<2x8x8xf32>
    %121 = tpu.matmul %118, %119, %cst_37 {dimension_numbers = #tpu.dot_dimension_numbers<[2], [2], [1], [1], [0, 0, 0, 1, 1, 1], [0], [0]>} : vector<2x8x16xf32>, vector<2x8x16xf32>, vector<2x8x8xf32> -> vector<2x8x8xf32>
    "tpu.trace_stop"() : () -> ()
    %122 = arith.addf %121, %65 : vector<2x8x8xf32>
    %cst_38 = arith.constant dense<0xFF800000> : vector<2x8xf32>
    %123 = vector.multi_reduction <maximumf>, %122, %cst_38 [2] : vector<2x8x8xf32> to vector<2x8xf32>
    %124 = vector.shape_cast %123 : vector<2x8xf32> to vector<2x8x1xf32>
    %125 = vector.broadcast %124 : vector<2x8x1xf32> to vector<2x8x8xf32>
    %126 = arith.subf %122, %125 : vector<2x8x8xf32>
    %127 = math.exp %126 : vector<2x8x8xf32>
    %cst_39 = arith.constant dense<0.000000e+00> : vector<2x8xf32>
    %128 = vector.multi_reduction <add>, %127, %cst_39 [2] : vector<2x8x8xf32> to vector<2x8xf32>
    %129 = vector.shape_cast %128 : vector<2x8xf32> to vector<2x8x1xf32>
    %130 = vector.broadcast %129 : vector<2x8x1xf32> to vector<2x8x8xf32>
    %131 = arith.divf %127, %130 : vector<2x8x8xf32>
    "tpu.trace_start"() <{level = 10 : i32, message = "bqk,bkd->bqd"}> : () -> ()
    %cst_40 = arith.constant dense<0.000000e+00> : vector<2x8x16xf32>
    %132 = tpu.matmul %131, %120, %cst_40 {dimension_numbers = #tpu.dot_dimension_numbers<[2], [1], [1], [2], [0, 0, 0, 1, 1, 2], [0], [0]>} : vector<2x8x8xf32>, vector<2x8x16xf32>, vector<2x8x16xf32> -> vector<2x8x16xf32>
    "tpu.trace_stop"() : () -> ()
    %133 = tpu.concatenate %87, %102, %117, %132 in 2 : vector<2x8x16xf32>, vector<2x8x16xf32>, vector<2x8x16xf32>, vector<2x8x16xf32> -> vector<2x8x64xf32>
    %134 = vector.shape_cast %133 : vector<2x8x64xf32> to vector<16x64xf32>
    %c0_41 = arith.constant 0 : index
    %c0_42 = arith.constant 0 : index
    %c0_43 = arith.constant 0 : index
    %135 = vector.load %arg8[%c0_41, %c0_42, %c0_43] : memref<2x64x64xf32, #tpu.memory_space<vmem>>, vector<1x64x64xf32>
    %136 = vector.shape_cast %135 : vector<1x64x64xf32> to vector<64x64xf32>
    %cst_44 = arith.constant dense<0.000000e+00> : vector<16x64xf32>
    %137 = tpu.matmul %134, %136, %cst_44 {dimension_numbers = #tpu.dot_dimension_numbers<[1], [0], [0], [1], [0, 0, 1, 1], [], []>} : vector<16x64xf32>, vector<64x64xf32>, vector<16x64xf32> -> vector<16x64xf32>
    %138 = vector.extract_strided_slice %0 {offsets = [11, 0], sizes = [1, 64], strides = [1, 1]} : vector<32x512xf32> to vector<1x64xf32>
    %139 = vector.broadcast %138 : vector<1x64xf32> to vector<16x64xf32>
    %140 = arith.addf %137, %139 : vector<16x64xf32>
    %141 = arith.addf %140, %58 : vector<16x64xf32>
    %142 = vector.extract_strided_slice %0 {offsets = [12, 0], sizes = [1, 64], strides = [1, 1]} : vector<32x512xf32> to vector<1x64xf32>
    %143 = vector.extract_strided_slice %0 {offsets = [13, 0], sizes = [1, 64], strides = [1, 1]} : vector<32x512xf32> to vector<1x64xf32>
    %cst_45 = arith.constant dense<0.000000e+00> : vector<16xf32>
    %144 = vector.multi_reduction <add>, %141, %cst_45 [1] : vector<16x64xf32> to vector<16xf32>
    %145 = vector.shape_cast %144 : vector<16xf32> to vector<16x1xf32>
    %cst_46 = arith.constant 6.400000e+01 : f32
    %146 = vector.broadcast %cst_46 : f32 to vector<16x1xf32>
    %147 = arith.divf %145, %146 : vector<16x1xf32>
    %148 = vector.broadcast %147 : vector<16x1xf32> to vector<16x64xf32>
    %149 = arith.subf %141, %148 : vector<16x64xf32>
    %150 = arith.mulf %149, %149 : vector<16x64xf32>
    %cst_47 = arith.constant dense<0.000000e+00> : vector<16xf32>
    %151 = vector.multi_reduction <add>, %150, %cst_47 [1] : vector<16x64xf32> to vector<16xf32>
    %152 = vector.shape_cast %151 : vector<16xf32> to vector<16x1xf32>
    %cst_48 = arith.constant 6.400000e+01 : f32
    %153 = vector.broadcast %cst_48 : f32 to vector<16x1xf32>
    %154 = arith.divf %152, %153 : vector<16x1xf32>
    %155 = vector.broadcast %147 : vector<16x1xf32> to vector<16x64xf32>
    %156 = arith.subf %141, %155 : vector<16x64xf32>
    %cst_49 = arith.constant 9.99999996E-13 : f32
    %157 = vector.broadcast %cst_49 : f32 to vector<16x1xf32>
    %158 = arith.addf %154, %157 : vector<16x1xf32>
    %159 = math.rsqrt %158 : vector<16x1xf32>
    %160 = vector.broadcast %159 : vector<16x1xf32> to vector<16x64xf32>
    %161 = arith.mulf %156, %160 : vector<16x64xf32>
    %162 = vector.broadcast %142 : vector<1x64xf32> to vector<16x64xf32>
    %163 = arith.mulf %161, %162 : vector<16x64xf32>
    %164 = vector.broadcast %143 : vector<1x64xf32> to vector<16x64xf32>
    %165 = arith.addf %163, %164 : vector<16x64xf32>
    %c0_50 = arith.constant 0 : index
    %c0_51 = arith.constant 0 : index
    %c0_52 = arith.constant 0 : index
    %166 = vector.load %arg9[%c0_50, %c0_51, %c0_52] : memref<2x64x128xf32, #tpu.memory_space<vmem>>, vector<1x64x128xf32>
    %167 = vector.shape_cast %166 : vector<1x64x128xf32> to vector<64x128xf32>
    %cst_53 = arith.constant dense<0.000000e+00> : vector<16x128xf32>
    %168 = tpu.matmul %165, %167, %cst_53 {dimension_numbers = #tpu.dot_dimension_numbers<[1], [0], [0], [1], [0, 0, 1, 1], [], []>} : vector<16x64xf32>, vector<64x128xf32>, vector<16x128xf32> -> vector<16x128xf32>
    %169 = vector.extract_strided_slice %0 {offsets = [14, 0], sizes = [1, 128], strides = [1, 1]} : vector<32x512xf32> to vector<1x128xf32>
    %170 = vector.broadcast %169 : vector<1x128xf32> to vector<16x128xf32>
    %171 = arith.addf %168, %170 : vector<16x128xf32>
    %172 = arith.mulf %171, %171 : vector<16x128xf32>
    %173 = arith.mulf %171, %172 : vector<16x128xf32>
    %cst_54 = arith.constant 4.471500e-02 : f32
    %174 = vector.broadcast %cst_54 : f32 to vector<16x128xf32>
    %175 = arith.mulf %174, %173 : vector<16x128xf32>
    %176 = arith.addf %171, %175 : vector<16x128xf32>
    %cst_55 = arith.constant 0.797884583 : f32
    %177 = vector.broadcast %cst_55 : f32 to vector<16x128xf32>
    %178 = arith.mulf %177, %176 : vector<16x128xf32>
    %179 = math.tanh %178 : vector<16x128xf32>
    %cst_56 = arith.constant 1.000000e+00 : f32
    %180 = vector.broadcast %cst_56 : f32 to vector<16x128xf32>
    %181 = arith.addf %180, %179 : vector<16x128xf32>
    %cst_57 = arith.constant 5.000000e-01 : f32
    %182 = vector.broadcast %cst_57 : f32 to vector<16x128xf32>
    %183 = arith.mulf %182, %181 : vector<16x128xf32>
    %184 = arith.mulf %171, %183 : vector<16x128xf32>
    %c0_58 = arith.constant 0 : index
    %c0_59 = arith.constant 0 : index
    %c0_60 = arith.constant 0 : index
    %185 = vector.load %arg10[%c0_58, %c0_59, %c0_60] : memref<2x128x64xf32, #tpu.memory_space<vmem>>, vector<1x128x64xf32>
    %186 = vector.shape_cast %185 : vector<1x128x64xf32> to vector<128x64xf32>
    %cst_61 = arith.constant dense<0.000000e+00> : vector<16x64xf32>
    %187 = tpu.matmul %184, %186, %cst_61 {dimension_numbers = #tpu.dot_dimension_numbers<[1], [0], [0], [1], [0, 0, 1, 1], [], []>} : vector<16x128xf32>, vector<128x64xf32>, vector<16x64xf32> -> vector<16x64xf32>
    %188 = vector.extract_strided_slice %0 {offsets = [15, 0], sizes = [1, 64], strides = [1, 1]} : vector<32x512xf32> to vector<1x64xf32>
    %189 = vector.broadcast %188 : vector<1x64xf32> to vector<16x64xf32>
    %190 = arith.addf %187, %189 : vector<16x64xf32>
    %191 = arith.addf %190, %165 : vector<16x64xf32>
    %192 = vector.extract_strided_slice %0 {offsets = [16, 0], sizes = [1, 64], strides = [1, 1]} : vector<32x512xf32> to vector<1x64xf32>
    %193 = vector.extract_strided_slice %0 {offsets = [17, 0], sizes = [1, 64], strides = [1, 1]} : vector<32x512xf32> to vector<1x64xf32>
    %cst_62 = arith.constant dense<0.000000e+00> : vector<16xf32>
    %194 = vector.multi_reduction <add>, %191, %cst_62 [1] : vector<16x64xf32> to vector<16xf32>
    %195 = vector.shape_cast %194 : vector<16xf32> to vector<16x1xf32>
    %cst_63 = arith.constant 6.400000e+01 : f32
    %196 = vector.broadcast %cst_63 : f32 to vector<16x1xf32>
    %197 = arith.divf %195, %196 : vector<16x1xf32>
    %198 = vector.broadcast %197 : vector<16x1xf32> to vector<16x64xf32>
    %199 = arith.subf %191, %198 : vector<16x64xf32>
    %200 = arith.mulf %199, %199 : vector<16x64xf32>
    %cst_64 = arith.constant dense<0.000000e+00> : vector<16xf32>
    %201 = vector.multi_reduction <add>, %200, %cst_64 [1] : vector<16x64xf32> to vector<16xf32>
    %202 = vector.shape_cast %201 : vector<16xf32> to vector<16x1xf32>
    %cst_65 = arith.constant 6.400000e+01 : f32
    %203 = vector.broadcast %cst_65 : f32 to vector<16x1xf32>
    %204 = arith.divf %202, %203 : vector<16x1xf32>
    %205 = vector.broadcast %197 : vector<16x1xf32> to vector<16x64xf32>
    %206 = arith.subf %191, %205 : vector<16x64xf32>
    %cst_66 = arith.constant 9.99999996E-13 : f32
    %207 = vector.broadcast %cst_66 : f32 to vector<16x1xf32>
    %208 = arith.addf %204, %207 : vector<16x1xf32>
    %209 = math.rsqrt %208 : vector<16x1xf32>
    %210 = vector.broadcast %209 : vector<16x1xf32> to vector<16x64xf32>
    %211 = arith.mulf %206, %210 : vector<16x64xf32>
    %212 = vector.broadcast %192 : vector<1x64xf32> to vector<16x64xf32>
    %213 = arith.mulf %211, %212 : vector<16x64xf32>
    %214 = vector.broadcast %193 : vector<1x64xf32> to vector<16x64xf32>
    %215 = arith.addf %213, %214 : vector<16x64xf32>
    %c1 = arith.constant 1 : index
    %c0_67 = arith.constant 0 : index
    %c0_68 = arith.constant 0 : index
    %216 = vector.load %arg7[%c1, %c0_67, %c0_68] : memref<2x64x192xf32, #tpu.memory_space<vmem>>, vector<1x64x192xf32>
    %217 = vector.shape_cast %216 : vector<1x64x192xf32> to vector<64x192xf32>
    %cst_69 = arith.constant dense<0.000000e+00> : vector<16x192xf32>
    %218 = tpu.matmul %215, %217, %cst_69 {dimension_numbers = #tpu.dot_dimension_numbers<[1], [0], [0], [1], [0, 0, 1, 1], [], []>} : vector<16x64xf32>, vector<64x192xf32>, vector<16x192xf32> -> vector<16x192xf32>
    %219 = vector.extract_strided_slice %0 {offsets = [18, 0], sizes = [1, 192], strides = [1, 1]} : vector<32x512xf32> to vector<1x192xf32>
    %220 = vector.broadcast %219 : vector<1x192xf32> to vector<16x192xf32>
    %221 = arith.addf %218, %220 : vector<16x192xf32>
    %222 = vector.shape_cast %221 : vector<16x192xf32> to vector<2x8x192xf32>
    %223 = vector.extract_strided_slice %222 {offsets = [0, 0, 0], sizes = [2, 8, 16], strides = [1, 1, 1]} : vector<2x8x192xf32> to vector<2x8x16xf32>
    %224 = vector.extract_strided_slice %222 {offsets = [0, 0, 64], sizes = [2, 8, 16], strides = [1, 1, 1]} : vector<2x8x192xf32> to vector<2x8x16xf32>
    %225 = vector.extract_strided_slice %222 {offsets = [0, 0, 128], sizes = [2, 8, 16], strides = [1, 1, 1]} : vector<2x8x192xf32> to vector<2x8x16xf32>
    "tpu.trace_start"() <{level = 10 : i32, message = "bqd,bkd->bqk"}> : () -> ()
    %cst_70 = arith.constant dense<0.000000e+00> : vector<2x8x8xf32>
    %226 = tpu.matmul %223, %224, %cst_70 {dimension_numbers = #tpu.dot_dimension_numbers<[2], [2], [1], [1], [0, 0, 0, 1, 1, 1], [0], [0]>} : vector<2x8x16xf32>, vector<2x8x16xf32>, vector<2x8x8xf32> -> vector<2x8x8xf32>
    "tpu.trace_stop"() : () -> ()
    %227 = arith.addf %226, %65 : vector<2x8x8xf32>
    %cst_71 = arith.constant dense<0xFF800000> : vector<2x8xf32>
    %228 = vector.multi_reduction <maximumf>, %227, %cst_71 [2] : vector<2x8x8xf32> to vector<2x8xf32>
    %229 = vector.shape_cast %228 : vector<2x8xf32> to vector<2x8x1xf32>
    %230 = vector.broadcast %229 : vector<2x8x1xf32> to vector<2x8x8xf32>
    %231 = arith.subf %227, %230 : vector<2x8x8xf32>
    %232 = math.exp %231 : vector<2x8x8xf32>
    %cst_72 = arith.constant dense<0.000000e+00> : vector<2x8xf32>
    %233 = vector.multi_reduction <add>, %232, %cst_72 [2] : vector<2x8x8xf32> to vector<2x8xf32>
    %234 = vector.shape_cast %233 : vector<2x8xf32> to vector<2x8x1xf32>
    %235 = vector.broadcast %234 : vector<2x8x1xf32> to vector<2x8x8xf32>
    %236 = arith.divf %232, %235 : vector<2x8x8xf32>
    "tpu.trace_start"() <{level = 10 : i32, message = "bqk,bkd->bqd"}> : () -> ()
    %cst_73 = arith.constant dense<0.000000e+00> : vector<2x8x16xf32>
    %237 = tpu.matmul %236, %225, %cst_73 {dimension_numbers = #tpu.dot_dimension_numbers<[2], [1], [1], [2], [0, 0, 0, 1, 1, 2], [0], [0]>} : vector<2x8x8xf32>, vector<2x8x16xf32>, vector<2x8x16xf32> -> vector<2x8x16xf32>
    "tpu.trace_stop"() : () -> ()
    %238 = vector.extract_strided_slice %222 {offsets = [0, 0, 16], sizes = [2, 8, 16], strides = [1, 1, 1]} : vector<2x8x192xf32> to vector<2x8x16xf32>
    %239 = vector.extract_strided_slice %222 {offsets = [0, 0, 80], sizes = [2, 8, 16], strides = [1, 1, 1]} : vector<2x8x192xf32> to vector<2x8x16xf32>
    %240 = vector.extract_strided_slice %222 {offsets = [0, 0, 144], sizes = [2, 8, 16], strides = [1, 1, 1]} : vector<2x8x192xf32> to vector<2x8x16xf32>
    "tpu.trace_start"() <{level = 10 : i32, message = "bqd,bkd->bqk"}> : () -> ()
    %cst_74 = arith.constant dense<0.000000e+00> : vector<2x8x8xf32>
    %241 = tpu.matmul %238, %239, %cst_74 {dimension_numbers = #tpu.dot_dimension_numbers<[2], [2], [1], [1], [0, 0, 0, 1, 1, 1], [0], [0]>} : vector<2x8x16xf32>, vector<2x8x16xf32>, vector<2x8x8xf32> -> vector<2x8x8xf32>
    "tpu.trace_stop"() : () -> ()
    %242 = arith.addf %241, %65 : vector<2x8x8xf32>
    %cst_75 = arith.constant dense<0xFF800000> : vector<2x8xf32>
    %243 = vector.multi_reduction <maximumf>, %242, %cst_75 [2] : vector<2x8x8xf32> to vector<2x8xf32>
    %244 = vector.shape_cast %243 : vector<2x8xf32> to vector<2x8x1xf32>
    %245 = vector.broadcast %244 : vector<2x8x1xf32> to vector<2x8x8xf32>
    %246 = arith.subf %242, %245 : vector<2x8x8xf32>
    %247 = math.exp %246 : vector<2x8x8xf32>
    %cst_76 = arith.constant dense<0.000000e+00> : vector<2x8xf32>
    %248 = vector.multi_reduction <add>, %247, %cst_76 [2] : vector<2x8x8xf32> to vector<2x8xf32>
    %249 = vector.shape_cast %248 : vector<2x8xf32> to vector<2x8x1xf32>
    %250 = vector.broadcast %249 : vector<2x8x1xf32> to vector<2x8x8xf32>
    %251 = arith.divf %247, %250 : vector<2x8x8xf32>
    "tpu.trace_start"() <{level = 10 : i32, message = "bqk,bkd->bqd"}> : () -> ()
    %cst_77 = arith.constant dense<0.000000e+00> : vector<2x8x16xf32>
    %252 = tpu.matmul %251, %240, %cst_77 {dimension_numbers = #tpu.dot_dimension_numbers<[2], [1], [1], [2], [0, 0, 0, 1, 1, 2], [0], [0]>} : vector<2x8x8xf32>, vector<2x8x16xf32>, vector<2x8x16xf32> -> vector<2x8x16xf32>
    "tpu.trace_stop"() : () -> ()
    %253 = vector.extract_strided_slice %222 {offsets = [0, 0, 32], sizes = [2, 8, 16], strides = [1, 1, 1]} : vector<2x8x192xf32> to vector<2x8x16xf32>
    %254 = vector.extract_strided_slice %222 {offsets = [0, 0, 96], sizes = [2, 8, 16], strides = [1, 1, 1]} : vector<2x8x192xf32> to vector<2x8x16xf32>
    %255 = vector.extract_strided_slice %222 {offsets = [0, 0, 160], sizes = [2, 8, 16], strides = [1, 1, 1]} : vector<2x8x192xf32> to vector<2x8x16xf32>
    "tpu.trace_start"() <{level = 10 : i32, message = "bqd,bkd->bqk"}> : () -> ()
    %cst_78 = arith.constant dense<0.000000e+00> : vector<2x8x8xf32>
    %256 = tpu.matmul %253, %254, %cst_78 {dimension_numbers = #tpu.dot_dimension_numbers<[2], [2], [1], [1], [0, 0, 0, 1, 1, 1], [0], [0]>} : vector<2x8x16xf32>, vector<2x8x16xf32>, vector<2x8x8xf32> -> vector<2x8x8xf32>
    "tpu.trace_stop"() : () -> ()
    %257 = arith.addf %256, %65 : vector<2x8x8xf32>
    %cst_79 = arith.constant dense<0xFF800000> : vector<2x8xf32>
    %258 = vector.multi_reduction <maximumf>, %257, %cst_79 [2] : vector<2x8x8xf32> to vector<2x8xf32>
    %259 = vector.shape_cast %258 : vector<2x8xf32> to vector<2x8x1xf32>
    %260 = vector.broadcast %259 : vector<2x8x1xf32> to vector<2x8x8xf32>
    %261 = arith.subf %257, %260 : vector<2x8x8xf32>
    %262 = math.exp %261 : vector<2x8x8xf32>
    %cst_80 = arith.constant dense<0.000000e+00> : vector<2x8xf32>
    %263 = vector.multi_reduction <add>, %262, %cst_80 [2] : vector<2x8x8xf32> to vector<2x8xf32>
    %264 = vector.shape_cast %263 : vector<2x8xf32> to vector<2x8x1xf32>
    %265 = vector.broadcast %264 : vector<2x8x1xf32> to vector<2x8x8xf32>
    %266 = arith.divf %262, %265 : vector<2x8x8xf32>
    "tpu.trace_start"() <{level = 10 : i32, message = "bqk,bkd->bqd"}> : () -> ()
    %cst_81 = arith.constant dense<0.000000e+00> : vector<2x8x16xf32>
    %267 = tpu.matmul %266, %255, %cst_81 {dimension_numbers = #tpu.dot_dimension_numbers<[2], [1], [1], [2], [0, 0, 0, 1, 1, 2], [0], [0]>} : vector<2x8x8xf32>, vector<2x8x16xf32>, vector<2x8x16xf32> -> vector<2x8x16xf32>
    "tpu.trace_stop"() : () -> ()
    %268 = vector.extract_strided_slice %222 {offsets = [0, 0, 48], sizes = [2, 8, 16], strides = [1, 1, 1]} : vector<2x8x192xf32> to vector<2x8x16xf32>
    %269 = vector.extract_strided_slice %222 {offsets = [0, 0, 112], sizes = [2, 8, 16], strides = [1, 1, 1]} : vector<2x8x192xf32> to vector<2x8x16xf32>
    %270 = vector.extract_strided_slice %222 {offsets = [0, 0, 176], sizes = [2, 8, 16], strides = [1, 1, 1]} : vector<2x8x192xf32> to vector<2x8x16xf32>
    "tpu.trace_start"() <{level = 10 : i32, message = "bqd,bkd->bqk"}> : () -> ()
    %cst_82 = arith.constant dense<0.000000e+00> : vector<2x8x8xf32>
    %271 = tpu.matmul %268, %269, %cst_82 {dimension_numbers = #tpu.dot_dimension_numbers<[2], [2], [1], [1], [0, 0, 0, 1, 1, 1], [0], [0]>} : vector<2x8x16xf32>, vector<2x8x16xf32>, vector<2x8x8xf32> -> vector<2x8x8xf32>
    "tpu.trace_stop"() : () -> ()
    %272 = arith.addf %271, %65 : vector<2x8x8xf32>
    %cst_83 = arith.constant dense<0xFF800000> : vector<2x8xf32>
    %273 = vector.multi_reduction <maximumf>, %272, %cst_83 [2] : vector<2x8x8xf32> to vector<2x8xf32>
    %274 = vector.shape_cast %273 : vector<2x8xf32> to vector<2x8x1xf32>
    %275 = vector.broadcast %274 : vector<2x8x1xf32> to vector<2x8x8xf32>
    %276 = arith.subf %272, %275 : vector<2x8x8xf32>
    %277 = math.exp %276 : vector<2x8x8xf32>
    %cst_84 = arith.constant dense<0.000000e+00> : vector<2x8xf32>
    %278 = vector.multi_reduction <add>, %277, %cst_84 [2] : vector<2x8x8xf32> to vector<2x8xf32>
    %279 = vector.shape_cast %278 : vector<2x8xf32> to vector<2x8x1xf32>
    %280 = vector.broadcast %279 : vector<2x8x1xf32> to vector<2x8x8xf32>
    %281 = arith.divf %277, %280 : vector<2x8x8xf32>
    "tpu.trace_start"() <{level = 10 : i32, message = "bqk,bkd->bqd"}> : () -> ()
    %cst_85 = arith.constant dense<0.000000e+00> : vector<2x8x16xf32>
    %282 = tpu.matmul %281, %270, %cst_85 {dimension_numbers = #tpu.dot_dimension_numbers<[2], [1], [1], [2], [0, 0, 0, 1, 1, 2], [0], [0]>} : vector<2x8x8xf32>, vector<2x8x16xf32>, vector<2x8x16xf32> -> vector<2x8x16xf32>
    "tpu.trace_stop"() : () -> ()
    %283 = tpu.concatenate %237, %252, %267, %282 in 2 : vector<2x8x16xf32>, vector<2x8x16xf32>, vector<2x8x16xf32>, vector<2x8x16xf32> -> vector<2x8x64xf32>
    %284 = vector.shape_cast %283 : vector<2x8x64xf32> to vector<16x64xf32>
    %c1_86 = arith.constant 1 : index
    %c0_87 = arith.constant 0 : index
    %c0_88 = arith.constant 0 : index
    %285 = vector.load %arg8[%c1_86, %c0_87, %c0_88] : memref<2x64x64xf32, #tpu.memory_space<vmem>>, vector<1x64x64xf32>
    %286 = vector.shape_cast %285 : vector<1x64x64xf32> to vector<64x64xf32>
    %cst_89 = arith.constant dense<0.000000e+00> : vector<16x64xf32>
    %287 = tpu.matmul %284, %286, %cst_89 {dimension_numbers = #tpu.dot_dimension_numbers<[1], [0], [0], [1], [0, 0, 1, 1], [], []>} : vector<16x64xf32>, vector<64x64xf32>, vector<16x64xf32> -> vector<16x64xf32>
    %288 = vector.extract_strided_slice %0 {offsets = [19, 0], sizes = [1, 64], strides = [1, 1]} : vector<32x512xf32> to vector<1x64xf32>
    %289 = vector.broadcast %288 : vector<1x64xf32> to vector<16x64xf32>
    %290 = arith.addf %287, %289 : vector<16x64xf32>
    %291 = arith.addf %290, %215 : vector<16x64xf32>
    %292 = vector.extract_strided_slice %0 {offsets = [20, 0], sizes = [1, 64], strides = [1, 1]} : vector<32x512xf32> to vector<1x64xf32>
    %293 = vector.extract_strided_slice %0 {offsets = [21, 0], sizes = [1, 64], strides = [1, 1]} : vector<32x512xf32> to vector<1x64xf32>
    %cst_90 = arith.constant dense<0.000000e+00> : vector<16xf32>
    %294 = vector.multi_reduction <add>, %291, %cst_90 [1] : vector<16x64xf32> to vector<16xf32>
    %295 = vector.shape_cast %294 : vector<16xf32> to vector<16x1xf32>
    %cst_91 = arith.constant 6.400000e+01 : f32
    %296 = vector.broadcast %cst_91 : f32 to vector<16x1xf32>
    %297 = arith.divf %295, %296 : vector<16x1xf32>
    %298 = vector.broadcast %297 : vector<16x1xf32> to vector<16x64xf32>
    %299 = arith.subf %291, %298 : vector<16x64xf32>
    %300 = arith.mulf %299, %299 : vector<16x64xf32>
    %cst_92 = arith.constant dense<0.000000e+00> : vector<16xf32>
    %301 = vector.multi_reduction <add>, %300, %cst_92 [1] : vector<16x64xf32> to vector<16xf32>
    %302 = vector.shape_cast %301 : vector<16xf32> to vector<16x1xf32>
    %cst_93 = arith.constant 6.400000e+01 : f32
    %303 = vector.broadcast %cst_93 : f32 to vector<16x1xf32>
    %304 = arith.divf %302, %303 : vector<16x1xf32>
    %305 = vector.broadcast %297 : vector<16x1xf32> to vector<16x64xf32>
    %306 = arith.subf %291, %305 : vector<16x64xf32>
    %cst_94 = arith.constant 9.99999996E-13 : f32
    %307 = vector.broadcast %cst_94 : f32 to vector<16x1xf32>
    %308 = arith.addf %304, %307 : vector<16x1xf32>
    %309 = math.rsqrt %308 : vector<16x1xf32>
    %310 = vector.broadcast %309 : vector<16x1xf32> to vector<16x64xf32>
    %311 = arith.mulf %306, %310 : vector<16x64xf32>
    %312 = vector.broadcast %292 : vector<1x64xf32> to vector<16x64xf32>
    %313 = arith.mulf %311, %312 : vector<16x64xf32>
    %314 = vector.broadcast %293 : vector<1x64xf32> to vector<16x64xf32>
    %315 = arith.addf %313, %314 : vector<16x64xf32>
    %c1_95 = arith.constant 1 : index
    %c0_96 = arith.constant 0 : index
    %c0_97 = arith.constant 0 : index
    %316 = vector.load %arg9[%c1_95, %c0_96, %c0_97] : memref<2x64x128xf32, #tpu.memory_space<vmem>>, vector<1x64x128xf32>
    %317 = vector.shape_cast %316 : vector<1x64x128xf32> to vector<64x128xf32>
    %cst_98 = arith.constant dense<0.000000e+00> : vector<16x128xf32>
    %318 = tpu.matmul %315, %317, %cst_98 {dimension_numbers = #tpu.dot_dimension_numbers<[1], [0], [0], [1], [0, 0, 1, 1], [], []>} : vector<16x64xf32>, vector<64x128xf32>, vector<16x128xf32> -> vector<16x128xf32>
    %319 = vector.extract_strided_slice %0 {offsets = [22, 0], sizes = [1, 128], strides = [1, 1]} : vector<32x512xf32> to vector<1x128xf32>
    %320 = vector.broadcast %319 : vector<1x128xf32> to vector<16x128xf32>
    %321 = arith.addf %318, %320 : vector<16x128xf32>
    %322 = arith.mulf %321, %321 : vector<16x128xf32>
    %323 = arith.mulf %321, %322 : vector<16x128xf32>
    %cst_99 = arith.constant 4.471500e-02 : f32
    %324 = vector.broadcast %cst_99 : f32 to vector<16x128xf32>
    %325 = arith.mulf %324, %323 : vector<16x128xf32>
    %326 = arith.addf %321, %325 : vector<16x128xf32>
    %cst_100 = arith.constant 0.797884583 : f32
    %327 = vector.broadcast %cst_100 : f32 to vector<16x128xf32>
    %328 = arith.mulf %327, %326 : vector<16x128xf32>
    %329 = math.tanh %328 : vector<16x128xf32>
    %cst_101 = arith.constant 1.000000e+00 : f32
    %330 = vector.broadcast %cst_101 : f32 to vector<16x128xf32>
    %331 = arith.addf %330, %329 : vector<16x128xf32>
    %cst_102 = arith.constant 5.000000e-01 : f32
    %332 = vector.broadcast %cst_102 : f32 to vector<16x128xf32>
    %333 = arith.mulf %332, %331 : vector<16x128xf32>
    %334 = arith.mulf %321, %333 : vector<16x128xf32>
    %c1_103 = arith.constant 1 : index
    %c0_104 = arith.constant 0 : index
    %c0_105 = arith.constant 0 : index
    %335 = vector.load %arg10[%c1_103, %c0_104, %c0_105] : memref<2x128x64xf32, #tpu.memory_space<vmem>>, vector<1x128x64xf32>
    %336 = vector.shape_cast %335 : vector<1x128x64xf32> to vector<128x64xf32>
    %cst_106 = arith.constant dense<0.000000e+00> : vector<16x64xf32>
    %337 = tpu.matmul %334, %336, %cst_106 {dimension_numbers = #tpu.dot_dimension_numbers<[1], [0], [0], [1], [0, 0, 1, 1], [], []>} : vector<16x128xf32>, vector<128x64xf32>, vector<16x64xf32> -> vector<16x64xf32>
    %338 = vector.extract_strided_slice %0 {offsets = [23, 0], sizes = [1, 64], strides = [1, 1]} : vector<32x512xf32> to vector<1x64xf32>
    %339 = vector.broadcast %338 : vector<1x64xf32> to vector<16x64xf32>
    %340 = arith.addf %337, %339 : vector<16x64xf32>
    %341 = arith.addf %340, %315 : vector<16x64xf32>
    %342 = vector.extract_strided_slice %0 {offsets = [24, 0], sizes = [1, 64], strides = [1, 1]} : vector<32x512xf32> to vector<1x64xf32>
    %343 = vector.extract_strided_slice %0 {offsets = [25, 0], sizes = [1, 64], strides = [1, 1]} : vector<32x512xf32> to vector<1x64xf32>
    %cst_107 = arith.constant dense<0.000000e+00> : vector<16xf32>
    %344 = vector.multi_reduction <add>, %341, %cst_107 [1] : vector<16x64xf32> to vector<16xf32>
    %345 = vector.shape_cast %344 : vector<16xf32> to vector<16x1xf32>
    %cst_108 = arith.constant 6.400000e+01 : f32
    %346 = vector.broadcast %cst_108 : f32 to vector<16x1xf32>
    %347 = arith.divf %345, %346 : vector<16x1xf32>
    %348 = vector.broadcast %347 : vector<16x1xf32> to vector<16x64xf32>
    %349 = arith.subf %341, %348 : vector<16x64xf32>
    %350 = arith.mulf %349, %349 : vector<16x64xf32>
    %cst_109 = arith.constant dense<0.000000e+00> : vector<16xf32>
    %351 = vector.multi_reduction <add>, %350, %cst_109 [1] : vector<16x64xf32> to vector<16xf32>
    %352 = vector.shape_cast %351 : vector<16xf32> to vector<16x1xf32>
    %cst_110 = arith.constant 6.400000e+01 : f32
    %353 = vector.broadcast %cst_110 : f32 to vector<16x1xf32>
    %354 = arith.divf %352, %353 : vector<16x1xf32>
    %355 = vector.broadcast %347 : vector<16x1xf32> to vector<16x64xf32>
    %356 = arith.subf %341, %355 : vector<16x64xf32>
    %cst_111 = arith.constant 9.99999996E-13 : f32
    %357 = vector.broadcast %cst_111 : f32 to vector<16x1xf32>
    %358 = arith.addf %354, %357 : vector<16x1xf32>
    %359 = math.rsqrt %358 : vector<16x1xf32>
    %360 = vector.broadcast %359 : vector<16x1xf32> to vector<16x64xf32>
    %361 = arith.mulf %356, %360 : vector<16x64xf32>
    %362 = vector.broadcast %342 : vector<1x64xf32> to vector<16x64xf32>
    %363 = arith.mulf %361, %362 : vector<16x64xf32>
    %364 = vector.broadcast %343 : vector<1x64xf32> to vector<16x64xf32>
    %365 = arith.addf %363, %364 : vector<16x64xf32>
    %c0_112 = arith.constant 0 : index
    %c0_113 = arith.constant 0 : index
    %366 = vector.load %arg5[%c0_112, %c0_113] : memref<64x64xf32, #tpu.memory_space<vmem>>, vector<64x64xf32>
    %cst_114 = arith.constant dense<0.000000e+00> : vector<16x64xf32>
    %367 = tpu.matmul %365, %366, %cst_114 {dimension_numbers = #tpu.dot_dimension_numbers<[1], [0], [0], [1], [0, 0, 1, 1], [], []>} : vector<16x64xf32>, vector<64x64xf32>, vector<16x64xf32> -> vector<16x64xf32>
    %368 = vector.extract_strided_slice %0 {offsets = [6, 0], sizes = [1, 64], strides = [1, 1]} : vector<32x512xf32> to vector<1x64xf32>
    %369 = vector.broadcast %368 : vector<1x64xf32> to vector<16x64xf32>
    %370 = arith.addf %367, %369 : vector<16x64xf32>
    %371 = vector.extract_strided_slice %0 {offsets = [7, 0], sizes = [1, 64], strides = [1, 1]} : vector<32x512xf32> to vector<1x64xf32>
    %372 = vector.extract_strided_slice %0 {offsets = [8, 0], sizes = [1, 64], strides = [1, 1]} : vector<32x512xf32> to vector<1x64xf32>
    %cst_115 = arith.constant dense<0.000000e+00> : vector<16xf32>
    %373 = vector.multi_reduction <add>, %370, %cst_115 [1] : vector<16x64xf32> to vector<16xf32>
    %374 = vector.shape_cast %373 : vector<16xf32> to vector<16x1xf32>
    %cst_116 = arith.constant 6.400000e+01 : f32
    %375 = vector.broadcast %cst_116 : f32 to vector<16x1xf32>
    %376 = arith.divf %374, %375 : vector<16x1xf32>
    %377 = vector.broadcast %376 : vector<16x1xf32> to vector<16x64xf32>
    %378 = arith.subf %370, %377 : vector<16x64xf32>
    %379 = arith.mulf %378, %378 : vector<16x64xf32>
    %cst_117 = arith.constant dense<0.000000e+00> : vector<16xf32>
    %380 = vector.multi_reduction <add>, %379, %cst_117 [1] : vector<16x64xf32> to vector<16xf32>
    %381 = vector.shape_cast %380 : vector<16xf32> to vector<16x1xf32>
    %cst_118 = arith.constant 6.400000e+01 : f32
    %382 = vector.broadcast %cst_118 : f32 to vector<16x1xf32>
    %383 = arith.divf %381, %382 : vector<16x1xf32>
    %384 = vector.broadcast %376 : vector<16x1xf32> to vector<16x64xf32>
    %385 = arith.subf %370, %384 : vector<16x64xf32>
    %cst_119 = arith.constant 9.99999974E-6 : f32
    %386 = vector.broadcast %cst_119 : f32 to vector<16x1xf32>
    %387 = arith.addf %383, %386 : vector<16x1xf32>
    %388 = math.rsqrt %387 : vector<16x1xf32>
    %389 = vector.broadcast %388 : vector<16x1xf32> to vector<16x64xf32>
    %390 = arith.mulf %385, %389 : vector<16x64xf32>
    %391 = vector.broadcast %371 : vector<1x64xf32> to vector<16x64xf32>
    %392 = arith.mulf %390, %391 : vector<16x64xf32>
    %393 = vector.broadcast %372 : vector<1x64xf32> to vector<16x64xf32>
    %394 = arith.addf %392, %393 : vector<16x64xf32>
    %c0_120 = arith.constant 0 : index
    %c0_121 = arith.constant 0 : index
    %395 = vector.load %arg6[%c0_120, %c0_121] : memref<64x512xf32, #tpu.memory_space<vmem>>, vector<64x512xf32>
    %cst_122 = arith.constant dense<0.000000e+00> : vector<16x512xf32>
    %396 = tpu.matmul %394, %395, %cst_122 {dimension_numbers = #tpu.dot_dimension_numbers<[1], [0], [0], [1], [0, 0, 1, 1], [], []>} : vector<16x64xf32>, vector<64x512xf32>, vector<16x512xf32> -> vector<16x512xf32>
    %397 = vector.extract_strided_slice %0 {offsets = [9, 0], sizes = [1, 512], strides = [1, 1]} : vector<32x512xf32> to vector<1x512xf32>
    %398 = vector.broadcast %397 : vector<1x512xf32> to vector<16x512xf32>
    %399 = arith.addf %396, %398 : vector<16x512xf32>
    %400 = vector.shape_cast %399 : vector<16x512xf32> to vector<2x8x512xf32>
    %401 = vector.extract_strided_slice %400 {offsets = [0, 0, 0], sizes = [2, 8, 32], strides = [1, 1, 1]} : vector<2x8x512xf32> to vector<2x8x32xf32>
    %402 = vector.extract_strided_slice %400 {offsets = [0, 0, 256], sizes = [2, 8, 32], strides = [1, 1, 1]} : vector<2x8x512xf32> to vector<2x8x32xf32>
    "tpu.trace_start"() <{level = 10 : i32, message = "bsc,boc->bso"}> : () -> ()
    %cst_123 = arith.constant dense<0.000000e+00> : vector<2x8x8xf32>
    %403 = tpu.matmul %401, %402, %cst_123 {dimension_numbers = #tpu.dot_dimension_numbers<[2], [2], [1], [1], [0, 0, 0, 1, 1, 1], [0], [0]>} : vector<2x8x32xf32>, vector<2x8x32xf32>, vector<2x8x8xf32> -> vector<2x8x8xf32>
    "tpu.trace_stop"() : () -> ()
    %404 = vector.extract_strided_slice %400 {offsets = [0, 0, 32], sizes = [2, 8, 32], strides = [1, 1, 1]} : vector<2x8x512xf32> to vector<2x8x32xf32>
    %405 = vector.extract_strided_slice %400 {offsets = [0, 0, 288], sizes = [2, 8, 32], strides = [1, 1, 1]} : vector<2x8x512xf32> to vector<2x8x32xf32>
    "tpu.trace_start"() <{level = 10 : i32, message = "bsc,boc->bso"}> : () -> ()
    %cst_124 = arith.constant dense<0.000000e+00> : vector<2x8x8xf32>
    %406 = tpu.matmul %404, %405, %cst_124 {dimension_numbers = #tpu.dot_dimension_numbers<[2], [2], [1], [1], [0, 0, 0, 1, 1, 1], [0], [0]>} : vector<2x8x32xf32>, vector<2x8x32xf32>, vector<2x8x8xf32> -> vector<2x8x8xf32>
    "tpu.trace_stop"() : () -> ()
    %407 = vector.extract_strided_slice %400 {offsets = [0, 0, 64], sizes = [2, 8, 32], strides = [1, 1, 1]} : vector<2x8x512xf32> to vector<2x8x32xf32>
    %408 = vector.extract_strided_slice %400 {offsets = [0, 0, 320], sizes = [2, 8, 32], strides = [1, 1, 1]} : vector<2x8x512xf32> to vector<2x8x32xf32>
    "tpu.trace_start"() <{level = 10 : i32, message = "bsc,boc->bso"}> : () -> ()
    %cst_125 = arith.constant dense<0.000000e+00> : vector<2x8x8xf32>
    %409 = tpu.matmul %407, %408, %cst_125 {dimension_numbers = #tpu.dot_dimension_numbers<[2], [2], [1], [1], [0, 0, 0, 1, 1, 1], [0], [0]>} : vector<2x8x32xf32>, vector<2x8x32xf32>, vector<2x8x8xf32> -> vector<2x8x8xf32>
    "tpu.trace_stop"() : () -> ()
    %410 = vector.extract_strided_slice %400 {offsets = [0, 0, 96], sizes = [2, 8, 32], strides = [1, 1, 1]} : vector<2x8x512xf32> to vector<2x8x32xf32>
    %411 = vector.extract_strided_slice %400 {offsets = [0, 0, 352], sizes = [2, 8, 32], strides = [1, 1, 1]} : vector<2x8x512xf32> to vector<2x8x32xf32>
    "tpu.trace_start"() <{level = 10 : i32, message = "bsc,boc->bso"}> : () -> ()
    %cst_126 = arith.constant dense<0.000000e+00> : vector<2x8x8xf32>
    %412 = tpu.matmul %410, %411, %cst_126 {dimension_numbers = #tpu.dot_dimension_numbers<[2], [2], [1], [1], [0, 0, 0, 1, 1, 1], [0], [0]>} : vector<2x8x32xf32>, vector<2x8x32xf32>, vector<2x8x8xf32> -> vector<2x8x8xf32>
    "tpu.trace_stop"() : () -> ()
    %413 = vector.extract_strided_slice %400 {offsets = [0, 0, 128], sizes = [2, 8, 32], strides = [1, 1, 1]} : vector<2x8x512xf32> to vector<2x8x32xf32>
    %414 = vector.extract_strided_slice %400 {offsets = [0, 0, 384], sizes = [2, 8, 32], strides = [1, 1, 1]} : vector<2x8x512xf32> to vector<2x8x32xf32>
    "tpu.trace_start"() <{level = 10 : i32, message = "bsc,boc->bso"}> : () -> ()
    %cst_127 = arith.constant dense<0.000000e+00> : vector<2x8x8xf32>
    %415 = tpu.matmul %413, %414, %cst_127 {dimension_numbers = #tpu.dot_dimension_numbers<[2], [2], [1], [1], [0, 0, 0, 1, 1, 1], [0], [0]>} : vector<2x8x32xf32>, vector<2x8x32xf32>, vector<2x8x8xf32> -> vector<2x8x8xf32>
    "tpu.trace_stop"() : () -> ()
    %416 = vector.extract_strided_slice %400 {offsets = [0, 0, 160], sizes = [2, 8, 32], strides = [1, 1, 1]} : vector<2x8x512xf32> to vector<2x8x32xf32>
    %417 = vector.extract_strided_slice %400 {offsets = [0, 0, 416], sizes = [2, 8, 32], strides = [1, 1, 1]} : vector<2x8x512xf32> to vector<2x8x32xf32>
    "tpu.trace_start"() <{level = 10 : i32, message = "bsc,boc->bso"}> : () -> ()
    %cst_128 = arith.constant dense<0.000000e+00> : vector<2x8x8xf32>
    %418 = tpu.matmul %416, %417, %cst_128 {dimension_numbers = #tpu.dot_dimension_numbers<[2], [2], [1], [1], [0, 0, 0, 1, 1, 1], [0], [0]>} : vector<2x8x32xf32>, vector<2x8x32xf32>, vector<2x8x8xf32> -> vector<2x8x8xf32>
    "tpu.trace_stop"() : () -> ()
    %419 = vector.extract_strided_slice %400 {offsets = [0, 0, 192], sizes = [2, 8, 32], strides = [1, 1, 1]} : vector<2x8x512xf32> to vector<2x8x32xf32>
    %420 = vector.extract_strided_slice %400 {offsets = [0, 0, 448], sizes = [2, 8, 32], strides = [1, 1, 1]} : vector<2x8x512xf32> to vector<2x8x32xf32>
    "tpu.trace_start"() <{level = 10 : i32, message = "bsc,boc->bso"}> : () -> ()
    %cst_129 = arith.constant dense<0.000000e+00> : vector<2x8x8xf32>
    %421 = tpu.matmul %419, %420, %cst_129 {dimension_numbers = #tpu.dot_dimension_numbers<[2], [2], [1], [1], [0, 0, 0, 1, 1, 1], [0], [0]>} : vector<2x8x32xf32>, vector<2x8x32xf32>, vector<2x8x8xf32> -> vector<2x8x8xf32>
    "tpu.trace_stop"() : () -> ()
    %422 = vector.extract_strided_slice %400 {offsets = [0, 0, 224], sizes = [2, 8, 32], strides = [1, 1, 1]} : vector<2x8x512xf32> to vector<2x8x32xf32>
    %423 = vector.extract_strided_slice %400 {offsets = [0, 0, 480], sizes = [2, 8, 32], strides = [1, 1, 1]} : vector<2x8x512xf32> to vector<2x8x32xf32>
    "tpu.trace_start"() <{level = 10 : i32, message = "bsc,boc->bso"}> : () -> ()
    %cst_130 = arith.constant dense<0.000000e+00> : vector<2x8x8xf32>
    %424 = tpu.matmul %422, %423, %cst_130 {dimension_numbers = #tpu.dot_dimension_numbers<[2], [2], [1], [1], [0, 0, 0, 1, 1, 1], [0], [0]>} : vector<2x8x32xf32>, vector<2x8x32xf32>, vector<2x8x8xf32> -> vector<2x8x8xf32>
    "tpu.trace_stop"() : () -> ()
    %425 = tpu.concatenate %403, %406, %409, %412, %415, %418, %421, %424 in 2 : vector<2x8x8xf32>, vector<2x8x8xf32>, vector<2x8x8xf32>, vector<2x8x8xf32>, vector<2x8x8xf32>, vector<2x8x8xf32>, vector<2x8x8xf32>, vector<2x8x8xf32> -> vector<2x8x64xf32>
    %c0_131 = arith.constant 0 : index
    %c0_132 = arith.constant 0 : index
    %c0_133 = arith.constant 0 : index
    %426 = vector.load %arg11[%c0_131, %c0_132, %c0_133] : memref<2x8x64xf32, #tpu.memory_space<vmem>>, vector<2x8x64xf32>
    tpu.vector_store %arg11[%c0_131, %c0_132, %c0_133], %425 {strides = array<i32>} : memref<2x8x64xf32, #tpu.memory_space<vmem>>, vector<2x8x64xf32>,
    return
  }
  func.func @transform_0(%arg0: i32) -> (i32, i32, i32) {
    %c0_i32 = arith.constant 0 : i32
    %c0_i32_0 = arith.constant 0 : i32
    %c0_i32_1 = arith.constant 0 : i32
    return %arg0, %c0_i32, %c0_i32_0 : i32, i32, i32
  }
  func.func @transform_1(%arg0: i32) -> (i32, i32, i32) {
    %c0_i32 = arith.constant 0 : i32
    %c0_i32_0 = arith.constant 0 : i32
    %c0_i32_1 = arith.constant 0 : i32
    return %arg0, %c0_i32, %c0_i32_0 : i32, i32, i32
  }
  func.func @transform_2(%arg0: i32) -> (i32, i32) {
    %c0_i32 = arith.constant 0 : i32
    %c0_i32_0 = arith.constant 0 : i32
    %c0_i32_1 = arith.constant 0 : i32
    return %c0_i32, %c0_i32_0 : i32, i32
  }
  func.func @transform_3(%arg0: i32) -> (i32, i32) {
    %c0_i32 = arith.constant 0 : i32
    %c0_i32_0 = arith.constant 0 : i32
    %c0_i32_1 = arith.constant 0 : i32
    return %c0_i32, %c0_i32_0 : i32, i32
  }
  func.func @transform_4(%arg0: i32) -> (i32, i32) {
    %c0_i32 = arith.constant 0 : i32
    %c0_i32_0 = arith.constant 0 : i32
    %c0_i32_1 = arith.constant 0 : i32
    return %c0_i32, %c0_i32_0 : i32, i32
  }
  func.func @transform_5(%arg0: i32) -> (i32, i32) {
    %c0_i32 = arith.constant 0 : i32
    %c0_i32_0 = arith.constant 0 : i32
    %c0_i32_1 = arith.constant 0 : i32
    return %c0_i32, %c0_i32_0 : i32, i32
  }
  func.func @transform_6(%arg0: i32) -> (i32, i32, i32) {
    %c0_i32 = arith.constant 0 : i32
    %c0_i32_0 = arith.constant 0 : i32
    %c0_i32_1 = arith.constant 0 : i32
    %c0_i32_2 = arith.constant 0 : i32
    return %c0_i32, %c0_i32_0, %c0_i32_1 : i32, i32, i32
  }
  func.func @transform_7(%arg0: i32) -> (i32, i32, i32) {
    %c0_i32 = arith.constant 0 : i32
    %c0_i32_0 = arith.constant 0 : i32
    %c0_i32_1 = arith.constant 0 : i32
    %c0_i32_2 = arith.constant 0 : i32
    return %c0_i32, %c0_i32_0, %c0_i32_1 : i32, i32, i32
  }
  func.func @transform_8(%arg0: i32) -> (i32, i32, i32) {
    %c0_i32 = arith.constant 0 : i32
    %c0_i32_0 = arith.constant 0 : i32
    %c0_i32_1 = arith.constant 0 : i32
    %c0_i32_2 = arith.constant 0 : i32
    return %c0_i32, %c0_i32_0, %c0_i32_1 : i32, i32, i32
  }
  func.func @transform_9(%arg0: i32) -> (i32, i32, i32) {
    %c0_i32 = arith.constant 0 : i32
    %c0_i32_0 = arith.constant 0 : i32
    %c0_i32_1 = arith.constant 0 : i32
    %c0_i32_2 = arith.constant 0 : i32
    return %c0_i32, %c0_i32_0, %c0_i32_1 : i32, i32, i32
  }
  func.func @transform_10(%arg0: i32) -> (i32, i32, i32) {
    %c0_i32 = arith.constant 0 : i32
    %c0_i32_0 = arith.constant 0 : i32
    %c0_i32_1 = arith.constant 0 : i32
    return %arg0, %c0_i32, %c0_i32_0 : i32, i32, i32
  }
}

</mosaic_0001>

<bundles_post_ra>
// kernel: ram_forward.1
= control target key start
LH: loop header
LB: loop body
LE: loop exit
PB: predicated region body
PF: predicated region fallthrough
CT: control target
= control target key end

     0   :  { %15 = vsyncpa [#allocation3], 0  ;;  %s4328_s0 = inlined_call_operand.hbm [shape: f32[2,8,32], index: 0, kind: input, shape index: {}]   ;;  %s4329_s1 = inlined_call_operand.vmem [shape: f32[2,1,8], index: 1, kind: input, shape index: {}]   ;;  %s4330_s2 = inlined_call_operand.vmem [shape: f32[32,512], index: 2, kind: input, shape index: {}]   ;;  %s4331_s3 = inlined_call_operand.hbm [shape: f32[32,64], index: 3, kind: input, shape index: {}]   ;;  %s4332_s4 = inlined_call_operand.hbm [shape: f32[64,64], index: 4, kind: input, shape index: {}]   ;;  %s4333_s5 = inlined_call_operand.vmem [shape: f32[64,512], index: 5, kind: input, shape index: {}]   ;;  %s4334_s6 = inlined_call_operand.hbm [shape: f32[2,64,192], index: 6, kind: input, shape index: {}]   ;;  %s4335_s7 = inlined_call_operand.hbm [shape: f32[2,64,64], index: 7, kind: input, shape index: {}]   ;;  %s4336_s8 = inlined_call_operand.hbm [shape: f32[2,64,128], index: 8, kind: input, shape index: {}]   ;;  %s4337_s9 = inlined_call_operand.vmem [shape: f32[2,128,64], index: 9, kind: input, shape index: {}]   ;;  %s4338_s10 = inlined_call_operand.vmem [shape: f32[2,8,64], index: 10, kind: output, shape index: {}]  }
   0x1   :  { %16 = vsyncpa [#allocation5], 0 }
   0x2   :  { %17 = vsyncpa [#allocation8], 0 }
   0x3   :  { %18 = vsyncpa [#allocation11], 0  ;;  %s40_s15 = sshll.u32 %s4331_s3, 4  ;;  %s3378_s16 = smov [#allocation4]   ;;  %s41_s15 = int_to_ptr.hbm [resolvable:$true] %s40_s15 }
   0x4   :  { %s42_s17 = sshll.u32 %s3378_s16, 4  ;;  %s68_s20 = sshll.u32 %s4334_s6, 4  ;;  %s43_s17 = int_to_ptr.vmem [resolvable:$true] %s42_s17  ;;  %s69_s20 = int_to_ptr.hbm [resolvable:$true] %s68_s20 }
   0x5   :  { %s3379_s21 = smov 128   ;;  %s3380_s22 = smov 8  }
   0x6   :  { %48 = dma.hbm_to_vmem [thread:$0]  %s41_s15, 512, %s43_s17, [#allocation5], %s3379_s21, %s3379_s21, %s3380_s22  }
   0x7   :  { %s3381_s23 = smov [#allocation7]   ;;  %s3382_s25 = smov 256  }
   0x8   :  { %s70_s24 = sshll.u32 %s3381_s23, 4  ;;  %s3383_s3 = smov 16   ;;  %s71_s24 = int_to_ptr.vmem [resolvable:$true] %s70_s24 }
   0x9   :  { %76 = dma.hbm_to_vmem [thread:$0]  %s69_s20, 4096, %s71_s24, [#allocation8], %s3382_s25, %s3382_s25, %s3383_s3  }
   0xa   :  { %s23_s28 = sshll.u32 %s4328_s0, 4  ;;  %s3384_s6 = smov [#allocation2]   ;;  %s24_s28 = int_to_ptr.hbm [resolvable:$true] %s23_s28 }
   0xb   :  { %s25_s29 = sshll.u32 %s3384_s6, 4  ;;  %s53_s12 = sshll.u32 %s4332_s4, 4  ;;  %s26_s29 = int_to_ptr.vmem [resolvable:$true] %s25_s29  ;;  %s54_s12 = int_to_ptr.hbm [resolvable:$true] %s53_s12 }
   0xc   :  { %31 = dma.hbm_to_vmem [thread:$0]  %s24_s28, 256, %s26_s29, [#allocation3], %s3379_s21, %s3379_s21, %s3380_s22  }
   0xd   :  { %s3385_s13 = smov [#allocation6]   ;;  %s81_s17 = sshll.u32 %s4335_s7, 4  ;;  %s82_s17 = int_to_ptr.hbm [resolvable:$true] %s81_s17 }
   0xe   :  { %s55_s14 = sshll.u32 %s3385_s13, 4  ;;  %s94_s4 = sshll.u32 %s4336_s8, 4  ;;  %s56_s14 = int_to_ptr.vmem [resolvable:$true] %s55_s14  ;;  %s95_s4 = int_to_ptr.hbm [resolvable:$true] %s94_s4 }
   0xf   :  { %61 = dma.hbm_to_vmem [thread:$0]  %s54_s12, 1024, %s56_s14, [#allocation5], %s3379_s21, %s3379_s21, %s3380_s22  }
  0x10   :  { %s3386_s19 = smov [#allocation9]   ;;  %s3387_s23 = smov [#allocation10]  }
  0x11   :  { %s83_s20 = sshll.u32 %s3386_s19, 4  ;;  %s96_s7 = sshll.u32 %s3387_s23, 4  ;;  %s84_s20 = int_to_ptr.vmem [resolvable:$true] %s83_s20  ;;  %s97_s7 = int_to_ptr.vmem [resolvable:$true] %s96_s7 }
  0x12   :  { %89 = dma.hbm_to_vmem [thread:$0]  %s82_s17, 2048, %s84_s20, [#allocation8], %s3379_s21, %s3379_s21, %s3380_s22  }
  0x13   :  { %102 = dma.hbm_to_vmem [thread:$0]  %s95_s4, 2048, %s97_s7, [#allocation11], %s3379_s21, %s3379_s21, %s3380_s22  }
  0x14   :  { %3370 = dma.done.wait [#allocation3], 256  }
  0x15   :  { %3371 = vsyncadd [#allocation3], 4294967040 }
  0x16   :  { %3372 = dma.done.wait [#allocation5], 1536  }
  0x17   :  { %3373 = vsyncadd [#allocation5], 4294965760 }
  0x18   :  { %3374 = dma.done.wait [#allocation8], 6144  }
  0x19   :  { %3375 = vsyncadd [#allocation8], 4294961152 }
  0x1a   :  { %3376 = dma.done.wait [#allocation11], 2048  }
  0x1b   :  { %3377 = vsyncadd [#allocation11], 4294965248  ;;  %v142_v0 = vld [vmem:[#allocation4 + $0x18] sm:$0xff]  ;;  %v141_v1 = vld [vmem:[#allocation4 + $0x10] sm:$0xff]  ;;  %vm144_vm0 = vcmask 261120   ;;  %vm174_vm1 = vcmask 523264  }
  0x1c   :  { %163 = vmatpush.msra.mxu0 %v142_v0  ;;  %v140_v2 = vld [vmem:[#allocation4 + $0x8] sm:$0xff]  ;;  %v139_v3 = vld [vmem:[#allocation4] sm:$0xff]  ;;  %v137_v4 = vld [vmem:[#allocation2] sm:$0xff]  ;;  %v3388_v14 = vmov 64.0   ;;  %s3389_s28 = smov 64   ;;  %s3390_s6 = smov 48  }
  0x1d   :  { %v138_v5 = vld [vmem:[#allocation2 + $0x8] sm:$0xff]  ;;  %v3492_v6 = vld [vmem:[%s4330_s2] sm:$0xff]  ;;  %3120 = vrcp.f32 %v3388_v14  ;;  %v310_v14 = vld [vmem:[#allocation7 + $0x68] sm:$0xff]  ;;  %s3391_s29 = smov 112   ;;  %s3392_s30 = smov 32   ;;  %vm370_vm15 = vcmask 130048  }
  0x1e   :  { %164 = vmatpush.msra.mxu0 %v141_v1  ;;  %v143_v7 = vperm.slane %v3492_v6, 0  ;;  %v226_v45 = vperm.slane %v3492_v6, 1  ;;  %v229_v49 = vperm.slane %v3492_v6, 2  ;;  %v232_v52 = vperm.slane %v3492_v6, 3  ;;  %s3393_s11 = smov 80   ;;  %s3394_s14 = smov 96  }
  0x20   :  { %165 = vmatpush.msra.mxu0 %v140_v2 }
  0x22   :  { %166 = vmatpush.msra.mxu0 %v139_v3 }
  0x23   :  { %2961 = vmatmul.msk.f32.vlgmr.msra.gmra.mxu0 %vm144_vm0, %v137_v4  ;;  %v3121_v15 = vpop.eup %3120 }
  0x24   :  { %v182_v16 = vmul.f32 64.0, %v3121_v15  ;;  %vm186_vm2 = vweird.f32 %v3121_v15 }
  0x26   :  { %v183_v17 = vsub.f32 1.0, %v182_v16  ;;  %v308_v16 = vld [vmem:[#allocation7 + $0x58] sm:$0xff] }
  0x28   :  { %v184_v18 = vmul.f32 %v3121_v15, %v183_v17  ;;  %v305_v17 = vld [vmem:[#allocation7 + $0x40] sm:$0xff] }
  0x2a   :  { %v185_v19 = vadd.f32 %v3121_v15, %v184_v18  ;;  %v306_v18 = vld [vmem:[#allocation7 + $0x48] sm:$0xff] }
  0x2b   :  { %2962 = vmatmul.msk.f32.gmra.mxu0 %vm144_vm0, %v138_v5 }
  0x2c   :  { %v3497_v20 = vsel %vm186_vm2, %v3121_v15, %v185_v19  ;;  %v307_v15 = vld [vmem:[#allocation7 + $0x50] sm:$0xff]  ;;  %vm422_vm2 = vcmask 64512  }
  0x2d   :  { %v303_v19 = vld [vmem:[#allocation7 + $0x30] sm:$0xff] }
  0xa0   :  { %v168_v8 = vpop.f32.mrf.mxu0 }
  0xa1   :  { %v169_v9 = vadd.f32 %v168_v8, %v143_v7 }
  0xa3   :  { %v175_v10 = vsel %vm174_vm1, %v169_v9, 0.0 }
  0xa4   :  { %176 = vadd.xlane.f32.xlu0 %v175_v10 }
  0xa8   :  { %v171_v11 = vpop.f32.mrf.mxu0 }
  0xa9   :  { %v172_v12 = vadd.f32 %v171_v11, %v143_v7  ;;  %v311_v11 = vld [vmem:[#allocation7 + $0x70] sm:$0xff] }
  0xaa   :  { %329 = vmatpush.msra.mxu1 %v311_v11 }
  0xab   :  { %v178_v13 = vsel %vm174_vm1, %v172_v12, 0.0 }
  0xac   :  { %179 = vadd.xlane.f32.xlu2 %v178_v13  ;;  %v309_v13 = vld [vmem:[#allocation7 + $0x60] sm:$0xff] }
  0xad   :  { %330 = vmatpush.msra.mxu1 %v309_v13 }
  0xaf   :  { %331 = vmatpush.msra.mxu1 %v307_v15 }
  0xb1   :  { %332 = vmatpush.msra.mxu1 %v305_v17 }
  0xb3   :  { %333 = vmatpush.msra.mxu1 %v303_v19 }
 0x117   :  { %v177_v21 = vpop.xlane.xlu0 %176 }
 0x118   :  { %v188_v22 = vmul.f32 %v3497_v20, %v177_v21  ;;  %v304_v21 = vld [vmem:[#allocation7 + $0x38] sm:$0xff] }
 0x11a   :  { %v190_v23 = vsub.f32 %v169_v9, %v188_v22  ;;  %v301_v22 = vld [vmem:[#allocation7 + $0x20] sm:$0xff] }
 0x11b   :  { %334 = vmatpush.msra.mxu1 %v301_v22 }
 0x11c   :  { %v192_v24 = vmul.f32 %v190_v23, %v190_v23 }
 0x11e   :  { %v194_v25 = vsel %vm174_vm1, %v192_v24, 0.0  ;;  %v299_v24 = vld [vmem:[#allocation7 + $0x10] sm:$0xff] }
 0x11f   :  { %v180_v26 = vpop.xlane.xlu2 %179  ;;  %195 = vadd.xlane.f32.xlu0 %v194_v25  ;;  %v300_v25 = vld [vmem:[#allocation7 + $0x18] sm:$0xff]  ;;  %335 = vmatpush.msra.mxu1 %v299_v24 }
 0x120   :  { %v189_v27 = vmul.f32 %v3497_v20, %v180_v26  ;;  %v297_v26 = vld [vmem:[#allocation7] sm:$0xff] }
 0x121   :  { %336 = vmatpush.msra.mxu1 %v297_v26 }
 0x122   :  { %v191_v28 = vsub.f32 %v172_v12, %v189_v27  ;;  %v312_v12 = vld [vmem:[#allocation7 + $0x78] sm:$0xff]  ;;  %v298_v27 = vld [vmem:[#allocation7 + $0x8] sm:$0xff] }
 0x123   :  { %352 = vmatpush.msra.mxu2 %v312_v12 }
 0x124   :  { %v193_v29 = vmul.f32 %v191_v28, %v191_v28 }
 0x125   :  { %353 = vmatpush.msra.mxu2 %v310_v14 }
 0x126   :  { %v197_v30 = vsel %vm174_vm1, %v193_v29, 0.0 }
 0x127   :  { %198 = vadd.xlane.f32.xlu2 %v197_v30  ;;  %354 = vmatpush.msra.mxu2 %v308_v16 }
 0x129   :  { %355 = vmatpush.msra.mxu2 %v306_v18 }
 0x12b   :  { %356 = vmatpush.msra.mxu2 %v304_v21 }
 0x192   :  { %v196_v31 = vpop.xlane.xlu0 %195 }
 0x193   :  { %v200_v32 = vmul.f32 %v196_v31, %v3497_v20 }
 0x195   :  { %v202_v33 = vadd.f32 1e-05, %v200_v32 }
 0x197   :  { %3122 = vrsqrt.f32 %v202_v33  ;;  %vm210_vm4 = vweird.f32 %v202_v33 }
 0x19a   :  { %v199_v34 = vpop.xlane.xlu2 %198 }
 0x19b   :  { %v201_v35 = vmul.f32 %v199_v34, %v3497_v20 }
 0x19d   :  { %v3123_v36 = vpop.eup %3122  ;;  %v203_v37 = vadd.f32 1e-05, %v201_v35 }
 0x19e   :  { %v205_v38 = vmul.f32 %v3123_v36, %v202_v33  ;;  %vm211_vm3 = vweird.f32 %v3123_v36 }
 0x19f   :  { %3124 = vrsqrt.f32 %v203_v37  ;;  %vm212_vm5 = vmor %vm210_vm4, %vm211_vm3  ;;  %vm220_vm6 = vweird.f32 %v203_v37 }
 0x1a0   :  { %v206_v39 = vmul.f32 %v3123_v36, %v205_v38 }
 0x1a2   :  { %v207_v40 = vmul.f32 0.5, %v206_v39 }
 0x1a4   :  { %v208_v41 = vsub.f32 1.5, %v207_v40 }
 0x1a5   :  { %v3125_v42 = vpop.eup %3124 }
 0x1a6   :  { %v209_v43 = vmul.f32 %v3123_v36, %v208_v41  ;;  %v215_v44 = vmul.f32 %v3125_v42, %v203_v37  ;;  %vm221_vm7 = vweird.f32 %v3125_v42 }
 0x1a7   :  { %vm222_vm8 = vmor %vm220_vm6, %vm221_vm7 }
 0x1a8   :  { %v216_v46 = vmul.f32 %v3125_v42, %v215_v44  ;;  %v213_v47 = vsel %vm212_vm5, %v3123_v36, %v209_v43 }
 0x1a9   :  { %v224_v48 = vmul.f32 %v213_v47, %v190_v23  ;;  %v302_v23 = vld [vmem:[#allocation7 + $0x28] sm:$0xff] }
 0x1aa   :  { %v217_v50 = vmul.f32 0.5, %v216_v46  ;;  %357 = vmatpush.msra.mxu2 %v302_v23  ;;  %v282_v46 = vperm.slane %v3492_v6, 5 }
 0x1ab   :  { %v227_v51 = vmul.f32 %v226_v45, %v224_v48 }
 0x1ac   :  { %v218_v53 = vsub.f32 1.5, %v217_v50  ;;  %358 = vmatpush.msra.mxu2 %v300_v25 }
 0x1ad   :  { %v230_v54 = vadd.f32 %v229_v49, %v227_v51 }
 0x1ae   :  { %v219_v55 = vmul.f32 %v3125_v42, %v218_v53  ;;  %359 = vmatpush.msra.mxu2 %v298_v27 }
 0x1af   :  { %v233_v56 = vadd.f32 %v232_v52, %v230_v54 }
 0x1b0   :  { %v223_v57 = vsel %vm222_vm8, %v3125_v42, %v219_v55  ;;  %v279_v42 = vperm.slane %v3492_v6, 4  ;;  %v3543_v55 = vld [vmem:[%s4330_s2 + $0x20] sm:$0xff] }
 0x1b1   :  { %v235_v58 = vsel %vm174_vm1, %v233_v56, 0.0  ;;  %v225_v59 = vmul.f32 %v223_v57, %v191_v28 }
 0x1b2   :  { %236 = vadd.xlane.f32.xlu1 %v235_v58  ;;  %v131_v58 = vld [vmem:[%s4330_s2 + $0x28] sm:$0xff] }
 0x1b3   :  { %v228_v60 = vmul.f32 %v226_v45, %v225_v59 }
 0x1b5   :  { %v231_v61 = vadd.f32 %v229_v49, %v228_v60  ;;  %v314_v60 = vperm.slane %v131_v58, 2 }
 0x1b7   :  { %v234_v62 = vadd.f32 %v232_v52, %v231_v61 }
 0x1b9   :  { %v238_v63 = vsel %vm174_vm1, %v234_v62, 0.0 }
 0x1ba   :  { %239 = vadd.xlane.f32.xlu0 %v238_v63 }
 0x225   :  { %v237_v0 = vpop.xlane.xlu1 %236 }
 0x226   :  { %v241_v1 = vmul.f32 %v237_v0, %v3497_v20 }
 0x228   :  { %v3511_v2 = vsub.f32 %v233_v56, %v241_v1  ;;  %v313_v56 = vperm.slane %v3543_v55, 2 }
 0x22a   :  { %v245_v3 = vmul.f32 %v3511_v2, %v3511_v2 }
 0x22c   :  { %v247_v4 = vsel %vm174_vm1, %v245_v3, 0.0 }
 0x22d   :  { %248 = vadd.xlane.f32.xlu1 %v247_v4  ;;  %v240_v5 = vpop.xlane.xlu0 %239 }
 0x22e   :  { %v242_v7 = vmul.f32 %v240_v5, %v3497_v20 }
 0x230   :  { %v3517_v8 = vsub.f32 %v234_v62, %v242_v7 }
 0x232   :  { %v246_v9 = vmul.f32 %v3517_v8, %v3517_v8 }
 0x234   :  { %v250_v10 = vsel %vm174_vm1, %v246_v9, 0.0 }
 0x235   :  { %251 = vadd.xlane.f32.xlu2 %v250_v10 }
 0x2a0   :  { %v249_v28 = vpop.xlane.xlu1 %248 }
 0x2a1   :  { %v253_v29 = vmul.f32 %v249_v28, %v3497_v20  ;;  %v286_v28 = vld [vmem:[%s4329_s1 + $0x1] sm:$0x1] }
 0x2a3   :  { %v255_v30 = vadd.f32 1e-12, %v253_v29 }
 0x2a5   :  { %3126 = vrsqrt.f32 %v255_v30  ;;  %vm263_vm10 = vweird.f32 %v255_v30 }
 0x2a8   :  { %v252_v31 = vpop.xlane.xlu2 %251 }
 0x2a9   :  { %v254_v32 = vmul.f32 %v252_v31, %v3497_v20  ;;  %v288_v31 = vsub.f32 1.0, %v286_v28 }
 0x2ab   :  { %v3127_v33 = vpop.eup %3126  ;;  %v256_v34 = vadd.f32 1e-12, %v254_v32 }
 0x2ac   :  { %v258_v35 = vmul.f32 %v3127_v33, %v255_v30  ;;  %vm264_vm9 = vweird.f32 %v3127_v33 }
 0x2ad   :  { %3128 = vrsqrt.f32 %v256_v34  ;;  %vm265_vm11 = vmor %vm263_vm10, %vm264_vm9  ;;  %vm273_vm13 = vweird.f32 %v256_v34 }
 0x2ae   :  { %v259_v36 = vmul.f32 %v3127_v33, %v258_v35  ;;  %v290_v35 = vmul.f32 -10000.0, %v288_v31 }
 0x2b0   :  { %v260_v37 = vmul.f32 0.5, %v259_v36 }
 0x2b2   :  { %v261_v38 = vsub.f32 1.5, %v260_v37  ;;  %v3585_v37 = vperm.slane %v290_v35, 0 }
 0x2b3   :  { %v3129_v39 = vpop.eup %3128 }
 0x2b4   :  { %v262_v40 = vmul.f32 %v3127_v33, %v261_v38  ;;  %v268_v41 = vmul.f32 %v3129_v39, %v256_v34  ;;  %vm274_vm12 = vweird.f32 %v3129_v39 }
 0x2b5   :  { %vm275_vm14 = vmor %vm273_vm13, %vm274_vm12 }
 0x2b6   :  { %v266_v43 = vsel %vm265_vm11, %v3127_v33, %v262_v40  ;;  %v269_v44 = vmul.f32 %v3129_v39, %v268_v41 }
 0x2b7   :  { %v277_v45 = vmul.f32 %v266_v43, %v3511_v2  ;;  %v285_v2 = vld [vmem:[%s4329_s1] sm:$0x1] }
 0x2b8   :  { %v270_v47 = vmul.f32 0.5, %v269_v44  ;;  %v287_v3 = vsub.f32 1.0, %v285_v2 }
 0x2b9   :  { %v280_v48 = vmul.f32 %v279_v42, %v277_v45 }
 0x2ba   :  { %v271_v49 = vsub.f32 1.5, %v270_v47  ;;  %v289_v4 = vmul.f32 -10000.0, %v287_v3 }
 0x2bb   :  { %v3527_v50 = vadd.f32 %v282_v46, %v280_v48 }
 0x2bc   :  { %v272_v51 = vmul.f32 %v3129_v39, %v271_v49  ;;  %v3564_v5 = vperm.slane %v289_v4, 0 }
 0x2bd   :  { %2963 = vmatmul.msk.f32.vlgmr.msra.gmra.mxu1 %vm174_vm1, %v3527_v50  ;;  %2965 = vmatmul.msk.f32.vlgmr.msra.gmra.mxu2 %vm174_vm1, %v3527_v50 }
 0x2be   :  { %v276_v52 = vsel %vm275_vm14, %v3129_v39, %v272_v51 }
 0x2bf   :  { %v278_v53 = vmul.f32 %v276_v52, %v3517_v8 }
 0x2c1   :  { %v281_v54 = vmul.f32 %v279_v42, %v278_v53 }
 0x2c3   :  { %v3534_v6 = vadd.f32 %v282_v46, %v281_v54 }
 0x2c5   :  { %2964 = vmatmul.msk.f32.gmra.mxu1 %vm174_vm1, %v3534_v6  ;;  %2966 = vmatmul.msk.f32.gmra.mxu2 %vm174_vm1, %v3534_v6 }
 0x33a   :  { %v338_v57 = vpop.f32.mrf.mxu1 }
 0x33b   :  { %v339_v59 = vadd.f32 %v338_v57, %v313_v56 }
 0x33d   :  { %368 = vrot.lane.b32.xlu1 %v339_v59, %s3389_s28  ;;  %519 = vrot.lane.b32.xlu2 %v339_v59, %s3390_s6 }
 0x340   :  { %v361_v61 = vpop.f32.mrf.mxu2 }
 0x341   :  { %v3551_v62 = vadd.f32 %v361_v61, %v314_v60 }
 0x342   :  { %v341_v10 = vpop.f32.mrf.mxu1 }
 0x343   :  { %v3568_v11 = vadd.f32 %v341_v10, %v313_v56 }
 0x345   :  { %517 = vrot.lane.b32.xlu1 %v339_v59, %s3391_s29 }
 0x348   :  { %v364_v63 = vpop.f32.mrf.mxu2 }
 0x349   :  { %v3554_v0 = vadd.f32 %v364_v63, %v314_v60 }
 0x34b   :  { %512 = vmatpush.msrb.mxu0 %v3554_v0 }
 0x34d   :  { %677 = vrot.lane.b32.xlu1 %v339_v59, %s3392_s30 }
 0x355   :  { %831 = vrot.lane.b32.xlu1 %v339_v59, %s3393_s11 }
 0x397   :  { %v520_v18 = vpop.permute.xlu2 %519 }
 0x3af   :  { %v369_v1 = vpop.permute.xlu1 %368 }
 0x3b0   :  { %2967 = vmatpush.xpose.msk.msra.mxu3 %vm370_vm15, %v369_v1 }
 0x3b3   :  { %2968 = vmatmul.msk.f32.vlgmr.msra.gmra.mxu3 %vm370_vm15, %v339_v59 }
 0x3b7   :  { %v518_v23 = vpop.permute.xlu1 %517 }
 0x3bf   :  { %v678_v36 = vpop.permute.xlu1 %677 }
 0x3c7   :  { %v832_v43 = vpop.permute.xlu1 %831 }
 0x436   :  { %v392_v7 = vpop.f32.mrf.mxu3 }
 0x437   :  { %v393_v8 = vadd.f32 %v392_v7, %v3564_v5 }
 0x439   :  { %v423_v9 = vsel %vm422_vm2, %v393_v8, -inf }
 0x43a   :  { %424 = vmax.xlane.f32.xlu0 %v423_v9 }
 0x44e   :  { %396 = vrot.lane.b32.xlu0 %v3568_v11, %s3389_s28 }
 0x456   :  { %675 = vrot.lane.b32.xlu0 %v339_v59, %s3394_s14 }
 0x4ad   :  { %v425_v12 = vpop.xlane.xlu0 %424 }
 0x4ae   :  { %v429_v13 = vsub.f32 %v393_v8, %v425_v12 }
 0x4b0   :  { %v431_v14 = vmul.f32 1.442695, %v429_v13 }
 0x4b2   :  { %3130 = vpow2.f32 %v431_v14 }
 0x4b8   :  { %v3131_v15 = vpop.eup %3130 }
 0x4b9   :  { %v435_v16 = vsel %vm422_vm2, %v3131_v15, 0.0 }
 0x4ba   :  { %436 = vadd.xlane.f32.xlu2 %v435_v16 }
 0x4c0   :  { %v397_v17 = vpop.permute.xlu0 %396 }
 0x4c1   :  { %2969 = vmatpush.xpose.msk.msrb.mxu3 %vm370_vm15, %v397_v17 }
 0x4c4   :  { %2970 = vmatmul.msk.f32.vlgmr.msrb.gmra.mxu3 %vm370_vm15, %v3568_v11 }
 0x4c5   :  { %489 = vmatpush.msra.mxu3 %v3551_v62 }
 0x4c7   :  { %2973 = vmatpush.xpose.msk.msrb.mxu3 %vm370_vm15, %v520_v18 }
 0x4c8   :  { %v676_v42 = vpop.permute.xlu0 %675 }
 0x4d2   :  { %833 = vrot.lane.b32.xlu2 %v339_v59, %s3383_s3 }
 0x52d   :  { %v437_v19 = vpop.xlane.xlu2 %436 }
 0x52e   :  { %3132 = vrcp.f32 %v437_v19  ;;  %v452_v25 = vand.u32 2147483648, %v437_v19  ;;  %v450_v27 = vand.u32 2147483647, %v437_v19  ;;  %vm446_vm4 = vweird.f32 %v437_v19 }
 0x530   :  { %v453_v30 = vor.u32 1.1754944e-38, %v452_v25  ;;  %vm451_vm6 = vcmp.eq.f32.partialorder %v450_v27, 8.507059e+37 }
 0x534   :  { %v3133_v21 = vpop.eup %3132 }
 0x535   :  { %v442_v22 = vmul.f32 %v3133_v21, %v437_v19  ;;  %vm447_vm3 = vweird.f32 %v3133_v21  ;;  %v834_v40 = vpop.permute.xlu2 %833 }
 0x536   :  { %vm448_vm5 = vmor %vm446_vm4, %vm447_vm3 }
 0x537   :  { %v443_v24 = vsub.f32 1.0, %v442_v22 }
 0x539   :  { %v444_v26 = vmul.f32 %v3133_v21, %v443_v24 }
 0x53b   :  { %v445_v29 = vadd.f32 %v3133_v21, %v444_v26 }
 0x53d   :  { %v449_v32 = vsel %vm448_vm5, %v3133_v21, %v445_v29 }
 0x53e   :  { %v454_v33 = vsel %vm451_vm6, %v453_v30, %v449_v32 }
 0x53f   :  { %v455_v34 = vmul.f32 %v3131_v15, %v454_v33 }
 0x541   :  { %2971 = vmatmul.msk.f32.vlgmr.msra.gmra.mxu3 %vm422_vm2, %v455_v34 }
 0x542   :  { %2979 = vmatpush.xpose.msk.msra.mxu3 %vm370_vm15, %v678_v36 }
 0x547   :  { %v419_v38 = vpop.f32.mrf.mxu3 }
 0x548   :  { %v420_v39 = vadd.f32 %v419_v38, %v3585_v37 }
 0x549   :  { %2974 = vmatmul.msk.f32.vlgmr.msrb.gmra.mxu3 %vm370_vm15, %v518_v23 }
 0x54a   :  { %2985 = vmatpush.xpose.msk.msrb.mxu3 %vm370_vm15, %v834_v40  ;;  %v426_v41 = vsel %vm422_vm2, %v420_v39, -inf }
 0x54b   :  { %427 = vmax.xlane.f32.xlu0 %v426_v41 }
 0x551   :  { %2980 = vmatmul.msk.f32.vlgmr.msra.gmra.mxu3 %vm370_vm15, %v676_v42 }
 0x559   :  { %2986 = vmatmul.msk.f32.vlgmr.msrb.gmra.mxu3 %vm370_vm15, %v832_v43 }
 0x55f   :  { %547 = vrot.lane.b32.xlu0 %v3568_v11, %s3390_s6 }
 0x5be   :  { %v428_v44 = vpop.xlane.xlu0 %427 }
 0x5bf   :  { %v430_v46 = vsub.f32 %v420_v39, %v428_v44 }
 0x5c1   :  { %v433_v47 = vmul.f32 1.442695, %v430_v46 }
 0x5c3   :  { %3134 = vpow2.f32 %v433_v47 }
 0x5c4   :  { %v3595_v45 = vpop.f32.mrf.mxu3 }
 0x5c9   :  { %v3135_v53 = vpop.eup %3134 }
 0x5ca   :  { %v438_v58 = vsel %vm422_vm2, %v3135_v53, 0.0 }
 0x5cc   :  { %v542_v48 = vpop.f32.mrf.mxu3 }
 0x5cd   :  { %v543_v49 = vadd.f32 %v542_v48, %v3564_v5 }
 0x5cf   :  { %v573_v51 = vsel %vm422_vm2, %v543_v49, -inf }
 0x5d0   :  { %574 = vmax.xlane.f32.xlu2 %v573_v51 }
 0x5d1   :  { %v548_v52 = vpop.permute.xlu0 %547 }
 0x5d2   :  { %2975 = vmatpush.xpose.msk.msra.mxu0 %vm370_vm15, %v548_v52 }
 0x5d4   :  { %v700_v54 = vpop.f32.mrf.mxu3 }
 0x5d5   :  { %v701_v56 = vadd.f32 %v700_v54, %v3564_v5 }
 0x5d7   :  { %v731_v57 = vsel %vm422_vm2, %v701_v56, -inf }
 0x5d8   :  { %732 = vmax.xlane.f32.xlu1 %v731_v57  ;;  %439 = vadd.xlane.f32.xlu2 %v438_v58 }
 0x5dc   :  { %v856_v59 = vpop.f32.mrf.mxu3 }
 0x5dd   :  { %v857_v60 = vadd.f32 %v856_v59, %v3564_v5 }
 0x5df   :  { %v887_v61 = vsel %vm422_vm2, %v857_v60, -inf }
 0x5e0   :  { %888 = vmax.xlane.f32.xlu0 %v887_v61 }
 0x5f0   :  { %545 = vrot.lane.b32.xlu2 %v3568_v11, %s3391_s29 }
 0x5f1   :  { %705 = vrot.lane.b32.xlu1 %v3568_v11, %s3392_s30 }
 0x5f4   :  { %703 = vrot.lane.b32.xlu0 %v3568_v11, %s3394_s14 }
 0x5fc   :  { %622 = vrot.lane.b32.xlu0 %v3551_v62, %s3391_s29 }
 0x604   :  { %861 = vrot.lane.b32.xlu0 %v3568_v11, %s3383_s3 }
 0x60c   :  { %779 = vrot.lane.b32.xlu0 %v3551_v62, %s3394_s14 }
 0x643   :  { %v575_v63 = vpop.xlane.xlu2 %574 }
 0x644   :  { %v579_v1 = vsub.f32 %v543_v49, %v575_v63 }
 0x646   :  { %v581_v2 = vmul.f32 1.442695, %v579_v1 }
 0x648   :  { %3136 = vpow2.f32 %v581_v2 }
 0x64b   :  { %v733_v3 = vpop.xlane.xlu1 %732  ;;  %v440_v4 = vpop.xlane.xlu2 %439 }
 0x64c   :  { %v737_v7 = vsub.f32 %v701_v56, %v733_v3  ;;  %3138 = vrcp.f32 %v440_v4  ;;  %v467_v18 = vand.u32 2147483648, %v440_v4  ;;  %v465_v22 = vand.u32 2147483647, %v440_v4 }
 0x64d   :  { %vm461_vm8 = vweird.f32 %v440_v4 }
 0x64e   :  { %v3617_v8 = vpop.eup %3136  ;;  %v739_v9 = vmul.f32 1.442695, %v737_v7  ;;  %v468_v25 = vor.u32 1.1754944e-38, %v467_v18  ;;  %vm466_vm10 = vcmp.eq.f32.partialorder %v465_v22, 8.507059e+37 }
 0x64f   :  { %v585_v10 = vsel %vm422_vm2, %v3617_v8, 0.0 }
 0x650   :  { %3140 = vpow2.f32 %v739_v9  ;;  %586 = vadd.xlane.f32.xlu1 %v585_v10 }
 0x652   :  { %v3139_v12 = vpop.eup %3138 }
 0x653   :  { %v457_v13 = vmul.f32 %v3139_v12, %v440_v4  ;;  %v889_v14 = vpop.xlane.xlu0 %888  ;;  %vm462_vm7 = vweird.f32 %v3139_v12  ;;  %v546_v32 = vpop.permute.xlu2 %545 }
 0x654   :  { %v893_v15 = vsub.f32 %v857_v60, %v889_v14  ;;  %vm463_vm9 = vmor %vm461_vm8, %vm462_vm7 }
 0x655   :  { %v458_v16 = vsub.f32 1.0, %v457_v13 }
 0x656   :  { %v3621_v17 = vpop.eup %3140  ;;  %v895_v19 = vmul.f32 1.442695, %v893_v15 }
 0x657   :  { %v459_v21 = vmul.f32 %v3139_v12, %v458_v16  ;;  %v743_v23 = vsel %vm422_vm2, %v3621_v17, 0.0 }
 0x658   :  { %3142 = vpow2.f32 %v895_v19  ;;  %744 = vadd.xlane.f32.xlu1 %v743_v23 }
 0x659   :  { %v460_v24 = vadd.f32 %v3139_v12, %v459_v21 }
 0x65b   :  { %v464_v26 = vsel %vm463_vm9, %v3139_v12, %v460_v24 }
 0x65c   :  { %v469_v27 = vsel %vm466_vm10, %v468_v25, %v464_v26 }
 0x65d   :  { %v470_v28 = vmul.f32 %v3135_v53, %v469_v27 }
 0x65e   :  { %v3625_v29 = vpop.eup %3142 }
 0x65f   :  { %2972 = vmatmul.msk.f32.vlgmr.msrb.gmra.mxu0 %vm422_vm2, %v470_v28  ;;  %v899_v30 = vsel %vm422_vm2, %v3625_v29, 0.0 }
 0x660   :  { %900 = vadd.xlane.f32.xlu2 %v899_v30 }
 0x663   :  { %v706_v31 = vpop.permute.xlu1 %705 }
 0x664   :  { %2981 = vmatpush.xpose.msk.msrb.mxu0 %vm370_vm15, %v706_v31 }
 0x666   :  { %v704_v33 = vpop.permute.xlu0 %703 }
 0x667   :  { %2976 = vmatmul.msk.f32.vlgmr.msra.gmra.mxu0 %vm370_vm15, %v546_v32 }
 0x66e   :  { %v623_v34 = vpop.permute.xlu0 %622 }
 0x66f   :  { %643 = vmatpush.msrb.mxu1 %v623_v34  ;;  %2982 = vmatmul.msk.f32.vlgmr.msrb.gmra.mxu0 %vm370_vm15, %v704_v33 }
 0x671   :  { %859 = vrot.lane.b32.xlu1 %v3568_v11, %s3393_s11 }
 0x676   :  { %v862_v35 = vpop.permute.xlu0 %861 }
 0x677   :  { %2987 = vmatpush.xpose.msk.msra.mxu0 %vm370_vm15, %v862_v35 }
 0x679   :  { %935 = vrot.lane.b32.xlu1 %v3551_v62, %s3393_s11 }
 0x67e   :  { %v780_v36 = vpop.permute.xlu0 %779 }
 0x67f   :  { %800 = vmatpush.msra.mxu1 %v780_v36 }
 0x6c3   :  { %v587_v38 = vpop.xlane.xlu1 %586 }
 0x6c4   :  { %3144 = vrcp.f32 %v587_v38  ;;  %v602_v44 = vand.u32 2147483648, %v587_v38  ;;  %v600_v46 = vand.u32 2147483647, %v587_v38  ;;  %vm596_vm12 = vweird.f32 %v587_v38 }
 0x6c6   :  { %v603_v48 = vor.u32 1.1754944e-38, %v602_v44  ;;  %vm601_vm14 = vcmp.eq.f32.partialorder %v600_v46, 8.507059e+37  ;;  %v1024_v44 = vld [vmem:[#allocation9 + $0x30] sm:$0xff]  ;;  %v1023_v46 = vld [vmem:[#allocation9 + $0x28] sm:$0xff] }
 0x6ca   :  { %v3145_v39 = vpop.eup %3144 }
 0x6cb   :  { %v592_v40 = vmul.f32 %v3145_v39, %v587_v38  ;;  %v745_v41 = vpop.xlane.xlu1 %744  ;;  %vm597_vm11 = vweird.f32 %v3145_v39 }
 0x6cc   :  { %3146 = vrcp.f32 %v745_v41  ;;  %vm598_vm13 = vmor %vm596_vm12, %vm597_vm11  ;;  %v760_v54 = vand.u32 2147483648, %v745_v41  ;;  %v758_v58 = vand.u32 2147483647, %v745_v41  ;;  %vm754_vm4 = vweird.f32 %v745_v41 }
 0x6cd   :  { %v593_v42 = vsub.f32 1.0, %v592_v40  ;;  %vm1015_vm11 = vcmask 392192  }
 0x6ce   :  { %v761_v61 = vor.u32 1.1754944e-38, %v760_v54  ;;  %vm759_vm6 = vcmp.eq.f32.partialorder %v758_v58, 8.507059e+37 }
 0x6cf   :  { %v594_v43 = vmul.f32 %v3145_v39, %v593_v42 }
 0x6d1   :  { %v595_v11 = vadd.f32 %v3145_v39, %v594_v43  ;;  %v1025_v43 = vld [vmem:[#allocation9 + $0x38] sm:$0xff] }
 0x6d2   :  { %v3147_v47 = vpop.eup %3146  ;;  %1041 = vmatpush.msra.mxu3 %v1025_v43 }
 0x6d3   :  { %v750_v49 = vmul.f32 %v3147_v47, %v745_v41  ;;  %v901_v62 = vpop.xlane.xlu2 %900  ;;  %v599_v51 = vsel %vm598_vm13, %v3145_v39, %v595_v11  ;;  %vm755_vm3 = vweird.f32 %v3147_v47  ;;  %v1022_v11 = vld [vmem:[#allocation9 + $0x20] sm:$0xff] }
 0x6d4   :  { %3148 = vrcp.f32 %v901_v62  ;;  %v604_v53 = vsel %vm601_vm14, %v603_v48, %v599_v51  ;;  %vm756_vm5 = vmor %vm754_vm4, %vm755_vm3  ;;  %v916_v10 = vand.u32 2147483648, %v901_v62  ;;  %vm910_vm8 = vweird.f32 %v901_v62  ;;  %1042 = vmatpush.msra.mxu3 %v1024_v44  ;;  %v1020_v48 = vld [vmem:[#allocation9 + $0x10] sm:$0xff] }
 0x6d5   :  { %v751_v52 = vsub.f32 1.0, %v750_v49  ;;  %v605_v56 = vmul.f32 %v3617_v8, %v604_v53  ;;  %v914_v12 = vand.u32 2147483647, %v901_v62  ;;  %v1019_v49 = vld [vmem:[#allocation9 + $0x8] sm:$0xff] }
 0x6d6   :  { %v917_v18 = vor.u32 1.1754944e-38, %v916_v10  ;;  %1043 = vmatpush.msra.mxu3 %v1023_v46 }
 0x6d7   :  { %v752_v57 = vmul.f32 %v3147_v47, %v751_v52  ;;  %2977 = vmatmul.msk.f32.vlgmr.msrb.gmra.mxu1 %vm422_vm2, %v605_v56  ;;  %vm915_vm10 = vcmp.eq.f32.partialorder %v914_v12, 8.507059e+37 }
 0x6d8   :  { %1044 = vmatpush.msra.mxu3 %v1022_v11 }
 0x6d9   :  { %v753_v59 = vadd.f32 %v3147_v47, %v752_v57 }
 0x6da   :  { %v3149_v60 = vpop.eup %3148 }
 0x6db   :  { %v757_v63 = vsel %vm756_vm5, %v3147_v47, %v753_v59  ;;  %v906_v1 = vmul.f32 %v3149_v60, %v901_v62  ;;  %vm911_vm7 = vweird.f32 %v3149_v60  ;;  %v1021_v47 = vld [vmem:[#allocation9 + $0x18] sm:$0xff]  ;;  %v1018_v62 = vld [vmem:[#allocation9] sm:$0xff] }
 0x6dc   :  { %v762_v2 = vsel %vm759_vm6, %v761_v61, %v757_v63  ;;  %v3640_v3 = vpop.f32.mrf.mxu0  ;;  %vm912_vm9 = vmor %vm910_vm8, %vm911_vm7  ;;  %1045 = vmatpush.msra.mxu3 %v1021_v47 }
 0x6dd   :  { %v907_v4 = vsub.f32 1.0, %v906_v1  ;;  %v763_v7 = vmul.f32 %v3621_v17, %v762_v2 }
 0x6de   :  { %1046 = vmatpush.msra.mxu3 %v1020_v48 }
 0x6df   :  { %v908_v8 = vmul.f32 %v3149_v60, %v907_v4  ;;  %2983 = vmatmul.msk.f32.vlgmr.msra.gmra.mxu1 %vm422_vm2, %v763_v7 }
 0x6e0   :  { %1047 = vmatpush.msra.mxu3 %v1019_v49 }
 0x6e1   :  { %v909_v9 = vadd.f32 %v3149_v60, %v908_v8 }
 0x6e2   :  { %1048 = vmatpush.msra.mxu3 %v1018_v62 }
 0x6e3   :  { %v860_v13 = vpop.permute.xlu1 %859  ;;  %v913_v15 = vsel %vm912_vm9, %v3149_v60, %v909_v9 }
 0x6e4   :  { %v570_v14 = vpop.f32.mrf.mxu0  ;;  %2988 = vmatmul.msk.f32.vlgmr.msra.gmra.mxu0 %vm370_vm15, %v860_v13  ;;  %v918_v19 = vsel %vm915_vm10, %v917_v18, %v913_v15 }
 0x6e5   :  { %v571_v16 = vadd.f32 %v570_v14, %v3585_v37  ;;  %v919_v22 = vmul.f32 %v3625_v29, %v918_v19 }
 0x6e7   :  { %v576_v17 = vsel %vm422_vm2, %v571_v16, -inf }
 0x6e8   :  { %577 = vmax.xlane.f32.xlu0 %v576_v17 }
 0x6eb   :  { %v936_v21 = vpop.permute.xlu1 %935 }
 0x6ec   :  { %v728_v23 = vpop.f32.mrf.mxu0  ;;  %956 = vmatpush.msrb.mxu1 %v936_v21 }
 0x6ed   :  { %v729_v24 = vadd.f32 %v728_v23, %v3585_v37  ;;  %2989 = vmatmul.msk.f32.vlgmr.msrb.gmra.mxu1 %vm422_vm2, %v919_v22 }
 0x6ef   :  { %v734_v25 = vsel %vm422_vm2, %v729_v24, -inf }
 0x6f0   :  { %735 = vmax.xlane.f32.xlu1 %v734_v25 }
 0x754   :  { %v645_v26 = vpop.f32.mrf.mxu1 }
 0x75b   :  { %v578_v38 = vpop.xlane.xlu0 %577 }
 0x75c   :  { %v802_v27 = vpop.f32.mrf.mxu1  ;;  %v580_v39 = vsub.f32 %v571_v16, %v578_v38 }
 0x75d   :  { %997 = vrot.lane.b32.xlu0 %v802_v27, %s3392_s30 }
 0x75e   :  { %v583_v40 = vmul.f32 1.442695, %v580_v39 }
 0x761   :  { %v884_v28 = vpop.f32.mrf.mxu0 }
 0x762   :  { %v885_v30 = vadd.f32 %v884_v28, %v3585_v37 }
 0x763   :  { %v736_v32 = vpop.xlane.xlu1 %735 }
 0x764   :  { %v890_v31 = vsel %vm422_vm2, %v885_v30, -inf  ;;  %v738_v33 = vsub.f32 %v729_v24, %v736_v32 }
 0x765   :  { %891 = vmax.xlane.f32.xlu2 %v890_v31 }
 0x766   :  { %v741_v34 = vmul.f32 1.442695, %v738_v33 }
 0x768   :  { %3150 = vpow2.f32 %v741_v34 }
 0x769   :  { %3152 = vpow2.f32 %v583_v40 }
 0x76a   :  { %v958_v29 = vpop.f32.mrf.mxu1 }
 0x76b   :  { %1005 = vrot.lane.b32.xlu1 %v958_v29, %s3390_s6 }
 0x76e   :  { %v3656_v35 = vpop.eup %3150 }
 0x76f   :  { %v746_v36 = vsel %vm422_vm2, %v3656_v35, 0.0  ;;  %v3662_v41 = vpop.eup %3152 }
 0x770   :  { %v588_v42 = vsel %vm422_vm2, %v3662_v41, 0.0 }
 0x77d   :  { %989 = vrot.lane.b32.xlu2 %v645_v26, %s3383_s3 }
 0x787   :  { %747 = vadd.xlane.f32.xlu0 %v746_v36  ;;  %v1026_v36 = vperm.slane %v3543_v55, 3 }
 0x79b   :  { %805 = vrot.lane.b32.xlu0 %v3554_v0, %s3394_s14 }
 0x7a6   :  { %589 = vadd.xlane.f32.xlu2 %v588_v42 }
 0x7be   :  { %649 = vrot.lane.b32.xlu2 %v3554_v0, %s3391_s29 }
 0x7cf   :  { %v998_v56 = vpop.permute.xlu0 %997 }
 0x7d8   :  { %v892_v51 = vpop.xlane.xlu2 %891 }
 0x7d9   :  { %v894_v52 = vsub.f32 %v885_v30, %v892_v51 }
 0x7db   :  { %v897_v53 = vmul.f32 1.442695, %v894_v52 }
 0x7dd   :  { %3154 = vpow2.f32 %v897_v53  ;;  %v1006_v58 = vpop.permute.xlu1 %1005 }
 0x7e0   :  { %v990_v54 = vpop.permute.xlu2 %989 }
 0x7e1   :  { %v1011_v57 = vsel %vm370_vm15, %v3595_v45, %v990_v54 }
 0x7e2   :  { %v1013_v59 = vsel %vm144_vm0, %v1011_v57, %v998_v56  ;;  %v1115_v57 = vld [vmem:[#allocation10 + $0x38] sm:$0xff] }
 0x7e3   :  { %v3671_v60 = vpop.eup %3154  ;;  %v1016_v61 = vsel %vm1015_vm11, %v1013_v59, %v1006_v58  ;;  %1131 = vmatpush.msrb.mxu0 %v1115_v57  ;;  %v1114_v58 = vld [vmem:[#allocation10 + $0x30] sm:$0xff]  ;;  %v1113_v59 = vld [vmem:[#allocation10 + $0x28] sm:$0xff] }
 0x7e4   :  { %2991 = vmatmul.msk.f32.vlgmr.msra.gmra.mxu3 %vm174_vm1, %v1016_v61  ;;  %v902_v63 = vsel %vm422_vm2, %v3671_v60, 0.0  ;;  %v1111_v61 = vld [vmem:[#allocation10 + $0x18] sm:$0xff] }
 0x7e5   :  { %903 = vadd.xlane.f32.xlu1 %v902_v63  ;;  %1132 = vmatpush.msrb.mxu0 %v1114_v58  ;;  %v1110_v63 = vld [vmem:[#allocation10 + $0x10] sm:$0xff] }
 0x7e7   :  { %1133 = vmatpush.msrb.mxu0 %v1113_v59 }
 0x7fa   :  { %v748_v1 = vpop.xlane.xlu0 %747 }
 0x7fb   :  { %3156 = vrcp.f32 %v748_v1  ;;  %v775_v22 = vand.u32 2147483648, %v748_v1  ;;  %vm769_vm5 = vweird.f32 %v748_v1  ;;  %v773_v24 = vand.u32 2147483647, %v748_v1 }
 0x7fd   :  { %v776_v27 = vor.u32 1.1754944e-38, %v775_v22  ;;  %vm774_vm7 = vcmp.eq.f32.partialorder %v773_v24, 8.507059e+37 }
 0x7fe   :  { %961 = vrot.lane.b32.xlu1 %v3554_v0, %s3393_s11 }
 0x801   :  { %v3157_v45 = vpop.eup %3156 }
 0x802   :  { %v765_v4 = vmul.f32 %v3157_v45, %v748_v1  ;;  %vm770_vm3 = vweird.f32 %v3157_v45  ;;  %v1109_v1 = vld [vmem:[#allocation10 + $0x8] sm:$0xff] }
 0x803   :  { %vm771_vm6 = vmor %vm769_vm5, %vm770_vm3 }
 0x804   :  { %v766_v8 = vsub.f32 1.0, %v765_v4 }
 0x806   :  { %v767_v15 = vmul.f32 %v3157_v45, %v766_v8 }
 0x808   :  { %v768_v19 = vadd.f32 %v3157_v45, %v767_v15 }
 0x80a   :  { %v772_v26 = vsel %vm771_vm6, %v3157_v45, %v768_v19 }
 0x80b   :  { %v777_v28 = vsel %vm774_vm7, %v776_v27, %v772_v26  ;;  %v1179_v26 = vld [vmem:[%s4337_s9 + $0x78] sm:$0xff]  ;;  %v1178_v27 = vld [vmem:[%s4337_s9 + $0x70] sm:$0xff] }
 0x80c   :  { %v778_v30 = vmul.f32 %v3656_v35, %v777_v28  ;;  %1181 = vmatpush.msra.mxu1 %v1179_v26  ;;  %v1177_v28 = vld [vmem:[%s4337_s9 + $0x68] sm:$0xff] }
 0x80d   :  { %v806_v12 = vpop.permute.xlu0 %805 }
 0x80e   :  { %1182 = vmatpush.msra.mxu1 %v1178_v27 }
 0x810   :  { %1183 = vmatpush.msra.mxu1 %v1177_v28  ;;  %v1271_v28 = vld [vmem:[#allocation7 + $0xf0] sm:$0xff] }
 0x819   :  { %v590_v2 = vpop.xlane.xlu2 %589 }
 0x81a   :  { %3158 = vrcp.f32 %v590_v2  ;;  %v617_v14 = vand.u32 2147483648, %v590_v2  ;;  %v615_v18 = vand.u32 2147483647, %v590_v2  ;;  %vm611_vm13 = vweird.f32 %v590_v2 }
 0x81c   :  { %v618_v17 = vor.u32 1.1754944e-38, %v617_v14  ;;  %vm616_vm4 = vcmp.eq.f32.partialorder %v615_v18, 8.507059e+37 }
 0x820   :  { %v3159_v7 = vpop.eup %3158 }
 0x821   :  { %v607_v9 = vmul.f32 %v3159_v7, %v590_v2  ;;  %v650_v10 = vpop.permute.xlu2 %649  ;;  %vm612_vm12 = vweird.f32 %v3159_v7  ;;  %v1108_v2 = vld [vmem:[#allocation10] sm:$0xff] }
 0x822   :  { %670 = vmatpush.msrb.mxu2 %v650_v10  ;;  %vm613_vm14 = vmor %vm611_vm13, %vm612_vm12 }
 0x823   :  { %v608_v13 = vsub.f32 1.0, %v607_v9 }
 0x824   :  { %826 = vmatpush.msra.mxu2 %v806_v12 }
 0x825   :  { %v609_v16 = vmul.f32 %v3159_v7, %v608_v13 }
 0x827   :  { %v610_v0 = vadd.f32 %v3159_v7, %v609_v16 }
 0x829   :  { %v614_v21 = vsel %vm613_vm14, %v3159_v7, %v610_v0 }
 0x82a   :  { %v619_v23 = vsel %vm616_vm4, %v618_v17, %v614_v21  ;;  %v1102_v21 = vperm.slane %v3543_v55, 4 }
 0x82b   :  { %v620_v25 = vmul.f32 %v3662_v41, %v619_v23 }
 0x82d   :  { %2978 = vmatmul.msk.f32.vlgmr.msrb.gmra.mxu2 %vm422_vm2, %v620_v25 }
 0x835   :  { %2984 = vmatmul.msk.f32.vlgmr.msra.gmra.mxu2 %vm422_vm2, %v778_v30  ;;  %v1176_v30 = vld [vmem:[%s4337_s9 + $0x60] sm:$0xff] }
 0x836   :  { %1184 = vmatpush.msra.mxu1 %v1176_v30  ;;  %v1270_v30 = vld [vmem:[#allocation7 + $0xe8] sm:$0xff] }
 0x858   :  { %v904_v31 = vpop.xlane.xlu1 %903 }
 0x859   :  { %3160 = vrcp.f32 %v904_v31  ;;  %v931_v39 = vand.u32 2147483648, %v904_v31  ;;  %vm925_vm9 = vweird.f32 %v904_v31  ;;  %v929_v41 = vand.u32 2147483647, %v904_v31 }
 0x85b   :  { %v932_v44 = vor.u32 1.1754944e-38, %v931_v39  ;;  %vm930_vm12 = vcmp.eq.f32.partialorder %v929_v41, 8.507059e+37  ;;  %v1169_v39 = vld [vmem:[%s4337_s9 + $0x28] sm:$0xff]  ;;  %v1167_v41 = vld [vmem:[%s4337_s9 + $0x18] sm:$0xff] }
 0x85f   :  { %v3161_v29 = vpop.eup %3160 }
 0x860   :  { %v921_v32 = vmul.f32 %v3161_v29, %v904_v31  ;;  %vm926_vm8 = vweird.f32 %v3161_v29  ;;  %v1175_v31 = vld [vmem:[%s4337_s9 + $0x58] sm:$0xff] }
 0x861   :  { %vm927_vm10 = vmor %vm925_vm9, %vm926_vm8  ;;  %1185 = vmatpush.msra.mxu1 %v1175_v31  ;;  %v1267_v31 = vld [vmem:[#allocation7 + $0xd0] sm:$0xff] }
 0x862   :  { %v922_v33 = vsub.f32 1.0, %v921_v32  ;;  %v1173_v32 = vld [vmem:[%s4337_s9 + $0x48] sm:$0xff] }
 0x864   :  { %v923_v34 = vmul.f32 %v3161_v29, %v922_v33  ;;  %v1172_v33 = vld [vmem:[%s4337_s9 + $0x40] sm:$0xff] }
 0x866   :  { %v924_v38 = vadd.f32 %v3161_v29, %v923_v34  ;;  %v1171_v34 = vld [vmem:[%s4337_s9 + $0x38] sm:$0xff] }
 0x867   :  { %v1050_v40 = vpop.f32.mrf.mxu3 }
 0x868   :  { %v1051_v42 = vadd.f32 %v1050_v40, %v1026_v36  ;;  %v928_v35 = vsel %vm927_vm10, %v3161_v29, %v924_v38  ;;  %v1174_v29 = vld [vmem:[%s4337_s9 + $0x50] sm:$0xff]  ;;  %v1168_v40 = vld [vmem:[%s4337_s9 + $0x20] sm:$0xff] }
 0x869   :  { %v933_v11 = vsel %vm930_vm12, %v932_v44, %v928_v35  ;;  %1186 = vmatpush.msra.mxu1 %v1174_v29  ;;  %v1170_v38 = vld [vmem:[%s4337_s9 + $0x30] sm:$0xff]  ;;  %v1165_v35 = vld [vmem:[%s4337_s9 + $0x8] sm:$0xff] }
 0x86a   :  { %v1056_v43 = vadd.f32 %v1051_v42, %v3527_v50  ;;  %v934_v48 = vmul.f32 %v3671_v60, %v933_v11  ;;  %v1112_v60 = vld [vmem:[#allocation10 + $0x20] sm:$0xff]  ;;  %v1268_v29 = vld [vmem:[#allocation7 + $0xd8] sm:$0xff] }
 0x86b   :  { %1134 = vmatpush.msrb.mxu0 %v1112_v60  ;;  %1187 = vmatpush.msra.mxu1 %v1173_v32  ;;  %v1166_v42 = vld [vmem:[%s4337_s9 + $0x10] sm:$0xff] }
 0x86c   :  { %v1058_v46 = vsel %vm174_vm1, %v1056_v43, 0.0  ;;  %v1265_v32 = vld [vmem:[#allocation7 + $0xc0] sm:$0xff] }
 0x86d   :  { %1059 = vadd.xlane.f32.xlu2 %v1058_v46  ;;  %1135 = vmatpush.msrb.mxu0 %v1111_v61 }
 0x86e   :  { %1188 = vmatpush.msra.mxu1 %v1172_v33  ;;  %v1266_v33 = vld [vmem:[#allocation7 + $0xc8] sm:$0xff] }
 0x86f   :  { %1136 = vmatpush.msrb.mxu0 %v1110_v63 }
 0x870   :  { %v962_v47 = vpop.permute.xlu1 %961  ;;  %1189 = vmatpush.msra.mxu1 %v1171_v34  ;;  %v1263_v34 = vld [vmem:[#allocation7 + $0xb0] sm:$0xff] }
 0x871   :  { %982 = vmatpush.msrb.mxu2 %v962_v47  ;;  %1137 = vmatpush.msrb.mxu0 %v1109_v1  ;;  %v1180_v1 = vperm.slane %v3543_v55, 7 }
 0x872   :  { %2990 = vmatmul.msk.f32.vlgmr.msrb.gmra.mxu2 %vm422_vm2, %v934_v48  ;;  %1190 = vmatpush.msra.mxu1 %v1170_v38  ;;  %v1116_v48 = vperm.slane %v3543_v55, 6  ;;  %v1264_v38 = vld [vmem:[#allocation7 + $0xb8] sm:$0xff] }
 0x873   :  { %1138 = vmatpush.msrb.mxu0 %v1108_v2  ;;  %1289 = vmatpush.msra.mxu2 %v1271_v28 }
 0x874   :  { %1191 = vmatpush.msra.mxu1 %v1169_v39  ;;  %v1261_v39 = vld [vmem:[#allocation7 + $0xa0] sm:$0xff] }
 0x876   :  { %1192 = vmatpush.msra.mxu1 %v1168_v40  ;;  %v1262_v40 = vld [vmem:[#allocation7 + $0xa8] sm:$0xff] }
 0x878   :  { %1193 = vmatpush.msra.mxu1 %v1167_v41  ;;  %v1259_v41 = vld [vmem:[#allocation7 + $0x90] sm:$0xff] }
 0x87a   :  { %1194 = vmatpush.msra.mxu1 %v1166_v42  ;;  %v1260_v42 = vld [vmem:[#allocation7 + $0x98] sm:$0xff] }
 0x87c   :  { %1195 = vmatpush.msra.mxu1 %v1165_v35  ;;  %v1257_v35 = vld [vmem:[#allocation7 + $0x80] sm:$0xff] }
 0x8b0   :  { %v672_v49 = vpop.f32.mrf.mxu2 }
 0x8b1   :  { %991 = vrot.lane.b32.xlu1 %v672_v49, %s3383_s3 }
 0x8b8   :  { %v828_v62 = vpop.f32.mrf.mxu2 }
 0x8b9   :  { %999 = vrot.lane.b32.xlu1 %v828_v62, %s3392_s30 }
 0x8e0   :  { %v1060_v51 = vpop.xlane.xlu2 %1059 }
 0x8e1   :  { %v1064_v50 = vmul.f32 %v1060_v51, %v3497_v20 }
 0x8e3   :  { %v1066_v52 = vsub.f32 %v1056_v43, %v1064_v50  ;;  %v1164_v43 = vld [vmem:[%s4337_s9] sm:$0xff] }
 0x8e4   :  { %1196 = vmatpush.msra.mxu1 %v1164_v43  ;;  %v1258_v43 = vld [vmem:[#allocation7 + $0x88] sm:$0xff] }
 0x8e5   :  { %v1068_v53 = vmul.f32 %v1066_v52, %v1066_v52 }
 0x8e7   :  { %v1070_v54 = vsel %vm174_vm1, %v1068_v53, 0.0 }
 0x8e8   :  { %1071 = vadd.xlane.f32.xlu0 %v1070_v54 }
 0x8f5   :  { %v984_v56 = vpop.f32.mrf.mxu2 }
 0x8f6   :  { %1007 = vrot.lane.b32.xlu1 %v984_v56, %s3390_s6 }
 0x923   :  { %v992_v45 = vpop.permute.xlu1 %991 }
 0x924   :  { %v1012_v12 = vsel %vm370_vm15, %v3640_v3, %v992_v45  ;;  %v1105_v3 = vperm.slane %v3543_v55, 5 }
 0x92b   :  { %v1000_v9 = vpop.permute.xlu1 %999 }
 0x92c   :  { %v1014_v14 = vsel %vm144_vm0, %v1012_v12, %v1000_v9 }
 0x95b   :  { %v1072_v4 = vpop.xlane.xlu0 %1071 }
 0x95c   :  { %v1076_v7 = vmul.f32 %v1072_v4, %v3497_v20 }
 0x95e   :  { %v1078_v8 = vadd.f32 1e-12, %v1076_v7 }
 0x960   :  { %3162 = vrsqrt.f32 %v1078_v8  ;;  %vm1086_vm14 = vweird.f32 %v1078_v8 }
 0x966   :  { %v3163_v10 = vpop.eup %3162 }
 0x967   :  { %v1081_v13 = vmul.f32 %v3163_v10, %v1078_v8  ;;  %vm1087_vm13 = vweird.f32 %v3163_v10 }
 0x968   :  { %v1008_v15 = vpop.permute.xlu1 %1007  ;;  %vm1088_vm3 = vmor %vm1086_vm14, %vm1087_vm13 }
 0x969   :  { %v1082_v16 = vmul.f32 %v3163_v10, %v1081_v13  ;;  %v1017_v18 = vsel %vm1015_vm11, %v1014_v14, %v1008_v15 }
 0x96a   :  { %2992 = vmatmul.msk.f32.gmra.mxu3 %vm174_vm1, %v1017_v18 }
 0x96b   :  { %v1083_v0 = vmul.f32 0.5, %v1082_v16 }
 0x96d   :  { %v1084_v17 = vsub.f32 1.5, %v1083_v0 }
 0x96f   :  { %v1085_v19 = vmul.f32 %v3163_v10, %v1084_v17 }
 0x971   :  { %v1089_v22 = vsel %vm1088_vm3, %v3163_v10, %v1085_v19 }
 0x972   :  { %v1100_v23 = vmul.f32 %v1089_v22, %v1066_v52 }
 0x974   :  { %v1103_v24 = vmul.f32 %v1102_v21, %v1100_v23 }
 0x976   :  { %v1106_v25 = vadd.f32 %v1105_v3, %v1103_v24 }
 0x978   :  { %2993 = vmatmul.msk.f32.vlgmr.msrb.gmra.mxu0 %vm174_vm1, %v1106_v25 }
 0x9ed   :  { %v1053_v44 = vpop.f32.mrf.mxu3 }
 0x9ee   :  { %v1054_v46 = vadd.f32 %v1053_v44, %v1026_v36 }
 0x9f0   :  { %v1057_v11 = vadd.f32 %v1054_v46, %v3534_v6 }
 0x9f2   :  { %v1061_v47 = vsel %vm174_vm1, %v1057_v11, 0.0 }
 0x9f3   :  { %1062 = vadd.xlane.f32.xlu2 %v1061_v47 }
 0x9f5   :  { %v1140_v49 = vpop.f32.mrf.mxu0 }
 0x9f6   :  { %v1141_v62 = vadd.f32 %v1140_v49, %v1116_v48 }
 0x9f8   :  { %v1146_v51 = vmul.f32 %v1141_v62, %v1141_v62 }
 0x9fa   :  { %v1148_v50 = vmul.f32 %v1146_v51, %v1141_v62 }
 0x9fc   :  { %v1150_v52 = vmul.f32 0.044715, %v1148_v50 }
 0x9fe   :  { %v1152_v53 = vadd.f32 %v1150_v52, %v1141_v62 }
 0xa00   :  { %v1154_v54 = vmul.f32 0.7978846, %v1152_v53 }
 0xa02   :  { %3164 = vtanh.f32 %v1154_v54 }
 0xa08   :  { %v3165_v56 = vpop.eup %3164 }
 0xa09   :  { %v1158_v36 = vadd.f32 1.0, %v3165_v56 }
 0xa0b   :  { %v1160_v57 = vmul.f32 0.5, %v1158_v36 }
 0xa0d   :  { %v1162_v58 = vmul.f32 %v1160_v57, %v1141_v62 }
 0xa0f   :  { %1197 = vmatmul.f32.vlgmr.msra.gmra.mxu1 %v1162_v58 }
 0xa66   :  { %v1063_v6 = vpop.xlane.xlu2 %1062 }
 0xa67   :  { %v1065_v59 = vmul.f32 %v1063_v6, %v3497_v20 }
 0xa69   :  { %v1067_v60 = vsub.f32 %v1057_v11, %v1065_v59  ;;  %v3790_v59 = vld [vmem:[%s4330_s2 + $0x40] sm:$0xff] }
 0xa6b   :  { %v1069_v61 = vmul.f32 %v1067_v60, %v1067_v60 }
 0xa6d   :  { %v1073_v63 = vsel %vm174_vm1, %v1069_v61, 0.0 }
 0xa6e   :  { %1074 = vadd.xlane.f32.xlu1 %v1073_v63 }
 0xa8c   :  { %v1198_v2 = vpop.f32.mrf.mxu1 }
 0xa8d   :  { %v1199_v45 = vadd.f32 %v1198_v2, %v1180_v1  ;;  %v1250_v2 = vperm.slane %v3790_v59, 0 }
 0xa8f   :  { %v1204_v4 = vadd.f32 %v1199_v45, %v1106_v25 }
 0xa91   :  { %v1206_v7 = vsel %vm174_vm1, %v1204_v4, 0.0 }
 0xa92   :  { %1207 = vadd.xlane.f32.xlu2 %v1206_v7  ;;  %v1253_v7 = vperm.slane %v3790_v59, 1 }
 0xae1   :  { %v1075_v8 = vpop.xlane.xlu1 %1074 }
 0xae2   :  { %v1077_v9 = vmul.f32 %v1075_v8, %v3497_v20 }
 0xae4   :  { %v1079_v10 = vadd.f32 1e-12, %v1077_v9 }
 0xae6   :  { %3166 = vrsqrt.f32 %v1079_v10  ;;  %vm1096_vm5 = vweird.f32 %v1079_v10 }
 0xaec   :  { %v3167_v12 = vpop.eup %3166 }
 0xaed   :  { %v1091_v13 = vmul.f32 %v3167_v12, %v1079_v10  ;;  %vm1097_vm4 = vweird.f32 %v3167_v12 }
 0xaee   :  { %vm1098_vm6 = vmor %vm1096_vm5, %vm1097_vm4 }
 0xaef   :  { %v1092_v14 = vmul.f32 %v3167_v12, %v1091_v13 }
 0xaf1   :  { %v1093_v15 = vmul.f32 0.5, %v1092_v14 }
 0xaf3   :  { %v1094_v16 = vsub.f32 1.5, %v1093_v15  ;;  %v1273_v15 = vperm.slane %v3790_v59, 2 }
 0xaf5   :  { %v1095_v18 = vmul.f32 %v3167_v12, %v1094_v16 }
 0xaf7   :  { %v1099_v0 = vsel %vm1098_vm6, %v3167_v12, %v1095_v18 }
 0xaf8   :  { %v1101_v17 = vmul.f32 %v1099_v0, %v1067_v60  ;;  %v135_v0 = vld [vmem:[%s4330_s2 + $0x48] sm:$0xff] }
 0xafa   :  { %v1104_v19 = vmul.f32 %v1102_v21, %v1101_v17  ;;  %v1272_v21 = vld [vmem:[#allocation7 + $0xf8] sm:$0xff] }
 0xafb   :  { %1312 = vmatpush.msrb.mxu3 %v1272_v21 }
 0xafc   :  { %v3774_v22 = vadd.f32 %v1105_v3, %v1104_v19  ;;  %v1269_v3 = vld [vmem:[#allocation7 + $0xe0] sm:$0xff] }
 0xafd   :  { %1290 = vmatpush.msra.mxu2 %v1269_v3  ;;  %1313 = vmatpush.msrb.mxu3 %v1270_v30 }
 0xafe   :  { %2994 = vmatmul.msk.f32.gmra.mxu0 %vm174_vm1, %v3774_v22 }
 0xaff   :  { %1291 = vmatpush.msra.mxu2 %v1267_v31  ;;  %1314 = vmatpush.msrb.mxu3 %v1268_v29 }
 0xb01   :  { %1292 = vmatpush.msra.mxu2 %v1265_v32  ;;  %1315 = vmatpush.msrb.mxu3 %v1266_v33 }
 0xb03   :  { %1293 = vmatpush.msra.mxu2 %v1263_v34  ;;  %1316 = vmatpush.msrb.mxu3 %v1264_v38 }
 0xb05   :  { %v1208_v23 = vpop.xlane.xlu2 %1207  ;;  %1294 = vmatpush.msra.mxu2 %v1261_v39  ;;  %1317 = vmatpush.msrb.mxu3 %v1262_v40 }
 0xb06   :  { %v1212_v24 = vmul.f32 %v1208_v23, %v3497_v20 }
 0xb07   :  { %1295 = vmatpush.msra.mxu2 %v1259_v41  ;;  %1318 = vmatpush.msrb.mxu3 %v1260_v42 }
 0xb08   :  { %v3779_v25 = vsub.f32 %v1204_v4, %v1212_v24 }
 0xb09   :  { %1296 = vmatpush.msra.mxu2 %v1257_v35  ;;  %1319 = vmatpush.msrb.mxu3 %v1258_v43 }
 0xb0a   :  { %v1216_v26 = vmul.f32 %v3779_v25, %v3779_v25 }
 0xb0c   :  { %v1218_v27 = vsel %vm174_vm1, %v1216_v26, 0.0 }
 0xb0d   :  { %1219 = vadd.xlane.f32.xlu0 %v1218_v27 }
 0xb7b   :  { %v1143_v44 = vpop.f32.mrf.mxu0 }
 0xb7c   :  { %v1144_v46 = vadd.f32 %v1143_v44, %v1116_v48 }
 0xb7e   :  { %v1147_v11 = vmul.f32 %v1144_v46, %v1144_v46 }
 0xb80   :  { %v1149_v47 = vmul.f32 %v1147_v11, %v1144_v46  ;;  %v1220_v49 = vpop.xlane.xlu0 %1219 }
 0xb81   :  { %v1224_v62 = vmul.f32 %v1220_v49, %v3497_v20 }
 0xb82   :  { %v1151_v51 = vmul.f32 0.044715, %v1149_v47 }
 0xb83   :  { %v1226_v50 = vadd.f32 1e-12, %v1224_v62 }
 0xb84   :  { %v1153_v52 = vadd.f32 %v1151_v51, %v1144_v46 }
 0xb85   :  { %3168 = vrsqrt.f32 %v1226_v50  ;;  %vm1234_vm8 = vweird.f32 %v1226_v50 }
 0xb86   :  { %v1155_v53 = vmul.f32 0.7978846, %v1153_v52 }
 0xb88   :  { %3170 = vtanh.f32 %v1155_v53 }
 0xb8b   :  { %v3169_v54 = vpop.eup %3168 }
 0xb8c   :  { %v1229_v56 = vmul.f32 %v3169_v54, %v1226_v50  ;;  %vm1235_vm7 = vweird.f32 %v3169_v54 }
 0xb8d   :  { %vm1236_vm9 = vmor %vm1234_vm8, %vm1235_vm7 }
 0xb8e   :  { %v3171_v36 = vpop.eup %3170  ;;  %v1230_v57 = vmul.f32 %v3169_v54, %v1229_v56 }
 0xb8f   :  { %v1159_v58 = vadd.f32 1.0, %v3171_v36 }
 0xb90   :  { %v1231_v6 = vmul.f32 0.5, %v1230_v57 }
 0xb91   :  { %v1161_v48 = vmul.f32 0.5, %v1159_v58 }
 0xb92   :  { %v1232_v60 = vsub.f32 1.5, %v1231_v6 }
 0xb93   :  { %v1163_v61 = vmul.f32 %v1161_v48, %v1144_v46 }
 0xb94   :  { %v1233_v63 = vmul.f32 %v3169_v54, %v1232_v60 }
 0xb95   :  { %1200 = vmatmul.f32.gmra.mxu1 %v1163_v61 }
 0xb96   :  { %v1237_v45 = vsel %vm1236_vm9, %v3169_v54, %v1233_v63 }
 0xb97   :  { %v1248_v4 = vmul.f32 %v1237_v45, %v3779_v25 }
 0xb99   :  { %v1251_v8 = vmul.f32 %v1250_v2, %v1248_v4 }
 0xb9b   :  { %v3795_v9 = vadd.f32 %v1253_v7, %v1251_v8 }
 0xb9d   :  { %2995 = vmatmul.msk.f32.vlgmr.msra.gmra.mxu2 %vm174_vm1, %v3795_v9  ;;  %2997 = vmatmul.msk.f32.vlgmr.msrb.gmra.mxu3 %vm174_vm1, %v3795_v9 }
 0xc12   :  { %v1201_v10 = vpop.f32.mrf.mxu1 }
 0xc13   :  { %v1202_v12 = vadd.f32 %v1201_v10, %v1180_v1 }
 0xc15   :  { %v1205_v13 = vadd.f32 %v1202_v12, %v3774_v22  ;;  %v1274_v22 = vperm.slane %v135_v0, 2 }
 0xc17   :  { %v1209_v14 = vsel %vm174_vm1, %v1205_v13, 0.0 }
 0xc18   :  { %1210 = vadd.xlane.f32.xlu2 %v1209_v14 }
 0xc20   :  { %v1298_v16 = vpop.f32.mrf.mxu2  ;;  %v1321_v23 = vpop.f32.mrf.mxu3 }
 0xc21   :  { %v3806_v18 = vadd.f32 %v1298_v16, %v1273_v15  ;;  %v3821_v25 = vadd.f32 %v1321_v23, %v1274_v22 }
 0xc23   :  { %1477 = vrot.lane.b32.xlu1 %v3806_v18, %s3390_s6  ;;  %1328 = vrot.lane.b32.xlu0 %v3806_v18, %s3389_s28 }
 0xc2b   :  { %1635 = vrot.lane.b32.xlu1 %v3806_v18, %s3392_s30 }
 0xc33   :  { %1633 = vrot.lane.b32.xlu1 %v3806_v18, %s3394_s14 }
 0xc8b   :  { %v1211_v55 = vpop.xlane.xlu2 %1210 }
 0xc8c   :  { %v1213_v1 = vmul.f32 %v1211_v55, %v3497_v20 }
 0xc8e   :  { %v1215_v17 = vsub.f32 %v1205_v13, %v1213_v1 }
 0xc90   :  { %v1217_v19 = vmul.f32 %v1215_v17, %v1215_v17 }
 0xc92   :  { %v1221_v24 = vsel %vm174_vm1, %v1217_v19, 0.0 }
 0xc93   :  { %1222 = vadd.xlane.f32.xlu2 %v1221_v24 }
 0xc95   :  { %v1478_v26 = vpop.permute.xlu1 %1477  ;;  %v1329_v27 = vpop.permute.xlu0 %1328 }
 0xc96   :  { %2999 = vmatpush.xpose.msk.msra.mxu0 %vm370_vm15, %v1329_v27  ;;  %3005 = vmatpush.xpose.msk.msra.mxu3 %vm370_vm15, %v1478_v26 }
 0xc99   :  { %3000 = vmatmul.msk.f32.vlgmr.msra.gmra.mxu0 %vm370_vm15, %v3806_v18 }
 0xc9a   :  { %1447 = vmatpush.msrb.mxu0 %v3821_v25 }
 0xc9d   :  { %v1636_v28 = vpop.permute.xlu1 %1635 }
 0xc9e   :  { %3011 = vmatpush.xpose.msk.msrb.mxu3 %vm370_vm15, %v1636_v28 }
 0xca5   :  { %v1634_v57 = vpop.permute.xlu1 %1633 }
 0xd06   :  { %v1223_v21 = vpop.xlane.xlu2 %1222 }
 0xd07   :  { %v1225_v3 = vmul.f32 %v1223_v21, %v3497_v20 }
 0xd09   :  { %v1227_v30 = vadd.f32 1e-12, %v1225_v3 }
 0xd0b   :  { %3172 = vrsqrt.f32 %v1227_v30  ;;  %vm1244_vm12 = vweird.f32 %v1227_v30 }
 0xd11   :  { %v3173_v31 = vpop.eup %3172 }
 0xd12   :  { %v1239_v29 = vmul.f32 %v3173_v31, %v1227_v30  ;;  %vm1245_vm10 = vweird.f32 %v3173_v31 }
 0xd13   :  { %vm1246_vm13 = vmor %vm1244_vm12, %vm1245_vm10 }
 0xd14   :  { %v1240_v32 = vmul.f32 %v3173_v31, %v1239_v29 }
 0xd16   :  { %v1241_v33 = vmul.f32 0.5, %v1240_v32  ;;  %v1351_v34 = vpop.f32.mrf.mxu0 }
 0xd17   :  { %v1352_v38 = vadd.f32 %v1351_v34, %v3564_v5 }
 0xd18   :  { %v1242_v39 = vsub.f32 1.5, %v1241_v33 }
 0xd19   :  { %v1381_v40 = vsel %vm422_vm2, %v1352_v38, -inf }
 0xd1a   :  { %v1243_v41 = vmul.f32 %v3173_v31, %v1242_v39  ;;  %1382 = vmax.xlane.f32.xlu2 %v1381_v40 }
 0xd1c   :  { %v1247_v42 = vsel %vm1246_vm13, %v3173_v31, %v1243_v41 }
 0xd1d   :  { %v1249_v35 = vmul.f32 %v1247_v42, %v1215_v17 }
 0xd1f   :  { %v1252_v43 = vmul.f32 %v1250_v2, %v1249_v35 }
 0xd21   :  { %v3832_v44 = vadd.f32 %v1253_v7, %v1252_v43 }
 0xd23   :  { %2996 = vmatmul.msk.f32.gmra.mxu2 %vm174_vm1, %v3832_v44  ;;  %2998 = vmatmul.msk.f32.gmra.mxu3 %vm174_vm1, %v3832_v44 }
 0xd8d   :  { %v1383_v46 = vpop.xlane.xlu2 %1382 }
 0xd8e   :  { %v1387_v11 = vsub.f32 %v1352_v38, %v1383_v46 }
 0xd90   :  { %v1389_v47 = vmul.f32 1.442695, %v1387_v11 }
 0xd92   :  { %3174 = vpow2.f32 %v1389_v47 }
 0xd98   :  { %v3175_v49 = vpop.eup %3174 }
 0xd99   :  { %v1393_v62 = vsel %vm422_vm2, %v3175_v49, 0.0 }
 0xd9a   :  { %1394 = vadd.xlane.f32.xlu0 %v1393_v62 }
 0xda6   :  { %v1301_v51 = vpop.f32.mrf.mxu2  ;;  %v1324_v52 = vpop.f32.mrf.mxu3 }
 0xda7   :  { %v1302_v50 = vadd.f32 %v1301_v51, %v1273_v15  ;;  %v3852_v53 = vadd.f32 %v1324_v52, %v1274_v22 }
 0xda9   :  { %1661 = vrot.lane.b32.xlu1 %v1302_v50, %s3394_s14  ;;  %1355 = vrot.lane.b32.xlu2 %v1302_v50, %s3389_s28 }
 0xdae   :  { %1663 = vrot.lane.b32.xlu0 %v1302_v50, %s3392_s30 }
 0xdb1   :  { %1819 = vrot.lane.b32.xlu1 %v1302_v50, %s3383_s3  ;;  %1475 = vrot.lane.b32.xlu2 %v3806_v18, %s3391_s29 }
 0xdb6   :  { %1817 = vrot.lane.b32.xlu0 %v1302_v50, %s3393_s11 }
 0xdb9   :  { %1505 = vrot.lane.b32.xlu2 %v1302_v50, %s3390_s6 }
 0xdc1   :  { %1503 = vrot.lane.b32.xlu2 %v1302_v50, %s3391_s29 }
 0xdc9   :  { %1791 = vrot.lane.b32.xlu2 %v3806_v18, %s3383_s3 }
 0xdd1   :  { %1789 = vrot.lane.b32.xlu2 %v3806_v18, %s3393_s11 }
 0xe03   :  { %v1356_v54 = vpop.permute.xlu2 %1355 }
 0xe04   :  { %3001 = vmatpush.xpose.msk.msrb.mxu2 %vm370_vm15, %v1356_v54 }
 0xe07   :  { %3002 = vmatmul.msk.f32.vlgmr.msrb.gmra.mxu2 %vm370_vm15, %v1302_v50 }
 0xe08   :  { %1470 = vmatpush.msra.mxu2 %v3852_v53 }
 0xe0b   :  { %v1476_v56 = vpop.permute.xlu2 %1475 }
 0xe0c   :  { %3006 = vmatmul.msk.f32.vlgmr.msra.gmra.mxu3 %vm370_vm15, %v1476_v56 }
 0xe0d   :  { %v1395_v36 = vpop.xlane.xlu0 %1394 }
 0xe0e   :  { %3176 = vrcp.f32 %v1395_v36  ;;  %v1410_v61 = vand.u32 2147483648, %v1395_v36  ;;  %v1408_v2 = vand.u32 2147483647, %v1395_v36  ;;  %vm1404_vm3 = vweird.f32 %v1395_v36 }
 0xe10   :  { %v1411_v7 = vor.u32 1.1754944e-38, %v1410_v61  ;;  %vm1409_vm5 = vcmp.eq.f32.partialorder %v1408_v2, 8.507059e+37 }
 0xe13   :  { %v1506_v58 = vpop.permute.xlu2 %1505 }
 0xe14   :  { %v3177_v6 = vpop.eup %3176  ;;  %3007 = vmatpush.xpose.msk.msra.mxu0 %vm370_vm15, %v1506_v58  ;;  %3012 = vmatmul.msk.f32.vlgmr.msrb.gmra.mxu3 %vm370_vm15, %v1634_v57 }
 0xe15   :  { %v1400_v48 = vmul.f32 %v3177_v6, %v1395_v36  ;;  %vm1405_vm14 = vweird.f32 %v3177_v6 }
 0xe16   :  { %vm1406_vm4 = vmor %vm1404_vm3, %vm1405_vm14 }
 0xe17   :  { %v1401_v60 = vsub.f32 1.0, %v1400_v48 }
 0xe19   :  { %v1402_v63 = vmul.f32 %v3177_v6, %v1401_v60 }
 0xe1b   :  { %v1403_v45 = vadd.f32 %v3177_v6, %v1402_v63  ;;  %v1504_v4 = vpop.permute.xlu2 %1503  ;;  %v1662_v12 = vpop.permute.xlu1 %1661 }
 0xe1d   :  { %v1407_v8 = vsel %vm1406_vm4, %v3177_v6, %v1403_v45 }
 0xe1e   :  { %v1412_v10 = vsel %vm1409_vm5, %v1411_v7, %v1407_v8 }
 0xe1f   :  { %v1413_v13 = vmul.f32 %v3175_v49, %v1412_v10 }
 0xe20   :  { %v1664_v14 = vpop.permute.xlu0 %1663 }
 0xe21   :  { %3003 = vmatmul.msk.f32.vlgmr.msrb.gmra.mxu0 %vm422_vm2, %v1413_v13 }
 0xe22   :  { %3013 = vmatpush.xpose.msk.msrb.mxu0 %vm370_vm15, %v1664_v14 }
 0xe23   :  { %v1792_v15 = vpop.permute.xlu2 %1791  ;;  %v1820_v16 = vpop.permute.xlu1 %1819 }
 0xe24   :  { %3017 = vmatpush.xpose.msk.msra.mxu3 %vm370_vm15, %v1792_v15 }
 0xe28   :  { %v1818_v55 = vpop.permute.xlu0 %1817 }
 0xe29   :  { %3008 = vmatmul.msk.f32.vlgmr.msra.gmra.mxu0 %vm370_vm15, %v1504_v4 }
 0xe2a   :  { %3019 = vmatpush.xpose.msk.msra.mxu0 %vm370_vm15, %v1820_v16 }
 0xe2b   :  { %v1790_v18 = vpop.permute.xlu2 %1789 }
 0xe2c   :  { %3018 = vmatmul.msk.f32.vlgmr.msra.gmra.mxu3 %vm370_vm15, %v1790_v18 }
 0xe31   :  { %3014 = vmatmul.msk.f32.vlgmr.msrb.gmra.mxu0 %vm370_vm15, %v1662_v12 }
 0xe39   :  { %3020 = vmatmul.msk.f32.vlgmr.msra.gmra.mxu0 %vm370_vm15, %v1818_v55  ;;  %v3105_v55 = vpack.i.bf16 %v3852_v53, %v3821_v25 }
 0xe8a   :  { %v1378_v1 = vpop.f32.mrf.mxu2 }
 0xe8b   :  { %v1379_v0 = vadd.f32 %v1378_v1, %v3585_v37 }
 0xe8d   :  { %v1384_v17 = vsel %vm422_vm2, %v1379_v0, -inf }
 0xe8e   :  { %1385 = vmax.xlane.f32.xlu2 %v1384_v17 }
 0xe8f   :  { %v1500_v19 = vpop.f32.mrf.mxu3 }
 0xe90   :  { %v1501_v22 = vadd.f32 %v1500_v19, %v3564_v5 }
 0xe92   :  { %v1531_v23 = vsel %vm422_vm2, %v1501_v22, -inf }
 0xe93   :  { %1532 = vmax.xlane.f32.xlu1 %v1531_v23 }
 0xe97   :  { %v1658_v24 = vpop.f32.mrf.mxu3 }
 0xe98   :  { %v1659_v26 = vadd.f32 %v1658_v24, %v3564_v5 }
 0xe9a   :  { %v1689_v27 = vsel %vm422_vm2, %v1659_v26, -inf }
 0xe9b   :  { %1690 = vmax.xlane.f32.xlu2 %v1689_v27 }
 0xe9e   :  { %v3874_v28 = vpop.f32.mrf.mxu0 }
 0xea6   :  { %v1528_v21 = vpop.f32.mrf.mxu0 }
 0xea7   :  { %v1529_v3 = vadd.f32 %v1528_v21, %v3585_v37 }
 0xea9   :  { %v1534_v30 = vsel %vm422_vm2, %v1529_v3, -inf }
 0xeaa   :  { %1535 = vmax.xlane.f32.xlu0 %v1534_v30 }
 0xeae   :  { %v1686_v31 = vpop.f32.mrf.mxu0 }
 0xeaf   :  { %v1687_v29 = vadd.f32 %v1686_v31, %v3585_v37  ;;  %v1814_v32 = vpop.f32.mrf.mxu3 }
 0xeb0   :  { %v1815_v33 = vadd.f32 %v1814_v32, %v3564_v5 }
 0xeb1   :  { %v1692_v34 = vsel %vm422_vm2, %v1687_v29, -inf }
 0xeb2   :  { %1693 = vmax.xlane.f32.xlu1 %v1692_v34  ;;  %v1845_v38 = vsel %vm422_vm2, %v1815_v33, -inf }
 0xeb3   :  { %1846 = vmax.xlane.f32.xlu0 %v1845_v38 }
 0xeb6   :  { %v1842_v39 = vpop.f32.mrf.mxu0 }
 0xeb7   :  { %v1843_v40 = vadd.f32 %v1842_v39, %v3585_v37 }
 0xeb9   :  { %v1848_v41 = vsel %vm422_vm2, %v1843_v40, -inf }
 0xeba   :  { %1849 = vmax.xlane.f32.xlu2 %v1848_v41 }
 0xf01   :  { %v1386_v42 = vpop.xlane.xlu2 %1385 }
 0xf02   :  { %v1388_v35 = vsub.f32 %v1379_v0, %v1386_v42 }
 0xf04   :  { %v1391_v43 = vmul.f32 1.442695, %v1388_v35 }
 0xf06   :  { %3178 = vpow2.f32 %v1391_v43  ;;  %v1533_v46 = vpop.xlane.xlu1 %1532 }
 0xf07   :  { %v1537_v11 = vsub.f32 %v1501_v22, %v1533_v46 }
 0xf09   :  { %v1539_v47 = vmul.f32 1.442695, %v1537_v11 }
 0xf0b   :  { %3180 = vpow2.f32 %v1539_v47 }
 0xf0c   :  { %v3179_v5 = vpop.eup %3178 }
 0xf0d   :  { %v1396_v49 = vsel %vm422_vm2, %v3179_v5, 0.0 }
 0xf0e   :  { %1397 = vadd.xlane.f32.xlu1 %v1396_v49  ;;  %v1691_v62 = vpop.xlane.xlu2 %1690 }
 0xf0f   :  { %v1695_v51 = vsub.f32 %v1659_v26, %v1691_v62 }
 0xf11   :  { %v3885_v50 = vpop.eup %3180  ;;  %v1697_v37 = vmul.f32 1.442695, %v1695_v51 }
 0xf12   :  { %v1543_v52 = vsel %vm422_vm2, %v3885_v50, 0.0 }
 0xf13   :  { %3182 = vpow2.f32 %v1697_v37  ;;  %1544 = vadd.xlane.f32.xlu0 %v1543_v52 }
 0xf19   :  { %v3889_v54 = vpop.eup %3182 }
 0xf1a   :  { %v1701_v56 = vsel %vm422_vm2, %v3889_v54, 0.0 }
 0xf1b   :  { %1702 = vadd.xlane.f32.xlu1 %v1701_v56 }
 0xf1d   :  { %v1536_v36 = vpop.xlane.xlu0 %1535 }
 0xf1e   :  { %v1538_v61 = vsub.f32 %v1529_v3, %v1536_v36 }
 0xf20   :  { %v1541_v2 = vmul.f32 1.442695, %v1538_v61 }
 0xf25   :  { %v1694_v57 = vpop.xlane.xlu1 %1693 }
 0xf26   :  { %v1696_v58 = vsub.f32 %v1687_v29, %v1694_v57  ;;  %v1847_v6 = vpop.xlane.xlu0 %1846 }
 0xf27   :  { %v1851_v48 = vsub.f32 %v1815_v33, %v1847_v6 }
 0xf28   :  { %v1699_v60 = vmul.f32 1.442695, %v1696_v58 }
 0xf29   :  { %v1853_v63 = vmul.f32 1.442695, %v1851_v48 }
 0xf2a   :  { %3184 = vpow2.f32 %v1699_v60 }
 0xf2b   :  { %3186 = vpow2.f32 %v1853_v63 }
 0xf2c   :  { %3188 = vpow2.f32 %v1541_v2 }
 0xf2d   :  { %v1850_v45 = vpop.xlane.xlu2 %1849 }
 0xf2e   :  { %v1852_v4 = vsub.f32 %v1843_v40, %v1850_v45 }
 0xf30   :  { %v3893_v7 = vpop.eup %3184  ;;  %v1855_v8 = vmul.f32 1.442695, %v1852_v4 }
 0xf31   :  { %v3895_v10 = vpop.eup %3186  ;;  %v1704_v12 = vsel %vm422_vm2, %v3893_v7, 0.0 }
 0xf32   :  { %3190 = vpow2.f32 %v1855_v8  ;;  %1705 = vadd.xlane.f32.xlu0 %v1704_v12  ;;  %v1857_v13 = vsel %vm422_vm2, %v3895_v10, 0.0  ;;  %v3901_v14 = vpop.eup %3188 }
 0xf33   :  { %1858 = vadd.xlane.f32.xlu2 %v1857_v13  ;;  %v1546_v18 = vsel %vm422_vm2, %v3901_v14, 0.0 }
 0xf38   :  { %v3903_v15 = vpop.eup %3190 }
 0xf39   :  { %v1860_v16 = vsel %vm422_vm2, %v3903_v15, 0.0 }
 0xf3a   :  { %1861 = vadd.xlane.f32.xlu1 %v1860_v16 }
 0xf3b   :  { %1547 = vadd.xlane.f32.xlu2 %v1546_v18 }
 0xf46   :  { %3106 = vrot.lane.b32.xlu0 %v3105_v55, %s3391_s29 }
 0xf53   :  { %3111 = vrot.lane.b32.xlu2 %v3105_v55, %s3394_s14  ;;  %3116 = vrot.lane.b32.xlu1 %v3105_v55, %s3393_s11 }
 0xf81   :  { %v1398_v1 = vpop.xlane.xlu1 %1397 }
 0xf82   :  { %3192 = vrcp.f32 %v1398_v1  ;;  %v1425_v22 = vand.u32 2147483648, %v1398_v1  ;;  %v1423_v24 = vand.u32 2147483647, %v1398_v1  ;;  %vm1419_vm7 = vweird.f32 %v1398_v1 }
 0xf84   :  { %v1426_v27 = vor.u32 1.1754944e-38, %v1425_v22  ;;  %vm1424_vm9 = vcmp.eq.f32.partialorder %v1423_v24, 8.507059e+37 }
 0xf86   :  { %v1545_v3 = vpop.xlane.xlu0 %1544 }
 0xf87   :  { %3194 = vrcp.f32 %v1545_v3  ;;  %v1560_v35 = vand.u32 2147483648, %v1545_v3  ;;  %vm1554_vm12 = vweird.f32 %v1545_v3  ;;  %v1558_v11 = vand.u32 2147483647, %v1545_v3 }
 0xf88   :  { %v3193_v0 = vpop.eup %3192 }
 0xf89   :  { %v1415_v17 = vmul.f32 %v3193_v0, %v1398_v1  ;;  %vm1420_vm6 = vweird.f32 %v3193_v0  ;;  %v1561_v51 = vor.u32 1.1754944e-38, %v1560_v35  ;;  %vm1559_vm14 = vcmp.eq.f32.partialorder %v1558_v11, 8.507059e+37 }
 0xf8a   :  { %vm1421_vm8 = vmor %vm1419_vm7, %vm1420_vm6 }
 0xf8b   :  { %v1416_v19 = vsub.f32 1.0, %v1415_v17 }
 0xf8d   :  { %v1417_v23 = vmul.f32 %v3193_v0, %v1416_v19  ;;  %v3195_v30 = vpop.eup %3194 }
 0xf8e   :  { %v3915_v31 = vpop.xlane.xlu1 %1702  ;;  %v1550_v29 = vmul.f32 %v3195_v30, %v1545_v3  ;;  %vm1555_vm10 = vweird.f32 %v3195_v30 }
 0xf8f   :  { %v1418_v26 = vadd.f32 %v3193_v0, %v1417_v23  ;;  %3196 = vrcp.f32 %v3915_v31  ;;  %vm1556_vm13 = vmor %vm1554_vm12, %vm1555_vm10  ;;  %vm1712_vm3 = vweird.f32 %v3915_v31  ;;  %v1716_v48 = vand.u32 2147483647, %v3915_v31 }
 0xf90   :  { %v1551_v32 = vsub.f32 1.0, %v1550_v29  ;;  %v1718_v60 = vand.u32 2147483648, %v3915_v31 }
 0xf91   :  { %v1422_v25 = vsel %vm1421_vm8, %v3193_v0, %v1418_v26  ;;  %vm1717_vm8 = vcmp.eq.f32.partialorder %v1716_v48, 8.507059e+37 }
 0xf92   :  { %v1427_v53 = vsel %vm1424_vm9, %v1426_v27, %v1422_v25  ;;  %v1552_v39 = vmul.f32 %v3195_v30, %v1551_v32  ;;  %v1719_v26 = vor.u32 1.1754944e-38, %v1718_v60 }
 0xf93   :  { %v1428_v21 = vmul.f32 %v3179_v5, %v1427_v53 }
 0xf94   :  { %v1553_v41 = vadd.f32 %v3195_v30, %v1552_v39 }
 0xf95   :  { %3004 = vmatmul.msk.f32.vlgmr.msra.gmra.mxu2 %vm422_vm2, %v1428_v21  ;;  %v3923_v38 = vpop.eup %3196 }
 0xf96   :  { %v1708_v40 = vmul.f32 %v3923_v38, %v3915_v31  ;;  %v1557_v49 = vsel %vm1556_vm13, %v3195_v30, %v1553_v41  ;;  %vm1713_vm4 = vweird.f32 %v3923_v38 }
 0xf97   :  { %v1562_v37 = vsel %vm1559_vm14, %v1561_v51, %v1557_v49  ;;  %vm3955_vm6 = vmor %vm1712_vm3, %vm1713_vm4 }
 0xf98   :  { %v1709_v47 = vsub.f32 1.0, %v1708_v40  ;;  %v1563_v63 = vmul.f32 %v3885_v50, %v1562_v37 }
 0xf9a   :  { %v1710_v52 = vmul.f32 %v3923_v38, %v1709_v47 }
 0xf9c   :  { %v1711_v2 = vadd.f32 %v3923_v38, %v1710_v52 }
 0xf9e   :  { %v1715_v22 = vsel %vm3955_vm6, %v3923_v38, %v1711_v2  ;;  %v1981_v2 = vld [vmem:[#allocation9 + $0x68] sm:$0xff] }
 0xf9f   :  { %v1720_v3 = vsel %vm1717_vm8, %v1719_v26, %v1715_v22 }
 0xfa5   :  { %v3918_v33 = vpop.xlane.xlu0 %1705 }
 0xfa6   :  { %v3920_v34 = vpop.xlane.xlu2 %1858  ;;  %3198 = vrcp.f32 %v3918_v33  ;;  %vm1727_vm13 = vweird.f32 %v3918_v33  ;;  %v1733_v30 = vand.u32 2147483648, %v3918_v33  ;;  %v1731_v29 = vand.u32 2147483647, %v3918_v33 }
 0xfa7   :  { %3200 = vrcp.f32 %v3920_v34  ;;  %v1872_v39 = vand.u32 2147483647, %v3920_v34  ;;  %v1874_v40 = vand.u32 2147483648, %v3920_v34  ;;  %vm1868_vm4 = vweird.f32 %v3920_v34 }
 0xfa8   :  { %vm1732_vm6 = vcmp.eq.f32.partialorder %v1731_v29, 8.507059e+37 }
 0xfa9   :  { %v1875_v47 = vor.u32 1.1754944e-38, %v1874_v40 }
 0xfac   :  { %v3928_v42 = vpop.eup %3198 }
 0xfad   :  { %v3930_v43 = vpop.xlane.xlu1 %1861  ;;  %v3932_v5 = vpop.eup %3200  ;;  %v1723_v62 = vmul.f32 %v3928_v42, %v3918_v33  ;;  %vm1728_vm9 = vweird.f32 %v3928_v42  ;;  %v1721_v33 = vmul.f32 %v3889_v54, %v1720_v3 }
 0xfae   :  { %v1548_v46 = vpop.xlane.xlu2 %1547  ;;  %v1864_v56 = vmul.f32 %v3932_v5, %v3920_v34  ;;  %vm1869_vm14 = vweird.f32 %v3932_v5  ;;  %vm1729_vm3 = vmor %vm1727_vm13, %vm1728_vm9  ;;  %v1889_v54 = vand.u32 2147483648, %v3930_v43  ;;  %vm1883_vm9 = vweird.f32 %v3930_v43 }
 0xfaf   :  { %3202 = vrcp.f32 %v1548_v46  ;;  %v1724_v57 = vsub.f32 1.0, %v1723_v62  ;;  %v1573_v8 = vand.u32 2147483647, %v1548_v46  ;;  %v1575_v16 = vand.u32 2147483648, %v1548_v46 }
 0xfb0   :  { %3204 = vrcp.f32 %v3930_v43  ;;  %v1865_v45 = vsub.f32 1.0, %v1864_v56  ;;  %vm1569_vm7 = vweird.f32 %v1548_v46  ;;  %v1887_v37 = vand.u32 2147483647, %v3930_v43 }
 0xfb1   :  { %v1725_v13 = vmul.f32 %v3928_v42, %v1724_v57  ;;  %v1576_v27 = vor.u32 1.1754944e-38, %v1575_v16  ;;  %vm1574_vm12 = vcmp.eq.f32.partialorder %v1573_v8, 8.507059e+37  ;;  %v1978_v8 = vld [vmem:[#allocation9 + $0x50] sm:$0xff] }
 0xfb2   :  { %v1866_v23 = vmul.f32 %v3932_v5, %v1865_v45  ;;  %v1980_v45 = vld [vmem:[#allocation9 + $0x60] sm:$0xff] }
 0xfb3   :  { %v1726_v25 = vadd.f32 %v3928_v42, %v1725_v13  ;;  %v1976_v13 = vld [vmem:[#allocation9 + $0x40] sm:$0xff] }
 0xfb4   :  { %v1867_v32 = vadd.f32 %v3932_v5, %v1866_v23 }
 0xfb5   :  { %v3203_v36 = vpop.eup %3202  ;;  %v1730_v41 = vsel %vm1729_vm3, %v3928_v42, %v1726_v25 }
 0xfb6   :  { %v1565_v58 = vmul.f32 %v3203_v36, %v1548_v46  ;;  %v3941_v6 = vpop.eup %3204  ;;  %v3112_v61 = vpop.permute.xlu2 %3111  ;;  %vm1570_vm5 = vweird.f32 %v3203_v36  ;;  %v1734_v46 = vor.u32 1.1754944e-38, %v1733_v30 }
 0xfb7   :  { %v1879_v1 = vmul.f32 %v3941_v6, %v3930_v43  ;;  %v3114_v17 = vunpack.i.h.bf16 %v3112_v61  ;;  %v3113_v19 = vunpack.i.l.bf16 %v3112_v61  ;;  %vm1571_vm10 = vmor %vm1569_vm7, %vm1570_vm5  ;;  %vm1873_vm7 = vcmp.eq.f32.partialorder %v1872_v39, 8.507059e+37 }
 0xfb8   :  { %v1566_v4 = vsub.f32 1.0, %v1565_v58  ;;  %v3107_v12 = vpop.permute.xlu0 %3106  ;;  %vm1870_vm5 = vmor %vm1868_vm4, %vm1869_vm14  ;;  %v1735_v11 = vsel %vm1732_vm6, %v1734_v46, %v1730_v41  ;;  %vm1884_vm8 = vweird.f32 %v3941_v6 }
 0xfb9   :  { %v3109_v18 = vunpack.i.h.bf16 %v3107_v12  ;;  %v3108_v55 = vunpack.i.l.bf16 %v3107_v12  ;;  %v1880_v53 = vsub.f32 1.0, %v1879_v1  ;;  %v1977_v12 = vld [vmem:[#allocation9 + $0x48] sm:$0xff] }
 0xfba   :  { %v1567_v0 = vmul.f32 %v3203_v36, %v1566_v4  ;;  %v1979_v4 = vld [vmem:[#allocation9 + $0x58] sm:$0xff] }
 0xfbb   :  { %1601 = vmatpush.msrb.mxu1 %v3108_v55  ;;  %1628 = vmatpush.msrb.mxu2 %v3109_v18  ;;  %v1881_v35 = vmul.f32 %v3941_v6, %v1880_v53 }
 0xfbc   :  { %v1568_v24 = vadd.f32 %v3203_v36, %v1567_v0  ;;  %3009 = vmatmul.msk.f32.vlgmr.msrb.gmra.mxu1 %vm422_vm2, %v1563_v63  ;;  %v1982_v63 = vld [vmem:[#allocation9 + $0x70] sm:$0xff] }
 0xfbd   :  { %1784 = vmatpush.msra.mxu2 %v3114_v17  ;;  %1758 = vmatpush.msra.mxu1 %v3113_v19  ;;  %v1882_v42 = vadd.f32 %v3941_v6, %v1881_v35 }
 0xfbe   :  { %v1572_v21 = vsel %vm1571_vm10, %v3203_v36, %v1568_v24  ;;  %vm1885_vm10 = vmor %vm1883_vm9, %vm1884_vm8  ;;  %v1890_v36 = vor.u32 1.1754944e-38, %v1889_v54 }
 0xfbf   :  { %v1577_v31 = vsel %vm1574_vm12, %v1576_v27, %v1572_v21  ;;  %v1886_v52 = vsel %vm1885_vm10, %v3941_v6, %v1882_v42  ;;  %vm1888_vm12 = vcmp.eq.f32.partialorder %v1887_v37, 8.507059e+37  ;;  %v2070_v42 = vld [vmem:[#allocation10 + $0x58] sm:$0xff] }
 0xfc0   :  { %v1578_v38 = vmul.f32 %v3901_v14, %v1577_v31  ;;  %v1871_v14 = vsel %vm1870_vm5, %v3932_v5, %v1867_v32  ;;  %v1736_v5 = vmul.f32 %v3893_v7, %v1735_v11  ;;  %v1891_v57 = vsel %vm1888_vm12, %v1890_v36, %v1886_v52  ;;  %v2073_v11 = vld [vmem:[#allocation10 + $0x70] sm:$0xff]  ;;  %v3042_v52 = vld [vmem:[%s4337_s9 + $0xf8] sm:$0xff] }
 0xfc1   :  { %v1876_v51 = vsel %vm1873_vm7, %v1875_v47, %v1871_v14  ;;  %v1892_v58 = vmul.f32 %v3903_v15, %v1891_v57  ;;  %v1983_v15 = vld [vmem:[#allocation9 + $0x78] sm:$0xff]  ;;  %v2072_v47 = vld [vmem:[#allocation10 + $0x68] sm:$0xff] }
 0xfc2   :  { %3010 = vmatmul.msk.f32.vlgmr.msrb.gmra.mxu2 %vm422_vm2, %v1578_v38  ;;  %v1877_v56 = vmul.f32 %v3895_v10, %v1876_v51  ;;  %1999 = vmatpush.msrb.mxu3 %v1983_v15  ;;  %v2067_v51 = vld [vmem:[#allocation10 + $0x40] sm:$0xff]  ;;  %v3040_v57 = vld [vmem:[%s4337_s9 + $0xe8] sm:$0xff]  ;;  %v2060_v15 = vperm.slane %v3790_v59, 4 }
 0xfc4   :  { %3015 = vmatmul.msk.f32.vlgmr.msra.gmra.mxu1 %vm422_vm2, %v1721_v33  ;;  %2000 = vmatpush.msrb.mxu3 %v1982_v63 }
 0xfc5   :  { %v3117_v49 = vpop.permute.xlu1 %3116 }
 0xfc6   :  { %v3119_v34 = vunpack.i.h.bf16 %v3117_v49  ;;  %v3118_v62 = vunpack.i.l.bf16 %v3117_v49  ;;  %2001 = vmatpush.msrb.mxu3 %v1981_v2  ;;  %v2071_v49 = vld [vmem:[#allocation10 + $0x60] sm:$0xff] }
 0xfc8   :  { %1914 = vmatpush.msrb.mxu1 %v3118_v62  ;;  %1940 = vmatpush.msrb.mxu2 %v3119_v34  ;;  %v2069_v34 = vld [vmem:[#allocation10 + $0x50] sm:$0xff]  ;;  %v2068_v62 = vld [vmem:[#allocation10 + $0x48] sm:$0xff] }
 0xfc9   :  { %2002 = vmatpush.msrb.mxu3 %v1980_v45 }
 0xfca   :  { %3016 = vmatmul.msk.f32.vlgmr.msra.gmra.mxu2 %vm422_vm2, %v1736_v5  ;;  %2141 = vmatpush.msra.mxu1 %v3042_v52 }
 0xfcb   :  { %2003 = vmatpush.msrb.mxu3 %v1979_v4  ;;  %v2063_v4 = vperm.slane %v3790_v59, 5 }
 0xfcc   :  { %3021 = vmatmul.msk.f32.vlgmr.msrb.gmra.mxu1 %vm422_vm2, %v1877_v56  ;;  %v3041_v56 = vld [vmem:[%s4337_s9 + $0xf0] sm:$0xff] }
 0xfcd   :  { %2004 = vmatpush.msrb.mxu3 %v1978_v8  ;;  %2142 = vmatpush.msra.mxu1 %v3041_v56  ;;  %v3222_v56 = vld [vmem:[%s4330_s2 + $0x40] sm:$0xff] }
 0xfcf   :  { %2005 = vmatpush.msrb.mxu3 %v1977_v12  ;;  %2143 = vmatpush.msra.mxu1 %v3040_v57 }
 0xfd1   :  { %2006 = vmatpush.msrb.mxu3 %v1976_v13 }
 0xfd2   :  { %3022 = vmatmul.msk.f32.vlgmr.msrb.gmra.mxu2 %vm422_vm2, %v1892_v58 }
0x1018   :  { %v1472_v7 = vpop.f32.mrf.mxu2 }
0x1039   :  { %v1603_v43 = vpop.f32.mrf.mxu1 }
0x103a   :  { %1947 = vrot.lane.b32.xlu0 %v1603_v43, %s3383_s3 }
0x1041   :  { %v1760_v48 = vpop.f32.mrf.mxu1 }
0x1042   :  { %1955 = vrot.lane.b32.xlu2 %v1760_v48, %s3392_s30 }
0x1045   :  { %v1630_v6 = vpop.f32.mrf.mxu2 }
0x1046   :  { %1949 = vrot.lane.b32.xlu1 %v1630_v6, %s3383_s3 }
0x1049   :  { %v1916_v10 = vpop.f32.mrf.mxu1 }
0x104a   :  { %1963 = vrot.lane.b32.xlu0 %v1916_v10, %s3390_s6 }
0x104d   :  { %v1786_v60 = vpop.f32.mrf.mxu2 }
0x104e   :  { %1957 = vrot.lane.b32.xlu2 %v1786_v60, %s3392_s30 }
0x1055   :  { %v1942_v61 = vpop.f32.mrf.mxu2 }
0x1056   :  { %1965 = vrot.lane.b32.xlu0 %v1942_v61, %s3390_s6 }
0x109c   :  { %v1956_v55 = vpop.permute.xlu2 %1955 }
0x10a8   :  { %v1958_v22 = vpop.permute.xlu2 %1957 }
0x10ac   :  { %v1948_v16 = vpop.permute.xlu0 %1947 }
0x10ad   :  { %v1969_v18 = vsel %vm370_vm15, %v3874_v28, %v1948_v16  ;;  %v1984_v28 = vperm.slane %v3790_v59, 3 }
0x10ae   :  { %v1971_v1 = vsel %vm144_vm0, %v1969_v18, %v1956_v55 }
0x10b8   :  { %v1950_v50 = vpop.permute.xlu1 %1949 }
0x10b9   :  { %v1970_v19 = vsel %vm370_vm15, %v1472_v7, %v1950_v50 }
0x10ba   :  { %v1972_v24 = vsel %vm144_vm0, %v1970_v19, %v1958_v22  ;;  %v3039_v22 = vld [vmem:[%s4337_s9 + $0xe0] sm:$0xff] }
0x10bb   :  { %2144 = vmatpush.msra.mxu1 %v3039_v22  ;;  %v2216_v22 = vld [vmem:[#allocation6] sm:$0xff] }
0x10bc   :  { %v1964_v0 = vpop.permute.xlu0 %1963 }
0x10bd   :  { %v1973_v17 = vsel %vm1015_vm11, %v1971_v1, %v1964_v0 }
0x10be   :  { %3023 = vmatmul.msk.f32.vlgmr.msrb.gmra.mxu3 %vm174_vm1, %v1973_v17 }
0x10c8   :  { %v1966_v23 = vpop.permute.xlu0 %1965 }
0x10c9   :  { %v1974_v26 = vsel %vm1015_vm11, %v1972_v24, %v1966_v23  ;;  %v3038_v23 = vld [vmem:[%s4337_s9 + $0xd8] sm:$0xff]  ;;  %v3037_v24 = vld [vmem:[%s4337_s9 + $0xd0] sm:$0xff] }
0x10ca   :  { %3024 = vmatmul.msk.f32.gmra.mxu3 %vm174_vm1, %v1974_v26  ;;  %2145 = vmatpush.msra.mxu1 %v3038_v23  ;;  %v3036_v26 = vld [vmem:[%s4337_s9 + $0xc8] sm:$0xff] }
0x10cc   :  { %2146 = vmatpush.msra.mxu1 %v3037_v24 }
0x10ce   :  { %2147 = vmatpush.msra.mxu1 %v3036_v26 }
0x1141   :  { %v2008_v27 = vpop.f32.mrf.mxu3 }
0x1142   :  { %v2009_v25 = vadd.f32 %v2008_v27, %v1984_v28  ;;  %v3034_v27 = vld [vmem:[%s4337_s9 + $0xb8] sm:$0xff] }
0x1144   :  { %v2014_v53 = vadd.f32 %v2009_v25, %v3795_v9  ;;  %v3033_v25 = vld [vmem:[%s4337_s9 + $0xb0] sm:$0xff] }
0x1146   :  { %v2016_v21 = vsel %vm174_vm1, %v2014_v53, 0.0 }
0x1147   :  { %2017 = vadd.xlane.f32.xlu1 %v2016_v21  ;;  %v3031_v21 = vld [vmem:[%s4337_s9 + $0xa0] sm:$0xff] }
0x114d   :  { %v2011_v3 = vpop.f32.mrf.mxu3 }
0x114e   :  { %v2012_v30 = vadd.f32 %v2011_v3, %v1984_v28  ;;  %v3035_v28 = vld [vmem:[%s4337_s9 + $0xc0] sm:$0xff]  ;;  %v3030_v3 = vld [vmem:[%s4337_s9 + $0x98] sm:$0xff] }
0x114f   :  { %2148 = vmatpush.msra.mxu1 %v3035_v28 }
0x1150   :  { %v2015_v31 = vadd.f32 %v2012_v30, %v3832_v44  ;;  %v2074_v44 = vld [vmem:[#allocation10 + $0x78] sm:$0xff]  ;;  %v3029_v30 = vld [vmem:[%s4337_s9 + $0x90] sm:$0xff] }
0x1151   :  { %2090 = vmatpush.msrb.mxu0 %v2074_v44  ;;  %2149 = vmatpush.msra.mxu1 %v3034_v27 }
0x1152   :  { %v2019_v29 = vsel %vm174_vm1, %v2015_v31, 0.0 }
0x1153   :  { %2020 = vadd.xlane.f32.xlu2 %v2019_v29  ;;  %2091 = vmatpush.msrb.mxu0 %v2073_v11  ;;  %v3027_v29 = vld [vmem:[%s4337_s9 + $0x80] sm:$0xff] }
0x1154   :  { %2150 = vmatpush.msra.mxu1 %v3033_v25 }
0x1155   :  { %2092 = vmatpush.msrb.mxu0 %v2072_v47 }
0x1157   :  { %2093 = vmatpush.msrb.mxu0 %v2071_v49 }
0x1159   :  { %2094 = vmatpush.msrb.mxu0 %v2070_v42 }
0x115b   :  { %2095 = vmatpush.msrb.mxu0 %v2069_v34 }
0x115d   :  { %2096 = vmatpush.msrb.mxu0 %v2068_v62 }
0x115f   :  { %2097 = vmatpush.msrb.mxu0 %v2067_v51 }
0x11ba   :  { %v2018_v32 = vpop.xlane.xlu1 %2017 }
0x11bb   :  { %v2022_v38 = vmul.f32 %v2018_v32, %v3497_v20  ;;  %v2075_v32 = vperm.slane %v3790_v59, 6 }
0x11bd   :  { %v2024_v39 = vsub.f32 %v2014_v53, %v2022_v38  ;;  %v3032_v53 = vld [vmem:[%s4337_s9 + $0xa8] sm:$0xff] }
0x11be   :  { %2151 = vmatpush.msra.mxu1 %v3032_v53 }
0x11bf   :  { %v2026_v40 = vmul.f32 %v2024_v39, %v2024_v39 }
0x11c0   :  { %2152 = vmatpush.msra.mxu1 %v3031_v21 }
0x11c1   :  { %v2028_v41 = vsel %vm174_vm1, %v2026_v40, 0.0 }
0x11c2   :  { %2029 = vadd.xlane.f32.xlu0 %v2028_v41  ;;  %2153 = vmatpush.msra.mxu1 %v3030_v3 }
0x11c4   :  { %2154 = vmatpush.msra.mxu1 %v3029_v30 }
0x11c6   :  { %v2021_v35 = vpop.xlane.xlu2 %2020 }
0x11c7   :  { %v2023_v9 = vmul.f32 %v2021_v35, %v3497_v20 }
0x11c9   :  { %v2025_v33 = vsub.f32 %v2015_v31, %v2023_v9  ;;  %v3028_v31 = vld [vmem:[%s4337_s9 + $0x88] sm:$0xff] }
0x11ca   :  { %2155 = vmatpush.msra.mxu1 %v3028_v31  ;;  %v136_v31 = vld [vmem:[%s4330_s2 + $0x60] sm:$0xff] }
0x11cb   :  { %v2027_v46 = vmul.f32 %v2025_v33, %v2025_v33 }
0x11cc   :  { %2156 = vmatpush.msra.mxu1 %v3027_v29 }
0x11cd   :  { %v2031_v14 = vsel %vm174_vm1, %v2027_v46, 0.0 }
0x11ce   :  { %2032 = vadd.xlane.f32.xlu1 %v2031_v14 }
0x1235   :  { %v2030_v54 = vpop.xlane.xlu0 %2029 }
0x1236   :  { %v2034_v37 = vmul.f32 %v2030_v54, %v3497_v20 }
0x1238   :  { %v2036_v5 = vadd.f32 1e-12, %v2034_v37 }
0x123a   :  { %3206 = vrsqrt.f32 %v2036_v5  ;;  %vm2044_vm14 = vweird.f32 %v2036_v5 }
0x1240   :  { %v3207_v36 = vpop.eup %3206 }
0x1241   :  { %v2039_v58 = vmul.f32 %v3207_v36, %v2036_v5  ;;  %v2033_v43 = vpop.xlane.xlu1 %2032  ;;  %vm2045_vm13 = vweird.f32 %v3207_v36 }
0x1242   :  { %v2035_v7 = vmul.f32 %v2033_v43, %v3497_v20  ;;  %vm2046_vm3 = vmor %vm2044_vm14, %vm2045_vm13 }
0x1243   :  { %v2040_v48 = vmul.f32 %v3207_v36, %v2039_v58 }
0x1244   :  { %v2037_v6 = vadd.f32 1e-12, %v2035_v7 }
0x1245   :  { %v2041_v10 = vmul.f32 0.5, %v2040_v48 }
0x1246   :  { %3208 = vrsqrt.f32 %v2037_v6  ;;  %vm2054_vm5 = vweird.f32 %v2037_v6 }
0x1247   :  { %v2042_v60 = vsub.f32 1.5, %v2041_v10 }
0x1249   :  { %v2043_v61 = vmul.f32 %v3207_v36, %v2042_v60 }
0x124b   :  { %v2047_v63 = vsel %vm2046_vm3, %v3207_v36, %v2043_v61  ;;  %v2140_v36 = vperm.slane %v3222_v56, 7 }
0x124c   :  { %v3209_v2 = vpop.eup %3208  ;;  %v2058_v45 = vmul.f32 %v2047_v63, %v2024_v39 }
0x124d   :  { %v2049_v8 = vmul.f32 %v3209_v2, %v2037_v6  ;;  %vm2055_vm4 = vweird.f32 %v3209_v2 }
0x124e   :  { %v2061_v12 = vmul.f32 %v2060_v15, %v2058_v45  ;;  %vm2056_vm6 = vmor %vm2054_vm5, %vm2055_vm4 }
0x124f   :  { %v2050_v13 = vmul.f32 %v3209_v2, %v2049_v8 }
0x1250   :  { %v4033_v16 = vadd.f32 %v2063_v4, %v2061_v12 }
0x1251   :  { %v2051_v18 = vmul.f32 0.5, %v2050_v13 }
0x1252   :  { %3025 = vmatmul.msk.f32.vlgmr.msrb.gmra.mxu0 %vm174_vm1, %v4033_v16 }
0x1253   :  { %v2052_v55 = vsub.f32 1.5, %v2051_v18  ;;  %v2223_v18 = vld [vmem:[#allocation6 + $0x38] sm:$0xff] }
0x1254   :  { %2239 = vmatpush.msra.mxu2 %v2223_v18  ;;  %v2326_v18 = vld [vmem:[%s4333_s5 + $0xb0] sm:$0xff] }
0x1255   :  { %v2053_v1 = vmul.f32 %v3209_v2, %v2052_v55  ;;  %v2222_v55 = vld [vmem:[#allocation6 + $0x30] sm:$0xff] }
0x1256   :  { %2240 = vmatpush.msra.mxu2 %v2222_v55  ;;  %v2320_v55 = vld [vmem:[%s4333_s5 + $0x80] sm:$0xff] }
0x1257   :  { %v2057_v0 = vsel %vm2056_vm6, %v3209_v2, %v2053_v1  ;;  %v2221_v1 = vld [vmem:[#allocation6 + $0x28] sm:$0xff] }
0x1258   :  { %v2059_v17 = vmul.f32 %v2057_v0, %v2025_v33  ;;  %2241 = vmatpush.msra.mxu2 %v2221_v1  ;;  %v2220_v0 = vld [vmem:[#allocation6 + $0x20] sm:$0xff]  ;;  %v2321_v1 = vld [vmem:[%s4333_s5 + $0x88] sm:$0xff] }
0x125a   :  { %v2062_v50 = vmul.f32 %v2060_v15, %v2059_v17  ;;  %2242 = vmatpush.msra.mxu2 %v2220_v0  ;;  %v2219_v17 = vld [vmem:[#allocation6 + $0x18] sm:$0xff]  ;;  %v2322_v0 = vld [vmem:[%s4333_s5 + $0x90] sm:$0xff] }
0x125c   :  { %v4037_v19 = vadd.f32 %v2063_v4, %v2062_v50  ;;  %2243 = vmatpush.msra.mxu2 %v2219_v17  ;;  %v2218_v50 = vld [vmem:[#allocation6 + $0x10] sm:$0xff] }
0x125d   :  { %v2316_v17 = vld [vmem:[%s4333_s5 + $0x60] sm:$0xff] }
0x125e   :  { %3026 = vmatmul.msk.f32.gmra.mxu0 %vm174_vm1, %v4037_v19  ;;  %2244 = vmatpush.msra.mxu2 %v2218_v50  ;;  %v2317_v50 = vld [vmem:[%s4333_s5 + $0x68] sm:$0xff] }
0x12cf   :  { %v2099_v38 = vpop.f32.mrf.mxu0 }
0x12d0   :  { %v2100_v39 = vadd.f32 %v2099_v38, %v2075_v32  ;;  %v2210_v38 = vperm.slane %v136_v31, 0 }
0x12d2   :  { %v2105_v40 = vmul.f32 %v2100_v39, %v2100_v39 }
0x12d4   :  { %v2107_v41 = vmul.f32 %v2105_v40, %v2100_v39 }
0x12d6   :  { %v2109_v35 = vmul.f32 0.044715, %v2107_v41 }
0x12d8   :  { %v2111_v9 = vadd.f32 %v2109_v35, %v2100_v39  ;;  %v2213_v35 = vperm.slane %v136_v31, 1  ;;  %v2335_v31 = vld [vmem:[%s4333_s5 + $0xf8] sm:$0xff] }
0x12da   :  { %v2113_v33 = vmul.f32 0.7978846, %v2111_v9 }
0x12db   :  { %v2102_v46 = vpop.f32.mrf.mxu0 }
0x12dc   :  { %3210 = vtanh.f32 %v2113_v33  ;;  %v2103_v14 = vadd.f32 %v2102_v46, %v2075_v32 }
0x12de   :  { %v2106_v44 = vmul.f32 %v2103_v14, %v2103_v14 }
0x12e0   :  { %v2108_v11 = vmul.f32 %v2106_v44, %v2103_v14 }
0x12e2   :  { %v3211_v47 = vpop.eup %3210  ;;  %v2110_v49 = vmul.f32 0.044715, %v2108_v11 }
0x12e3   :  { %v2117_v42 = vadd.f32 1.0, %v3211_v47 }
0x12e4   :  { %v2112_v34 = vadd.f32 %v2110_v49, %v2103_v14 }
0x12e5   :  { %v2119_v62 = vmul.f32 0.5, %v2117_v42 }
0x12e6   :  { %v2114_v51 = vmul.f32 0.7978846, %v2112_v34 }
0x12e7   :  { %v2121_v54 = vmul.f32 %v2119_v62, %v2100_v39 }
0x12e8   :  { %3212 = vtanh.f32 %v2114_v51  ;;  %v4102_v51 = vld [vmem:[%s4330_s2] sm:$0xff] }
0x12e9   :  { %2157 = vmatmul.f32.vlgmr.msra.gmra.mxu1 %v2121_v54  ;;  %v2224_v54 = vperm.slane %v4102_v51, 6 }
0x12ee   :  { %v3213_v59 = vpop.eup %3212 }
0x12ef   :  { %v2118_v37 = vadd.f32 1.0, %v3213_v59 }
0x12f1   :  { %v2120_v5 = vmul.f32 0.5, %v2118_v37 }
0x12f3   :  { %v2122_v52 = vmul.f32 %v2120_v5, %v2103_v14 }
0x12f5   :  { %2160 = vmatmul.f32.gmra.mxu1 %v2122_v52 }
0x1366   :  { %v2158_v57 = vpop.f32.mrf.mxu1 }
0x1367   :  { %v2159_v58 = vadd.f32 %v2158_v57, %v2140_v36 }
0x1369   :  { %v2164_v43 = vadd.f32 %v2159_v58, %v4033_v16 }
0x136b   :  { %v2166_v7 = vsel %vm174_vm1, %v2164_v43, 0.0 }
0x136c   :  { %2167 = vadd.xlane.f32.xlu2 %v2166_v7 }
0x1372   :  { %v2161_v48 = vpop.f32.mrf.mxu1 }
0x1373   :  { %v2162_v6 = vadd.f32 %v2161_v48, %v2140_v36 }
0x1375   :  { %v2165_v10 = vadd.f32 %v2162_v6, %v4037_v19  ;;  %v2217_v19 = vld [vmem:[#allocation6 + $0x8] sm:$0xff] }
0x1376   :  { %2245 = vmatpush.msra.mxu2 %v2217_v19  ;;  %v2318_v19 = vld [vmem:[%s4333_s5 + $0x70] sm:$0xff] }
0x1377   :  { %v2169_v60 = vsel %vm174_vm1, %v2165_v10, 0.0 }
0x1378   :  { %2170 = vadd.xlane.f32.xlu0 %v2169_v60  ;;  %2246 = vmatpush.msra.mxu2 %v2216_v22  ;;  %v2312_v22 = vld [vmem:[%s4333_s5 + $0x40] sm:$0xff] }
0x13df   :  { %v2168_v61 = vpop.xlane.xlu2 %2167 }
0x13e0   :  { %v2172_v15 = vmul.f32 %v2168_v61, %v3497_v20 }
0x13e2   :  { %v2174_v63 = vsub.f32 %v2164_v43, %v2172_v15 }
0x13e4   :  { %v2176_v2 = vmul.f32 %v2174_v63, %v2174_v63 }
0x13e6   :  { %v2178_v45 = vsel %vm174_vm1, %v2176_v2, 0.0  ;;  %v2333_v2 = vld [vmem:[%s4333_s5 + $0xe8] sm:$0xff] }
0x13e7   :  { %2179 = vadd.xlane.f32.xlu1 %v2178_v45  ;;  %v2334_v45 = vld [vmem:[%s4333_s5 + $0xf0] sm:$0xff]  ;;  %2377 = vmatpush.msra.mxu0 %v2333_v2 }
0x13e8   :  { %2400 = vmatpush.msrb.mxu2 %v2334_v45 }
0x13eb   :  { %v2171_v4 = vpop.xlane.xlu0 %2170 }
0x13ec   :  { %v2173_v8 = vmul.f32 %v2171_v4, %v3497_v20  ;;  %v2328_v4 = vld [vmem:[%s4333_s5 + $0xc0] sm:$0xff] }
0x13ee   :  { %v2175_v12 = vsub.f32 %v2165_v10, %v2173_v8  ;;  %v2329_v8 = vld [vmem:[%s4333_s5 + $0xc8] sm:$0xff] }
0x13ef   :  { %2378 = vmatpush.msra.mxu0 %v2329_v8 }
0x13f0   :  { %v2177_v13 = vmul.f32 %v2175_v12, %v2175_v12 }
0x13f2   :  { %v2181_v16 = vsel %vm174_vm1, %v2177_v13, 0.0  ;;  %v2324_v13 = vld [vmem:[%s4333_s5 + $0xa0] sm:$0xff] }
0x13f3   :  { %2182 = vadd.xlane.f32.xlu2 %v2181_v16  ;;  %v2325_v16 = vld [vmem:[%s4333_s5 + $0xa8] sm:$0xff] }
0x13f4   :  { %2379 = vmatpush.msra.mxu0 %v2325_v16 }
0x13f6   :  { %2380 = vmatpush.msra.mxu0 %v2321_v1 }
0x13f8   :  { %2381 = vmatpush.msra.mxu0 %v2317_v50  ;;  %v133_v50 = vld [vmem:[%s4330_s2 + $0x38] sm:$0xff] }
0x145a   :  { %v2180_v23 = vpop.xlane.xlu1 %2179 }
0x145b   :  { %v2184_v24 = vmul.f32 %v2180_v23, %v3497_v20  ;;  %v2313_v23 = vld [vmem:[%s4333_s5 + $0x48] sm:$0xff] }
0x145c   :  { %2382 = vmatpush.msra.mxu0 %v2313_v23 }
0x145d   :  { %v2186_v26 = vadd.f32 1e-12, %v2184_v24  ;;  %v2314_v24 = vld [vmem:[%s4333_s5 + $0x50] sm:$0xff] }
0x145f   :  { %3214 = vrsqrt.f32 %v2186_v26  ;;  %vm2194_vm8 = vweird.f32 %v2186_v26 }
0x1465   :  { %v3215_v28 = vpop.eup %3214 }
0x1466   :  { %v2189_v27 = vmul.f32 %v3215_v28, %v2186_v26  ;;  %v2183_v25 = vpop.xlane.xlu2 %2182  ;;  %vm2195_vm7 = vweird.f32 %v3215_v28  ;;  %v2308_v26 = vld [vmem:[%s4333_s5 + $0x20] sm:$0xff] }
0x1467   :  { %v2185_v53 = vmul.f32 %v2183_v25, %v3497_v20  ;;  %vm2196_vm9 = vmor %vm2194_vm8, %vm2195_vm7  ;;  %v2304_v25 = vld [vmem:[%s4333_s5] sm:$0xff]  ;;  %vm2938_vm8 = vcmask 195584  }
0x1468   :  { %v2190_v21 = vmul.f32 %v3215_v28, %v2189_v27  ;;  %v2310_v27 = vld [vmem:[%s4333_s5 + $0x30] sm:$0xff] }
0x1469   :  { %v2187_v3 = vadd.f32 1e-12, %v2185_v53  ;;  %v2305_v53 = vld [vmem:[%s4333_s5 + $0x8] sm:$0xff] }
0x146a   :  { %v2191_v30 = vmul.f32 0.5, %v2190_v21  ;;  %v2306_v21 = vld [vmem:[%s4333_s5 + $0x10] sm:$0xff] }
0x146b   :  { %3216 = vrsqrt.f32 %v2187_v3  ;;  %vm2204_vm12 = vweird.f32 %v2187_v3 }
0x146c   :  { %v2192_v29 = vsub.f32 1.5, %v2191_v30 }
0x146e   :  { %v2193_v32 = vmul.f32 %v3215_v28, %v2192_v29 }
0x1470   :  { %v2197_v39 = vsel %vm2196_vm9, %v3215_v28, %v2193_v32  ;;  %v2309_v28 = vld [vmem:[%s4333_s5 + $0x28] sm:$0xff]  ;;  %v2331_v32 = vld [vmem:[%s4333_s5 + $0xd8] sm:$0xff]  ;;  %vm2943_vm9 = vcmask 326656  }
0x1471   :  { %v3217_v40 = vpop.eup %3216  ;;  %v2208_v41 = vmul.f32 %v2197_v39, %v2174_v63  ;;  %v2332_v63 = vld [vmem:[%s4333_s5 + $0xe0] sm:$0xff]  ;;  %2383 = vmatpush.msra.mxu0 %v2309_v28  ;;  %v2323_v39 = vld [vmem:[%s4333_s5 + $0x98] sm:$0xff] }
0x1472   :  { %v2199_v9 = vmul.f32 %v3217_v40, %v2187_v3  ;;  %vm2205_vm10 = vweird.f32 %v3217_v40  ;;  %2354 = vmatpush.msra.mxu3 %v2332_v63 }
0x1473   :  { %v2211_v33 = vmul.f32 %v2210_v38, %v2208_v41  ;;  %vm2206_vm13 = vmor %vm2204_vm12, %vm2205_vm10  ;;  %2384 = vmatpush.msra.mxu0 %v2305_v53  ;;  %v2315_v41 = vld [vmem:[%s4333_s5 + $0x58] sm:$0xff]  ;;  %vm2948_vm10 = vcmask 457728  }
0x1474   :  { %v2200_v46 = vmul.f32 %v3217_v40, %v2199_v9  ;;  %2355 = vmatpush.msra.mxu3 %v2328_v4 }
0x1475   :  { %v2214_v14 = vadd.f32 %v2213_v35, %v2211_v33 }
0x1476   :  { %v2201_v44 = vmul.f32 0.5, %v2200_v46  ;;  %2356 = vmatpush.msra.mxu3 %v2324_v13  ;;  %v2311_v46 = vld [vmem:[%s4333_s5 + $0x38] sm:$0xff]  ;;  %v3225_v13 = vld [vmem:[%s4330_s2 + $0x28] sm:$0xff] }
0x1477   :  { %3043 = vmatmul.msk.f32.vlgmr.msra.gmra.mxu2 %vm174_vm1, %v2214_v14  ;;  %v2337_v16 = vperm.slane %v3225_v13, 1 }
0x1478   :  { %v2202_v11 = vsub.f32 1.5, %v2201_v44  ;;  %2357 = vmatpush.msra.mxu3 %v2320_v55 }
0x147a   :  { %v2203_v47 = vmul.f32 %v3217_v40, %v2202_v11  ;;  %2358 = vmatpush.msra.mxu3 %v2316_v17  ;;  %v2307_v11 = vld [vmem:[%s4333_s5 + $0x18] sm:$0xff] }
0x147c   :  { %v2207_v49 = vsel %vm2206_vm13, %v3217_v40, %v2203_v47  ;;  %2359 = vmatpush.msra.mxu3 %v2312_v22  ;;  %v2319_v40 = vld [vmem:[%s4333_s5 + $0x78] sm:$0xff]  ;;  %v2339_v22 = vperm.slane %v133_v50, 1 }
0x147d   :  { %v2209_v42 = vmul.f32 %v2207_v49, %v2175_v12  ;;  %v2330_v12 = vld [vmem:[%s4333_s5 + $0xd0] sm:$0xff] }
0x147e   :  { %2401 = vmatpush.msrb.mxu2 %v2330_v12  ;;  %2360 = vmatpush.msra.mxu3 %v2308_v26 }
0x147f   :  { %v2212_v34 = vmul.f32 %v2210_v38, %v2209_v42  ;;  %v2327_v38 = vld [vmem:[%s4333_s5 + $0xb8] sm:$0xff] }
0x1480   :  { %2402 = vmatpush.msrb.mxu2 %v2326_v18  ;;  %2361 = vmatpush.msra.mxu3 %v2304_v25 }
0x1481   :  { %v2215_v62 = vadd.f32 %v2213_v35, %v2212_v34 }
0x1482   :  { %2403 = vmatpush.msrb.mxu2 %v2322_v0  ;;  %2423 = vmatpush.msrb.mxu3 %v2335_v31 }
0x1483   :  { %3044 = vmatmul.msk.f32.gmra.mxu2 %vm174_vm1, %v2215_v62  ;;  %v2298_v62 = vperm.slane %v4102_v51, 7 }
0x1484   :  { %2404 = vmatpush.msrb.mxu2 %v2318_v19  ;;  %2424 = vmatpush.msrb.mxu3 %v2331_v32 }
0x1486   :  { %2405 = vmatpush.msrb.mxu2 %v2314_v24  ;;  %2425 = vmatpush.msrb.mxu3 %v2327_v38 }
0x1488   :  { %2406 = vmatpush.msrb.mxu2 %v2310_v27  ;;  %2426 = vmatpush.msrb.mxu3 %v2323_v39 }
0x148a   :  { %2407 = vmatpush.msrb.mxu2 %v2306_v21  ;;  %2427 = vmatpush.msrb.mxu3 %v2319_v40 }
0x148c   :  { %2428 = vmatpush.msrb.mxu3 %v2315_v41 }
0x148e   :  { %2429 = vmatpush.msrb.mxu3 %v2311_v46 }
0x1490   :  { %2430 = vmatpush.msrb.mxu3 %v2307_v11 }
0x14fa   :  { %v2248_v59 = vpop.f32.mrf.mxu2 }
0x14fb   :  { %v2249_v37 = vadd.f32 %v2248_v59, %v2224_v54 }
0x14fd   :  { %v2254_v5 = vsel %vm174_vm1, %v2249_v37, 0.0 }
0x14fe   :  { %2255 = vadd.xlane.f32.xlu0 %v2254_v5 }
0x1506   :  { %v2251_v52 = vpop.f32.mrf.mxu2 }
0x1507   :  { %v2252_v56 = vadd.f32 %v2251_v52, %v2224_v54 }
0x1509   :  { %v2257_v36 = vsel %vm174_vm1, %v2252_v56, 0.0 }
0x150a   :  { %2258 = vadd.xlane.f32.xlu1 %v2257_v36 }
0x1571   :  { %v2256_v57 = vpop.xlane.xlu0 %2255 }
0x1572   :  { %v2260_v58 = vmul.f32 %v2256_v57, %v3497_v20 }
0x1574   :  { %v4108_v43 = vsub.f32 %v2249_v37, %v2260_v58  ;;  %v3224_v37 = vld [vmem:[%s4330_s2 + $0x20] sm:$0xff] }
0x1575   :  { %v2301_v5 = vperm.slane %v3224_v37, 0 }
0x1576   :  { %v2264_v7 = vmul.f32 %v4108_v43, %v4108_v43 }
0x1578   :  { %v2266_v48 = vsel %vm174_vm1, %v2264_v7, 0.0 }
0x1579   :  { %2267 = vadd.xlane.f32.xlu2 %v2266_v48 }
0x157d   :  { %v2259_v6 = vpop.xlane.xlu1 %2258 }
0x157e   :  { %v2261_v10 = vmul.f32 %v2259_v6, %v3497_v20 }
0x1580   :  { %v4114_v60 = vsub.f32 %v2252_v56, %v2261_v10 }
0x1582   :  { %v2265_v61 = vmul.f32 %v4114_v60, %v4114_v60 }
0x1584   :  { %v2269_v15 = vsel %vm174_vm1, %v2265_v61, 0.0  ;;  %v132_v61 = vld [vmem:[%s4330_s2 + $0x30] sm:$0xff]  ;;  %s3395_s2 = smov 24  }
0x1585   :  { %2270 = vadd.xlane.f32.xlu0 %v2269_v15  ;;  %v2336_v15 = vperm.slane %v3224_v37, 1  ;;  %v2338_v63 = vperm.slane %v132_v61, 1 }
0x15ec   :  { %v2268_v3 = vpop.xlane.xlu2 %2267 }
0x15ed   :  { %v2272_v30 = vmul.f32 %v2268_v3, %v3497_v20 }
0x15ef   :  { %v2274_v29 = vadd.f32 1e-05, %v2272_v30 }
0x15f1   :  { %3218 = vrsqrt.f32 %v2274_v29  ;;  %vm2282_vm3 = vweird.f32 %v2274_v29 }
0x15f7   :  { %v3219_v35 = vpop.eup %3218 }
0x15f8   :  { %v2277_v9 = vmul.f32 %v3219_v35, %v2274_v29  ;;  %v2271_v33 = vpop.xlane.xlu0 %2270  ;;  %vm2283_vm14 = vweird.f32 %v3219_v35 }
0x15f9   :  { %v2273_v14 = vmul.f32 %v2271_v33, %v3497_v20  ;;  %vm2284_vm4 = vmor %vm2282_vm3, %vm2283_vm14 }
0x15fa   :  { %v2278_v44 = vmul.f32 %v3219_v35, %v2277_v9 }
0x15fb   :  { %v2275_v47 = vadd.f32 1e-05, %v2273_v14 }
0x15fc   :  { %v2279_v49 = vmul.f32 0.5, %v2278_v44 }
0x15fd   :  { %3220 = vrsqrt.f32 %v2275_v47  ;;  %vm2292_vm6 = vweird.f32 %v2275_v47 }
0x15fe   :  { %v2280_v42 = vsub.f32 1.5, %v2279_v49 }
0x1600   :  { %v2281_v34 = vmul.f32 %v3219_v35, %v2280_v42 }
0x1602   :  { %v2285_v54 = vsel %vm2284_vm4, %v3219_v35, %v2281_v34 }
0x1603   :  { %v3221_v20 = vpop.eup %3220  ;;  %v2296_v59 = vmul.f32 %v2285_v54, %v4108_v43 }
0x1604   :  { %v2287_v52 = vmul.f32 %v3221_v20, %v2275_v47  ;;  %vm2293_vm5 = vweird.f32 %v3221_v20 }
0x1605   :  { %v2299_v56 = vmul.f32 %v2298_v62, %v2296_v59  ;;  %vm2294_vm7 = vmor %vm2292_vm6, %vm2293_vm5 }
0x1606   :  { %v2288_v36 = vmul.f32 %v3221_v20, %v2287_v52 }
0x1607   :  { %v2302_v57 = vadd.f32 %v2301_v5, %v2299_v56 }
0x1608   :  { %v2289_v58 = vmul.f32 0.5, %v2288_v36 }
0x1609   :  { %3045 = vmatmul.msk.f32.vlgmr.msra.gmra.mxu3 %vm174_vm1, %v2302_v57  ;;  %3047 = vmatmul.msk.f32.vlgmr.msra.gmra.mxu0 %vm174_vm1, %v2302_v57 }
0x160a   :  { %v2290_v51 = vsub.f32 1.5, %v2289_v58  ;;  %3049 = vmatmul.msk.f32.vlgmr.msrb.gmra.mxu2 %vm174_vm1, %v2302_v57 }
0x160c   :  { %v2291_v7 = vmul.f32 %v3221_v20, %v2290_v51 }
0x160e   :  { %v2295_v43 = vsel %vm2294_vm7, %v3221_v20, %v2291_v7 }
0x160f   :  { %v2297_v48 = vmul.f32 %v2295_v43, %v4114_v60 }
0x1611   :  { %v2300_v6 = vmul.f32 %v2298_v62, %v2297_v48 }
0x1613   :  { %v2303_v10 = vadd.f32 %v2301_v5, %v2300_v6 }
0x1615   :  { %3046 = vmatmul.msk.f32.gmra.mxu3 %vm174_vm1, %v2303_v10  ;;  %3048 = vmatmul.msk.f32.gmra.mxu0 %vm174_vm1, %v2303_v10 }
0x1616   :  { %3050 = vmatmul.msk.f32.gmra.mxu2 %vm174_vm1, %v2303_v10 }
0x161d   :  { %3051 = vmatmul.msk.f32.vlgmr.msrb.gmra.mxu3 %vm174_vm1, %v2302_v57 }
0x1625   :  { %3052 = vmatmul.msk.f32.gmra.mxu3 %vm174_vm1, %v2303_v10 }
0x1686   :  { %v2386_v2 = vpop.f32.mrf.mxu0 }
0x1687   :  { %v2387_v24 = vadd.f32 %v2386_v2, %v2337_v16 }
0x168c   :  { %v2363_v60 = vpop.f32.mrf.mxu3 }
0x168d   :  { %v2364_v45 = vadd.f32 %v2363_v60, %v2336_v15  ;;  %v2409_v4 = vpop.f32.mrf.mxu2 }
0x168e   :  { %v2410_v8 = vadd.f32 %v2409_v4, %v2338_v63 }
0x168f   :  { %2490 = vrot.lane.b32.xlu2 %v2364_v45, %s3394_s14 }
0x1690   :  { %2604 = vrot.lane.b32.xlu0 %v2410_v8, %s3392_s30  ;;  %2492 = vrot.lane.b32.xlu1 %v2410_v8, %s3394_s14 }
0x1691   :  { %3053 = vmatpush.xpose.msk.msrb.mxu0 %vm144_vm0, %v2410_v8 }
0x1692   :  { %v2389_v12 = vpop.f32.mrf.mxu0 }
0x1693   :  { %v4242_v18 = vadd.f32 %v2389_v12, %v2337_v16 }
0x1694   :  { %3054 = vmatmul.msk.f32.vlgmr.msrb.gmra.mxu0 %vm144_vm0, %v2364_v45 }
0x1697   :  { %2548 = vrot.lane.b32.xlu2 %v2410_v8, %s3389_s28 }
0x1698   :  { %2794 = vrot.lane.b32.xlu1 %v4242_v18, %s3389_s28  ;;  %2602 = vrot.lane.b32.xlu0 %v2364_v45, %s3392_s30  ;;  %v2366_v1 = vpop.f32.mrf.mxu3 }
0x1699   :  { %v2412_v55 = vpop.f32.mrf.mxu2  ;;  %v2367_v17 = vadd.f32 %v2366_v1, %v2336_v15 }
0x169a   :  { %v2413_v0 = vadd.f32 %v2412_v55, %v2338_v63 }
0x169c   :  { %3055 = vmatpush.xpose.msk.msrb.mxu1 %vm144_vm0, %v2413_v0 }
0x169f   :  { %3056 = vmatmul.msk.f32.vlgmr.msrb.gmra.mxu1 %vm144_vm0, %v2367_v17  ;;  %2738 = vrot.lane.b32.xlu2 %v4242_v18, %s3394_s14 }
0x16a0   :  { %2576 = vrot.lane.b32.xlu1 %v2413_v0, %s3389_s28  ;;  %2546 = vrot.lane.b32.xlu0 %v2364_v45, %s3389_s28  ;;  %v2432_v19 = vpop.f32.mrf.mxu3 }
0x16a1   :  { %v2433_v23 = vadd.f32 %v2432_v19, %v2339_v22 }
0x16a7   :  { %2518 = vrot.lane.b32.xlu2 %v2367_v17, %s3394_s14 }
0x16a8   :  { %2574 = vrot.lane.b32.xlu1 %v2367_v17, %s3389_s28  ;;  %2520 = vrot.lane.b32.xlu0 %v2413_v0, %s3394_s14  ;;  %v2435_v26 = vpop.f32.mrf.mxu3 }
0x16a9   :  { %v2436_v28 = vadd.f32 %v2435_v26, %v2339_v22 }
0x16af   :  { %2712 = vrot.lane.b32.xlu2 %v2433_v23, %s3394_s14 }
0x16b0   :  { %2632 = vrot.lane.b32.xlu1 %v2413_v0, %s3392_s30  ;;  %2710 = vrot.lane.b32.xlu0 %v2387_v24, %s3394_s14 }
0x16b7   :  { %2740 = vrot.lane.b32.xlu2 %v2436_v28, %s3394_s14  ;;  %s3397_s14 = smov 56  }
0x16b8   :  { %2630 = vrot.lane.b32.xlu1 %v2367_v17, %s3392_s30  ;;  %2822 = vrot.lane.b32.xlu0 %v2387_v24, %s3392_s30 }
0x16bf   :  { %2768 = vrot.lane.b32.xlu2 %v2433_v23, %s3389_s28 }
0x16c0   :  { %2796 = vrot.lane.b32.xlu1 %v2436_v28, %s3389_s28  ;;  %2824 = vrot.lane.b32.xlu0 %v2433_v23, %s3392_s30 }
0x16c7   :  { %2850 = vrot.lane.b32.xlu2 %v4242_v18, %s3392_s30 }
0x16c8   :  { %2852 = vrot.lane.b32.xlu1 %v2436_v28, %s3392_s30  ;;  %2766 = vrot.lane.b32.xlu0 %v2387_v24, %s3389_s28  ;;  %s3396_s28 = smov 40  }
0x16e9   :  { %v2491_v27 = vpop.permute.xlu2 %2490 }
0x16f1   :  { %v2549_v25 = vpop.permute.xlu2 %2548 }
0x16f2   :  { %3061 = vmatpush.xpose.msk.msra.mxu1 %vm144_vm0, %v2549_v25 }
0x16f6   :  { %3069 = vmatpush.xpose.msk.msrb.mxu1 %vm144_vm0, %v2433_v23 }
0x16f9   :  { %v2739_v53 = vpop.permute.xlu2 %2738 }
0x1701   :  { %v2519_v21 = vpop.permute.xlu2 %2518 }
0x1702   :  { %v2605_v3 = vpop.permute.xlu0 %2604  ;;  %v2493_v30 = vpop.permute.xlu1 %2492 }
0x1703   :  { %3057 = vmatpush.xpose.msk.msra.mxu2 %vm144_vm0, %v2493_v30  ;;  %3065 = vmatpush.xpose.msk.msra.mxu3 %vm144_vm0, %v2605_v3 }
0x1706   :  { %3058 = vmatmul.msk.f32.vlgmr.msra.gmra.mxu2 %vm144_vm0, %v2491_v27 }
0x1709   :  { %v2713_v31 = vpop.permute.xlu2 %2712 }
0x170a   :  { %v2795_v29 = vpop.permute.xlu1 %2794  ;;  %v2603_v32 = vpop.permute.xlu0 %2602  ;;  %3073 = vmatpush.xpose.msk.msrb.mxu3 %vm144_vm0, %v2713_v31 }
0x170b   :  { %3066 = vmatmul.msk.f32.vlgmr.msra.gmra.mxu3 %vm144_vm0, %v2603_v32 }
0x1711   :  { %v2741_v38 = vpop.permute.xlu2 %2740  ;;  %v2461_v37 = vpop.f32.mrf.mxu0 }
0x1712   :  { %v2577_v39 = vpop.permute.xlu1 %2576  ;;  %v2547_v40 = vpop.permute.xlu0 %2546 }
0x1713   :  { %3062 = vmatmul.msk.f32.vlgmr.msra.gmra.mxu1 %vm144_vm0, %v2547_v40  ;;  %3063 = vmatpush.xpose.msk.msrb.mxu2 %vm144_vm0, %v2577_v39 }
0x1717   :  { %3071 = vmatpush.xpose.msk.msra.mxu2 %vm144_vm0, %v2436_v28 }
0x1719   :  { %v2769_v41 = vpop.permute.xlu2 %2768 }
0x171a   :  { %v2575_v35 = vpop.permute.xlu1 %2574  ;;  %v2521_v9 = vpop.permute.xlu0 %2520  ;;  %3077 = vmatpush.xpose.msk.msra.mxu1 %vm144_vm0, %v2769_v41 }
0x171b   :  { %3059 = vmatpush.xpose.msk.msra.mxu0 %vm144_vm0, %v2521_v9  ;;  %3064 = vmatmul.msk.f32.vlgmr.msrb.gmra.mxu2 %vm144_vm0, %v2575_v35 }
0x171c   :  { %3070 = vmatmul.msk.f32.vlgmr.msrb.gmra.mxu1 %vm144_vm0, %v2387_v24  ;;  %v2487_v62 = vpop.f32.mrf.mxu1 }
0x171e   :  { %3060 = vmatmul.msk.f32.vlgmr.msra.gmra.mxu0 %vm144_vm0, %v2519_v21 }
0x1721   :  { %v2851_v34 = vpop.permute.xlu2 %2850 }
0x1722   :  { %v2633_v33 = vpop.permute.xlu1 %2632  ;;  %v2711_v46 = vpop.permute.xlu0 %2710 }
0x1723   :  { %3067 = vmatpush.xpose.msk.msrb.mxu0 %vm144_vm0, %v2633_v33  ;;  %3072 = vmatmul.msk.f32.vlgmr.msra.gmra.mxu2 %vm144_vm0, %v4242_v18 }
0x1724   :  { %3074 = vmatmul.msk.f32.vlgmr.msrb.gmra.mxu3 %vm144_vm0, %v2711_v46 }
0x1727   :  { %3075 = vmatpush.xpose.msk.msra.mxu0 %vm144_vm0, %v2741_v38 }
0x172a   :  { %v2631_v14 = vpop.permute.xlu1 %2630  ;;  %v2823_v44 = vpop.permute.xlu0 %2822 }
0x172b   :  { %3068 = vmatmul.msk.f32.vlgmr.msrb.gmra.mxu0 %vm144_vm0, %v2631_v14 }
0x1732   :  { %v2797_v11 = vpop.permute.xlu1 %2796  ;;  %v2825_v47 = vpop.permute.xlu0 %2824 }
0x1733   :  { %3076 = vmatmul.msk.f32.vlgmr.msra.gmra.mxu0 %vm144_vm0, %v2739_v53  ;;  %3079 = vmatpush.xpose.msk.msrb.mxu2 %vm144_vm0, %v2797_v11 }
0x1734   :  { %3081 = vmatpush.xpose.msk.msra.mxu3 %vm144_vm0, %v2825_v47 }
0x1736   :  { %3080 = vmatmul.msk.f32.vlgmr.msrb.gmra.mxu2 %vm144_vm0, %v2795_v29 }
0x1737   :  { %3082 = vmatmul.msk.f32.vlgmr.msra.gmra.mxu3 %vm144_vm0, %v2823_v44 }
0x173a   :  { %v2853_v49 = vpop.permute.xlu1 %2852  ;;  %v2767_v42 = vpop.permute.xlu0 %2766 }
0x173b   :  { %3078 = vmatmul.msk.f32.vlgmr.msra.gmra.mxu1 %vm144_vm0, %v2767_v42  ;;  %3083 = vmatpush.xpose.msk.msrb.mxu0 %vm144_vm0, %v2853_v49 }
0x173e   :  { %3084 = vmatmul.msk.f32.vlgmr.msrb.gmra.mxu0 %vm144_vm0, %v2851_v34 }
0x1789   :  { %v2515_v54 = vpop.f32.mrf.mxu2 }
0x178a   :  { %2880 = vrot.lane.b32.xlu1 %v2515_v54, %s3380_s22 }
0x178e   :  { %v2627_v20 = vpop.f32.mrf.mxu3 }
0x178f   :  { %2896 = vrot.lane.b32.xlu0 %v2627_v20, %s3395_s2 }
0x1790   :  { %v2571_v59 = vpop.f32.mrf.mxu1 }
0x1791   :  { %2888 = vrot.lane.b32.xlu2 %v2571_v59, %s3383_s3 }
0x1799   :  { %v2681_v5 = vpop.f32.mrf.mxu1 }
0x179a   :  { %2904 = vrot.lane.b32.xlu1 %v2681_v5, %s3392_s30 }
0x179b   :  { %v2543_v52 = vpop.f32.mrf.mxu0 }
0x179c   :  { %2882 = vrot.lane.b32.xlu0 %v2543_v52, %s3380_s22 }
0x179e   :  { %v2599_v56 = vpop.f32.mrf.mxu2 }
0x17a2   :  { %2890 = vrot.lane.b32.xlu1 %v2599_v56, %s3383_s3 }
0x17a6   :  { %v2707_v51 = vpop.f32.mrf.mxu2 }
0x17a7   :  { %v2735_v57 = vpop.f32.mrf.mxu3 }
0x17a8   :  { %v2655_v36 = vpop.f32.mrf.mxu0 }
0x17a9   :  { %2898 = vrot.lane.b32.xlu2 %v2655_v36, %s3395_s2 }
0x17b0   :  { %v2763_v58 = vpop.f32.mrf.mxu0 }
0x17b1   :  { %2912 = vrot.lane.b32.xlu2 %v2735_v57, %s3396_s28  ;;  %2914 = vrot.lane.b32.xlu1 %v2763_v58, %s3396_s28 }
0x17b8   :  { %v2791_v7 = vpop.f32.mrf.mxu1 }
0x17b9   :  { %v2819_v43 = vpop.f32.mrf.mxu2  ;;  %2920 = vrot.lane.b32.xlu0 %v2791_v7, %s3390_s6 }
0x17ba   :  { %v2847_v48 = vpop.f32.mrf.mxu3  ;;  %2922 = vrot.lane.b32.xlu2 %v2819_v43, %s3390_s6 }
0x17bb   :  { %2928 = vrot.lane.b32.xlu1 %v2847_v48, %s3397_s14  ;;  %v2875_v6 = vpop.f32.mrf.mxu0 }
0x17c1   :  { %2906 = vrot.lane.b32.xlu0 %v2707_v51, %s3392_s30 }
0x17c9   :  { %2930 = vrot.lane.b32.xlu0 %v2875_v6, %s3397_s14 }
0x17eb   :  { %v2889_v15 = vpop.permute.xlu2 %2888 }
0x17fc   :  { %v2881_v10 = vpop.permute.xlu1 %2880 }
0x17fd   :  { %v2934_v45 = vsel %vm422_vm2, %v2461_v37, %v2881_v10 }
0x17fe   :  { %v2936_v12 = vsel %vm370_vm15, %v2934_v45, %v2889_v15 }
0x1801   :  { %v2897_v63 = vpop.permute.xlu0 %2896 }
0x1802   :  { %v2939_v13 = vsel %vm2938_vm8, %v2936_v12, %v2897_v63 }
0x1803   :  { %v2899_v60 = vpop.permute.xlu2 %2898 }
0x180b   :  { %v2913_v18 = vpop.permute.xlu2 %2912 }
0x180c   :  { %v2905_v61 = vpop.permute.xlu1 %2904 }
0x180d   :  { %v2941_v16 = vsel %vm144_vm0, %v2939_v13, %v2905_v61 }
0x180e   :  { %v2883_v4 = vpop.permute.xlu0 %2882  ;;  %v2944_v55 = vsel %vm2943_vm9, %v2941_v16, %v2913_v18 }
0x180f   :  { %v2935_v19 = vsel %vm422_vm2, %v2487_v62, %v2883_v4 }
0x1814   :  { %v2891_v2 = vpop.permute.xlu1 %2890  ;;  %v2923_v27 = vpop.permute.xlu2 %2922 }
0x1815   :  { %v2937_v22 = vsel %vm370_vm15, %v2935_v19, %v2891_v2 }
0x1816   :  { %v2940_v24 = vsel %vm2938_vm8, %v2937_v22, %v2899_v60 }
0x1823   :  { %v2915_v8 = vpop.permute.xlu1 %2914 }
0x182b   :  { %v2921_v1 = vpop.permute.xlu0 %2920 }
0x182c   :  { %v2946_v0 = vsel %vm1015_vm11, %v2944_v55, %v2921_v1 }
0x182d   :  { %v2929_v17 = vpop.permute.xlu1 %2928 }
0x182e   :  { %v2949_v50 = vsel %vm2948_vm10, %v2946_v0, %v2929_v17 }
0x182f   :  { %2951 = vst.msk [vmem:[%s4338_s10] sm:$0xff] %vm174_vm1, %v2949_v50 }
0x1833   :  { %v2907_v23 = vpop.permute.xlu0 %2906 }
0x1834   :  { %v2942_v26 = vsel %vm144_vm0, %v2940_v24, %v2907_v23 }
0x1835   :  { %v2945_v28 = vsel %vm2943_vm9, %v2942_v26, %v2915_v8 }
0x1836   :  { %v2947_v25 = vsel %vm1015_vm11, %v2945_v28, %v2923_v27 }
0x183b   :  { %v2931_v53 = vpop.permute.xlu0 %2930 }
0x183c   :  { %v2950_v21 = vsel %vm2948_vm10, %v2947_v25, %v2931_v53 }
0x183d   :  { %2952 = vst.msk [vmem:[%s4338_s10 + $0x8] sm:$0xff] %vm174_vm1, %v2950_v21 }
0x183e   :  { %2957 = vsyncpa [#allocation3], 1 }
0x183f   :  { %2958 = vsyncpa [#allocation5], 1 }
0x1840   :  { %2959 = vsyncpa [#allocation8], 1 }
0x1841   :  { %2960 = vsyncpa [#allocation11], 1 }

</bundles_post_ra>
